<compile_context>
chip_gen: v6e
topology: v6e:2x2x1
jax: 0.10.0
libtpu: 0.0.40
codegen_flags: <defaults>
</compile_context>

<pallas_src>
import functools

import jax
import jax.numpy as jnp
from jax import lax
from jax.experimental import pallas as pl
from jax.experimental.pallas import tpu as pltpu

# ----------------------------- model dims -----------------------------------
D_MODEL = 32
N_HEAD = 4
D_HEAD = D_MODEL // N_HEAD
D_FF = 64
NUM_LAYERS = 2
LN_EPS = 1e-5

_VEC_W = max(D_MODEL, D_FF)      # lane width of the packed bias/LN slab
_ROWS_PER_LAYER = 10             # b_q, b_k, b_v, b_out, b_ff1, b_ff2, ln1_g/b, ln2_g/b


# ----------------------------- fused kernel ----------------------------------
def _layer_norm(y, g, b):
    mean = jnp.mean(y, axis=-1, keepdims=True)
    var = jnp.mean((y - mean) ** 2, axis=-1, keepdims=True)
    return (y - mean) * lax.rsqrt(var + LN_EPS) * g + b


def _encoder_kernel(x_ref, w_heads_ref, w_ff_ref, vec_ref, o_ref, p_ref, *,
                    num_layers, batch, seq, n_head, d_head, apply_final_norm):
    # TODO(synk): src_mask / src_key_padding_mask not supported (the reference
    # forward is exercised with both set to None).
    D = n_head * d_head
    f32 = jnp.float32

    V = vec_ref[...].astype(f32)                         # (NR, _VEC_W) bias/LN slab

    def vrow(i, w=D):                                    # (1, w) slab row
        return V[i:i + 1, :w]

    inv_h = f32(1.0 / n_head)
    x_full = x_ref[...].astype(f32)                      # (S, B, D), 2 KB

    # Per-batch contiguous (S, S) attention: no cross-batch mask, no (M, M)
    # score matrix; avg probs of the last layer go straight to p_ref[b].
    for b in range(batch):                               # static unroll (tiny B)
        x = x_full[:, b, :]                              # (S, D)
        p_avg = None

        for l in range(num_layers):                      # static unroll
            wb = l * 4 * n_head                          # base into w_heads slab
            vb = l * _ROWS_PER_LAYER                     # base into bias/LN slab
            collect = l == num_layers - 1

            attn = jnp.zeros((seq, D), f32)
            p_sum = jnp.zeros((seq, seq), f32) if collect else None

            # ---------------- multi-head self-attention ----------------
            for h in range(n_head):                      # static unroll
                wq = w_heads_ref[wb + h].astype(f32)                   # (dh, D), Q pre-scaled
                wk = w_heads_ref[wb + n_head + h].astype(f32)          # (dh, D)
                wv = w_heads_ref[wb + 2 * n_head + h].astype(f32)      # (dh, D)
                wo = w_heads_ref[wb + 3 * n_head + h].astype(f32)      # (dh, D)
                hs = h * d_head

                # direct (S, D) x (dh, D)^T matmuls — no per-head lane slicing
                q_h = lax.dot_general(x, wq, (((1,), (1,)), ((), ())),
                                      preferred_element_type=f32) \
                    + vrow(vb + 0)[:, hs:hs + d_head]
                k_h = lax.dot_general(x, wk, (((1,), (1,)), ((), ())),
                                      preferred_element_type=f32) \
                    + vrow(vb + 1)[:, hs:hs + d_head]
                v_h = lax.dot_general(x, wv, (((1,), (1,)), ((), ())),
                                      preferred_element_type=f32) \
                    + vrow(vb + 2)[:, hs:hs + d_head]

                s = lax.dot_general(q_h, k_h, (((1,), (1,)), ((), ())),
                                    preferred_element_type=f32)        # (S, S)
                m = jnp.max(s, axis=-1, keepdims=True)
                e = jnp.exp(s - m)
                denom = jnp.sum(e, axis=-1, keepdims=True)
                if collect:
                    p = e / denom                        # exact: these are returned
                    p_sum = p_sum + p
                    o_h = jnp.dot(p, v_h, preferred_element_type=f32)
                else:
                    # deferred normalization: EUP reciprocal + (S, dh) multiply
                    o_h = jnp.dot(e, v_h, preferred_element_type=f32) \
                        * pl.reciprocal(denom, approx=True)

                # fold the head-concat into the output projection
                attn = attn + jnp.dot(o_h, wo, preferred_element_type=f32)

            attn = attn + vrow(vb + 3)                                  # b_out
            x = _layer_norm(x + attn, vrow(vb + 6), vrow(vb + 7))       # post-norm LN1

            # ---------------- feed-forward -------------------------------
            w_ff1 = w_ff_ref[2 * l].astype(f32)          # (D, F)
            w_ff2t = w_ff_ref[2 * l + 1].astype(f32)     # (D, F) == w_ff2.T
            hid = jnp.dot(x, w_ff1, preferred_element_type=f32) + vrow(vb + 4, D_FF)
            hid = jnp.maximum(hid, 0.0)
            ff = lax.dot_general(hid, w_ff2t, (((1,), (1,)), ((), ())),
                                 preferred_element_type=f32) + vrow(vb + 5)
            x = _layer_norm(x + ff, vrow(vb + 8), vrow(vb + 9))         # post-norm LN2

            if collect:
                p_avg = p_sum * inv_h

        if apply_final_norm:
            fb = num_layers * _ROWS_PER_LAYER
            x = _layer_norm(x, vrow(fb), vrow(fb + 1))

        o_ref[:, b, :] = x.astype(o_ref.dtype)           # output stays (S, B, D)
        p_ref[b] = p_avg.astype(p_ref.dtype)             # (S, S) per batch


# ----------------------------- parameter packing -----------------------------
def _pad_row(v, width=_VEC_W):
    v = v.reshape(-1)
    return jnp.pad(v, (0, width - v.shape[0]))


def _pack_params(layer_params_list, final_norm_params):
    """Pack all per-layer parameters into 3 operands (tiny, one-time work)."""
    scale = 1.0 / (D_HEAD ** 0.5)
    w_heads, w_ff, rows = [], [], []
    for p in layer_params_list:
        # Per-head transposed projection weights (dh, D): q0..q3, k0..k3,
        # v0..v3, then the per-head rows of w_out.  1/sqrt(d_head) is folded
        # into the Q blocks (and Q bias).
        w_qkv_t = p["w_in"].T.reshape(3 * N_HEAD, D_HEAD, D_MODEL)
        w_qkv_t = w_qkv_t.at[:N_HEAD].multiply(scale)
        w_o = p["w_out"].reshape(N_HEAD, D_HEAD, D_MODEL)
        w_heads.append(jnp.concatenate([w_qkv_t, w_o], axis=0))        # (16, dh, D)
        w_ff.append(jnp.stack([p["w_ff1"], p["w_ff2"].T], axis=0))     # (2, D, F)

        b_in = p["b_in"]
        rows += [
            _pad_row(b_in[:D_MODEL] * scale),            # b_q (scaled)
            _pad_row(b_in[D_MODEL:2 * D_MODEL]),         # b_k
            _pad_row(b_in[2 * D_MODEL:]),                # b_v
            _pad_row(p["b_out"]),
            _pad_row(p["b_ff1"]),
            _pad_row(p["b_ff2"]),
            _pad_row(p["ln1_g"]), _pad_row(p["ln1_b"]),
            _pad_row(p["ln2_g"]), _pad_row(p["ln2_b"]),
        ]
    if final_norm_params is not None:                    # only packed when present
        rows += [_pad_row(final_norm_params[0]), _pad_row(final_norm_params[1])]

    return (jnp.concatenate(w_heads, axis=0),            # (L*4*H, dh, D)
            jnp.concatenate(w_ff, axis=0),               # (L*2,   D,  F)
            jnp.stack(rows, axis=0))                     # (NR, _VEC_W)


# ----------------------------- wrapper ---------------------------------------
def encoder_forward(src, layer_params_list, final_norm_params=None):
    """SparseTransformerEncoder.forward.

    src: (S, B, D).  Returns (output (S, B, D), attn_weights (B, S, S)) where
    attn_weights is the last layer's head-averaged attention matrix.
    """
    S, B, D = src.shape
    L = len(layer_params_list)
    assert L >= 1, "SparseTransformerEncoder requires at least one layer"
    assert D == D_MODEL

    w_heads, w_ff, vecs = _pack_params(layer_params_list, final_norm_params)
    apply_final = final_norm_params is not None

    kernel = functools.partial(
        _encoder_kernel,
        num_layers=L, batch=B, seq=S,
        n_head=N_HEAD, d_head=D_HEAD,
        apply_final_norm=apply_final,
    )

    vmem = pltpu.MemorySpace.VMEM
    # Single grid-less invocation: whole working set (<1 MB incl. layout
    # padding) is VMEM-resident on every TPU generation.
    out, attn = pl.pallas_call(
        kernel,
        out_shape=(
            jax.ShapeDtypeStruct((S, B, D), src.dtype),
            jax.ShapeDtypeStruct((B, S, S), jnp.float32),
        ),
        in_specs=[pl.BlockSpec(memory_space=vmem) for _ in range(4)],
        out_specs=(pl.BlockSpec(memory_space=vmem),
                   pl.BlockSpec(memory_space=vmem)),
    )(src, w_heads, w_ff, vecs)
    return out, attn


# ----------------------------- parameter init --------------------------------
def init_layer_params(key):
    ks = jax.random.split(key, 4)
    s = 0.05
    return dict(
        w_in=jax.random.normal(ks[0], (D_MODEL, 3 * D_MODEL), jnp.float32) * s,
        b_in=jnp.zeros((3 * D_MODEL,), jnp.float32),
        w_out=jax.random.normal(ks[1], (D_MODEL, D_MODEL), jnp.float32) * s,
        b_out=jnp.zeros((D_MODEL,), jnp.float32),
        w_ff1=jax.random.normal(ks[2], (D_MODEL, D_FF), jnp.float32) * s,
        b_ff1=jnp.zeros((D_FF,), jnp.float32),
        w_ff2=jax.random.normal(ks[3], (D_FF, D_MODEL), jnp.float32) * s,
        b_ff2=jnp.zeros((D_MODEL,), jnp.float32),
        ln1_g=jnp.ones((D_MODEL,), jnp.float32),
        ln1_b=jnp.zeros((D_MODEL,), jnp.float32),
        ln2_g=jnp.ones((D_MODEL,), jnp.float32),
        ln2_b=jnp.zeros((D_MODEL,), jnp.float32),
    )


# ----------------------------- main -------------------------------------------
if __name__ == "__main__":
    S, B = 8, 2
    src = jax.random.normal(jax.random.PRNGKey(0), (S, B, D_MODEL), jnp.float32)

    # _get_clones deep-copies the layer => all layers share identical initial weights.
    layer_params = init_layer_params(jax.random.PRNGKey(42))
    layers = [layer_params] * NUM_LAYERS
    final_norm = (jnp.ones((D_MODEL,), jnp.float32),
                  jnp.zeros((D_MODEL,), jnp.float32))

    fwd = jax.jit(lambda x: encoder_forward(x, layers, final_norm))
    out, attn = fwd(src)
    out = jax.block_until_ready(out)
    attn = jax.block_until_ready(attn)

    assert out.shape == (S, B, D_MODEL)
    assert attn.shape == (B, S, S)
    assert bool(jnp.all(jnp.isfinite(out)))
    # last layer's probabilities are normalized exactly -> rows sum to 1
    row_sums = jnp.sum(attn, axis=-1)
    assert bool(jnp.all(jnp.abs(row_sums - 1.0) < 1e-3))
    print("KERNEL_OK")
</pallas_src>

<mosaic_0001>
module attributes {stable_mosaic.version = 11 : i64} {
  func.func @_encoder_kernel(%arg0: memref<8x2x32xf32, #tpu.memory_space<vmem>>, %arg1: memref<32x8x32xf32, #tpu.memory_space<vmem>>, %arg2: memref<4x32x64xf32, #tpu.memory_space<vmem>>, %arg3: memref<22x64xf32, #tpu.memory_space<vmem>>, %arg4: memref<8x2x32xf32, #tpu.memory_space<vmem>>, %arg5: memref<2x8x8xf32, #tpu.memory_space<vmem>>) attributes {dimension_semantics = [], scalar_prefetch = 0 : i64, scratch_operands = 0 : i64, tpu.core_type = #tpu.core_type<tc>} {
    %c0 = arith.constant 0 : index
    %c0_0 = arith.constant 0 : index
    %0 = vector.load %arg3[%c0, %c0_0] : memref<22x64xf32, #tpu.memory_space<vmem>>, vector<22x64xf32>
    %c0_1 = arith.constant 0 : index
    %c0_2 = arith.constant 0 : index
    %c0_3 = arith.constant 0 : index
    %1 = vector.load %arg0[%c0_1, %c0_2, %c0_3] : memref<8x2x32xf32, #tpu.memory_space<vmem>>, vector<8x2x32xf32>
    %2 = vector.extract_strided_slice %1 {offsets = [0, 0, 0], sizes = [8, 1, 32], strides = [1, 1, 1]} : vector<8x2x32xf32> to vector<8x1x32xf32>
    %3 = vector.shape_cast %2 : vector<8x1x32xf32> to vector<8x32xf32>
    %cst = arith.constant 0.000000e+00 : f32
    %4 = vector.broadcast %cst : f32 to vector<8x32xf32>
    %c0_4 = arith.constant 0 : index
    %c0_5 = arith.constant 0 : index
    %c0_6 = arith.constant 0 : index
    %5 = vector.load %arg1[%c0_4, %c0_5, %c0_6] : memref<32x8x32xf32, #tpu.memory_space<vmem>>, vector<1x8x32xf32>
    %6 = vector.shape_cast %5 : vector<1x8x32xf32> to vector<8x32xf32>
    %c4 = arith.constant 4 : index
    %c0_7 = arith.constant 0 : index
    %c0_8 = arith.constant 0 : index
    %7 = vector.load %arg1[%c4, %c0_7, %c0_8] : memref<32x8x32xf32, #tpu.memory_space<vmem>>, vector<1x8x32xf32>
    %8 = vector.shape_cast %7 : vector<1x8x32xf32> to vector<8x32xf32>
    %c8 = arith.constant 8 : index
    %c0_9 = arith.constant 0 : index
    %c0_10 = arith.constant 0 : index
    %9 = vector.load %arg1[%c8, %c0_9, %c0_10] : memref<32x8x32xf32, #tpu.memory_space<vmem>>, vector<1x8x32xf32>
    %10 = vector.shape_cast %9 : vector<1x8x32xf32> to vector<8x32xf32>
    %c12 = arith.constant 12 : index
    %c0_11 = arith.constant 0 : index
    %c0_12 = arith.constant 0 : index
    %11 = vector.load %arg1[%c12, %c0_11, %c0_12] : memref<32x8x32xf32, #tpu.memory_space<vmem>>, vector<1x8x32xf32>
    %12 = vector.shape_cast %11 : vector<1x8x32xf32> to vector<8x32xf32>
    %cst_13 = arith.constant dense<0.000000e+00> : vector<8x8xf32>
    %13 = tpu.matmul %3, %6, %cst_13 {dimension_numbers = #tpu.dot_dimension_numbers<[1], [1], [0], [0], [0, 0, 1, 0], [], []>} : vector<8x32xf32>, vector<8x32xf32>, vector<8x8xf32> -> vector<8x8xf32>
    %14 = vector.extract_strided_slice %0 {offsets = [0, 0], sizes = [1, 32], strides = [1, 1]} : vector<22x64xf32> to vector<1x32xf32>
    %15 = vector.extract_strided_slice %14 {offsets = [0, 0], sizes = [1, 8], strides = [1, 1]} : vector<1x32xf32> to vector<1x8xf32>
    %16 = vector.broadcast %15 : vector<1x8xf32> to vector<8x8xf32>
    %17 = arith.addf %13, %16 : vector<8x8xf32>
    %cst_14 = arith.constant dense<0.000000e+00> : vector<8x8xf32>
    %18 = tpu.matmul %3, %8, %cst_14 {dimension_numbers = #tpu.dot_dimension_numbers<[1], [1], [0], [0], [0, 0, 1, 0], [], []>} : vector<8x32xf32>, vector<8x32xf32>, vector<8x8xf32> -> vector<8x8xf32>
    %19 = vector.extract_strided_slice %0 {offsets = [1, 0], sizes = [1, 32], strides = [1, 1]} : vector<22x64xf32> to vector<1x32xf32>
    %20 = vector.extract_strided_slice %19 {offsets = [0, 0], sizes = [1, 8], strides = [1, 1]} : vector<1x32xf32> to vector<1x8xf32>
    %21 = vector.broadcast %20 : vector<1x8xf32> to vector<8x8xf32>
    %22 = arith.addf %18, %21 : vector<8x8xf32>
    %cst_15 = arith.constant dense<0.000000e+00> : vector<8x8xf32>
    %23 = tpu.matmul %3, %10, %cst_15 {dimension_numbers = #tpu.dot_dimension_numbers<[1], [1], [0], [0], [0, 0, 1, 0], [], []>} : vector<8x32xf32>, vector<8x32xf32>, vector<8x8xf32> -> vector<8x8xf32>
    %24 = vector.extract_strided_slice %0 {offsets = [2, 0], sizes = [1, 32], strides = [1, 1]} : vector<22x64xf32> to vector<1x32xf32>
    %25 = vector.extract_strided_slice %24 {offsets = [0, 0], sizes = [1, 8], strides = [1, 1]} : vector<1x32xf32> to vector<1x8xf32>
    %26 = vector.broadcast %25 : vector<1x8xf32> to vector<8x8xf32>
    %27 = arith.addf %23, %26 : vector<8x8xf32>
    %cst_16 = arith.constant dense<0.000000e+00> : vector<8x8xf32>
    %28 = tpu.matmul %17, %22, %cst_16 {dimension_numbers = #tpu.dot_dimension_numbers<[1], [1], [0], [0], [0, 0, 1, 0], [], []>} : vector<8x8xf32>, vector<8x8xf32>, vector<8x8xf32> -> vector<8x8xf32>
    %cst_17 = arith.constant dense<0xFF800000> : vector<8xf32>
    %29 = vector.multi_reduction <maximumf>, %28, %cst_17 [1] : vector<8x8xf32> to vector<8xf32>
    %30 = vector.shape_cast %29 : vector<8xf32> to vector<8x1xf32>
    %31 = vector.broadcast %30 : vector<8x1xf32> to vector<8x8xf32>
    %32 = arith.subf %28, %31 : vector<8x8xf32>
    %33 = math.exp %32 : vector<8x8xf32>
    %cst_18 = arith.constant dense<0.000000e+00> : vector<8xf32>
    %34 = vector.multi_reduction <add>, %33, %cst_18 [1] : vector<8x8xf32> to vector<8xf32>
    %35 = vector.shape_cast %34 : vector<8xf32> to vector<8x1xf32>
    %cst_19 = arith.constant dense<0.000000e+00> : vector<8x8xf32>
    %36 = tpu.matmul %33, %27, %cst_19 {dimension_numbers = #tpu.dot_dimension_numbers<[1], [0], [0], [1], [0, 0, 1, 1], [], []>} : vector<8x8xf32>, vector<8x8xf32>, vector<8x8xf32> -> vector<8x8xf32>
    %37 = tpu.reciprocal %35 {approx = true} : vector<8x1xf32> -> vector<8x1xf32>
    %38 = vector.broadcast %37 : vector<8x1xf32> to vector<8x8xf32>
    %39 = arith.mulf %36, %38 : vector<8x8xf32>
    %cst_20 = arith.constant dense<0.000000e+00> : vector<8x32xf32>
    %40 = tpu.matmul %39, %12, %cst_20 {dimension_numbers = #tpu.dot_dimension_numbers<[1], [0], [0], [1], [0, 0, 1, 1], [], []>} : vector<8x8xf32>, vector<8x32xf32>, vector<8x32xf32> -> vector<8x32xf32>
    %41 = arith.addf %4, %40 : vector<8x32xf32>
    %c1 = arith.constant 1 : index
    %c0_21 = arith.constant 0 : index
    %c0_22 = arith.constant 0 : index
    %42 = vector.load %arg1[%c1, %c0_21, %c0_22] : memref<32x8x32xf32, #tpu.memory_space<vmem>>, vector<1x8x32xf32>
    %43 = vector.shape_cast %42 : vector<1x8x32xf32> to vector<8x32xf32>
    %c5 = arith.constant 5 : index
    %c0_23 = arith.constant 0 : index
    %c0_24 = arith.constant 0 : index
    %44 = vector.load %arg1[%c5, %c0_23, %c0_24] : memref<32x8x32xf32, #tpu.memory_space<vmem>>, vector<1x8x32xf32>
    %45 = vector.shape_cast %44 : vector<1x8x32xf32> to vector<8x32xf32>
    %c9 = arith.constant 9 : index
    %c0_25 = arith.constant 0 : index
    %c0_26 = arith.constant 0 : index
    %46 = vector.load %arg1[%c9, %c0_25, %c0_26] : memref<32x8x32xf32, #tpu.memory_space<vmem>>, vector<1x8x32xf32>
    %47 = vector.shape_cast %46 : vector<1x8x32xf32> to vector<8x32xf32>
    %c13 = arith.constant 13 : index
    %c0_27 = arith.constant 0 : index
    %c0_28 = arith.constant 0 : index
    %48 = vector.load %arg1[%c13, %c0_27, %c0_28] : memref<32x8x32xf32, #tpu.memory_space<vmem>>, vector<1x8x32xf32>
    %49 = vector.shape_cast %48 : vector<1x8x32xf32> to vector<8x32xf32>
    %cst_29 = arith.constant dense<0.000000e+00> : vector<8x8xf32>
    %50 = tpu.matmul %3, %43, %cst_29 {dimension_numbers = #tpu.dot_dimension_numbers<[1], [1], [0], [0], [0, 0, 1, 0], [], []>} : vector<8x32xf32>, vector<8x32xf32>, vector<8x8xf32> -> vector<8x8xf32>
    %51 = vector.extract_strided_slice %0 {offsets = [0, 0], sizes = [1, 32], strides = [1, 1]} : vector<22x64xf32> to vector<1x32xf32>
    %52 = vector.extract_strided_slice %51 {offsets = [0, 8], sizes = [1, 8], strides = [1, 1]} : vector<1x32xf32> to vector<1x8xf32>
    %53 = vector.broadcast %52 : vector<1x8xf32> to vector<8x8xf32>
    %54 = arith.addf %50, %53 : vector<8x8xf32>
    %cst_30 = arith.constant dense<0.000000e+00> : vector<8x8xf32>
    %55 = tpu.matmul %3, %45, %cst_30 {dimension_numbers = #tpu.dot_dimension_numbers<[1], [1], [0], [0], [0, 0, 1, 0], [], []>} : vector<8x32xf32>, vector<8x32xf32>, vector<8x8xf32> -> vector<8x8xf32>
    %56 = vector.extract_strided_slice %0 {offsets = [1, 0], sizes = [1, 32], strides = [1, 1]} : vector<22x64xf32> to vector<1x32xf32>
    %57 = vector.extract_strided_slice %56 {offsets = [0, 8], sizes = [1, 8], strides = [1, 1]} : vector<1x32xf32> to vector<1x8xf32>
    %58 = vector.broadcast %57 : vector<1x8xf32> to vector<8x8xf32>
    %59 = arith.addf %55, %58 : vector<8x8xf32>
    %cst_31 = arith.constant dense<0.000000e+00> : vector<8x8xf32>
    %60 = tpu.matmul %3, %47, %cst_31 {dimension_numbers = #tpu.dot_dimension_numbers<[1], [1], [0], [0], [0, 0, 1, 0], [], []>} : vector<8x32xf32>, vector<8x32xf32>, vector<8x8xf32> -> vector<8x8xf32>
    %61 = vector.extract_strided_slice %0 {offsets = [2, 0], sizes = [1, 32], strides = [1, 1]} : vector<22x64xf32> to vector<1x32xf32>
    %62 = vector.extract_strided_slice %61 {offsets = [0, 8], sizes = [1, 8], strides = [1, 1]} : vector<1x32xf32> to vector<1x8xf32>
    %63 = vector.broadcast %62 : vector<1x8xf32> to vector<8x8xf32>
    %64 = arith.addf %60, %63 : vector<8x8xf32>
    %cst_32 = arith.constant dense<0.000000e+00> : vector<8x8xf32>
    %65 = tpu.matmul %54, %59, %cst_32 {dimension_numbers = #tpu.dot_dimension_numbers<[1], [1], [0], [0], [0, 0, 1, 0], [], []>} : vector<8x8xf32>, vector<8x8xf32>, vector<8x8xf32> -> vector<8x8xf32>
    %cst_33 = arith.constant dense<0xFF800000> : vector<8xf32>
    %66 = vector.multi_reduction <maximumf>, %65, %cst_33 [1] : vector<8x8xf32> to vector<8xf32>
    %67 = vector.shape_cast %66 : vector<8xf32> to vector<8x1xf32>
    %68 = vector.broadcast %67 : vector<8x1xf32> to vector<8x8xf32>
    %69 = arith.subf %65, %68 : vector<8x8xf32>
    %70 = math.exp %69 : vector<8x8xf32>
    %cst_34 = arith.constant dense<0.000000e+00> : vector<8xf32>
    %71 = vector.multi_reduction <add>, %70, %cst_34 [1] : vector<8x8xf32> to vector<8xf32>
    %72 = vector.shape_cast %71 : vector<8xf32> to vector<8x1xf32>
    %cst_35 = arith.constant dense<0.000000e+00> : vector<8x8xf32>
    %73 = tpu.matmul %70, %64, %cst_35 {dimension_numbers = #tpu.dot_dimension_numbers<[1], [0], [0], [1], [0, 0, 1, 1], [], []>} : vector<8x8xf32>, vector<8x8xf32>, vector<8x8xf32> -> vector<8x8xf32>
    %74 = tpu.reciprocal %72 {approx = true} : vector<8x1xf32> -> vector<8x1xf32>
    %75 = vector.broadcast %74 : vector<8x1xf32> to vector<8x8xf32>
    %76 = arith.mulf %73, %75 : vector<8x8xf32>
    %cst_36 = arith.constant dense<0.000000e+00> : vector<8x32xf32>
    %77 = tpu.matmul %76, %49, %cst_36 {dimension_numbers = #tpu.dot_dimension_numbers<[1], [0], [0], [1], [0, 0, 1, 1], [], []>} : vector<8x8xf32>, vector<8x32xf32>, vector<8x32xf32> -> vector<8x32xf32>
    %78 = arith.addf %41, %77 : vector<8x32xf32>
    %c2 = arith.constant 2 : index
    %c0_37 = arith.constant 0 : index
    %c0_38 = arith.constant 0 : index
    %79 = vector.load %arg1[%c2, %c0_37, %c0_38] : memref<32x8x32xf32, #tpu.memory_space<vmem>>, vector<1x8x32xf32>
    %80 = vector.shape_cast %79 : vector<1x8x32xf32> to vector<8x32xf32>
    %c6 = arith.constant 6 : index
    %c0_39 = arith.constant 0 : index
    %c0_40 = arith.constant 0 : index
    %81 = vector.load %arg1[%c6, %c0_39, %c0_40] : memref<32x8x32xf32, #tpu.memory_space<vmem>>, vector<1x8x32xf32>
    %82 = vector.shape_cast %81 : vector<1x8x32xf32> to vector<8x32xf32>
    %c10 = arith.constant 10 : index
    %c0_41 = arith.constant 0 : index
    %c0_42 = arith.constant 0 : index
    %83 = vector.load %arg1[%c10, %c0_41, %c0_42] : memref<32x8x32xf32, #tpu.memory_space<vmem>>, vector<1x8x32xf32>
    %84 = vector.shape_cast %83 : vector<1x8x32xf32> to vector<8x32xf32>
    %c14 = arith.constant 14 : index
    %c0_43 = arith.constant 0 : index
    %c0_44 = arith.constant 0 : index
    %85 = vector.load %arg1[%c14, %c0_43, %c0_44] : memref<32x8x32xf32, #tpu.memory_space<vmem>>, vector<1x8x32xf32>
    %86 = vector.shape_cast %85 : vector<1x8x32xf32> to vector<8x32xf32>
    %cst_45 = arith.constant dense<0.000000e+00> : vector<8x8xf32>
    %87 = tpu.matmul %3, %80, %cst_45 {dimension_numbers = #tpu.dot_dimension_numbers<[1], [1], [0], [0], [0, 0, 1, 0], [], []>} : vector<8x32xf32>, vector<8x32xf32>, vector<8x8xf32> -> vector<8x8xf32>
    %88 = vector.extract_strided_slice %0 {offsets = [0, 0], sizes = [1, 32], strides = [1, 1]} : vector<22x64xf32> to vector<1x32xf32>
    %89 = vector.extract_strided_slice %88 {offsets = [0, 16], sizes = [1, 8], strides = [1, 1]} : vector<1x32xf32> to vector<1x8xf32>
    %90 = vector.broadcast %89 : vector<1x8xf32> to vector<8x8xf32>
    %91 = arith.addf %87, %90 : vector<8x8xf32>
    %cst_46 = arith.constant dense<0.000000e+00> : vector<8x8xf32>
    %92 = tpu.matmul %3, %82, %cst_46 {dimension_numbers = #tpu.dot_dimension_numbers<[1], [1], [0], [0], [0, 0, 1, 0], [], []>} : vector<8x32xf32>, vector<8x32xf32>, vector<8x8xf32> -> vector<8x8xf32>
    %93 = vector.extract_strided_slice %0 {offsets = [1, 0], sizes = [1, 32], strides = [1, 1]} : vector<22x64xf32> to vector<1x32xf32>
    %94 = vector.extract_strided_slice %93 {offsets = [0, 16], sizes = [1, 8], strides = [1, 1]} : vector<1x32xf32> to vector<1x8xf32>
    %95 = vector.broadcast %94 : vector<1x8xf32> to vector<8x8xf32>
    %96 = arith.addf %92, %95 : vector<8x8xf32>
    %cst_47 = arith.constant dense<0.000000e+00> : vector<8x8xf32>
    %97 = tpu.matmul %3, %84, %cst_47 {dimension_numbers = #tpu.dot_dimension_numbers<[1], [1], [0], [0], [0, 0, 1, 0], [], []>} : vector<8x32xf32>, vector<8x32xf32>, vector<8x8xf32> -> vector<8x8xf32>
    %98 = vector.extract_strided_slice %0 {offsets = [2, 0], sizes = [1, 32], strides = [1, 1]} : vector<22x64xf32> to vector<1x32xf32>
    %99 = vector.extract_strided_slice %98 {offsets = [0, 16], sizes = [1, 8], strides = [1, 1]} : vector<1x32xf32> to vector<1x8xf32>
    %100 = vector.broadcast %99 : vector<1x8xf32> to vector<8x8xf32>
    %101 = arith.addf %97, %100 : vector<8x8xf32>
    %cst_48 = arith.constant dense<0.000000e+00> : vector<8x8xf32>
    %102 = tpu.matmul %91, %96, %cst_48 {dimension_numbers = #tpu.dot_dimension_numbers<[1], [1], [0], [0], [0, 0, 1, 0], [], []>} : vector<8x8xf32>, vector<8x8xf32>, vector<8x8xf32> -> vector<8x8xf32>
    %cst_49 = arith.constant dense<0xFF800000> : vector<8xf32>
    %103 = vector.multi_reduction <maximumf>, %102, %cst_49 [1] : vector<8x8xf32> to vector<8xf32>
    %104 = vector.shape_cast %103 : vector<8xf32> to vector<8x1xf32>
    %105 = vector.broadcast %104 : vector<8x1xf32> to vector<8x8xf32>
    %106 = arith.subf %102, %105 : vector<8x8xf32>
    %107 = math.exp %106 : vector<8x8xf32>
    %cst_50 = arith.constant dense<0.000000e+00> : vector<8xf32>
    %108 = vector.multi_reduction <add>, %107, %cst_50 [1] : vector<8x8xf32> to vector<8xf32>
    %109 = vector.shape_cast %108 : vector<8xf32> to vector<8x1xf32>
    %cst_51 = arith.constant dense<0.000000e+00> : vector<8x8xf32>
    %110 = tpu.matmul %107, %101, %cst_51 {dimension_numbers = #tpu.dot_dimension_numbers<[1], [0], [0], [1], [0, 0, 1, 1], [], []>} : vector<8x8xf32>, vector<8x8xf32>, vector<8x8xf32> -> vector<8x8xf32>
    %111 = tpu.reciprocal %109 {approx = true} : vector<8x1xf32> -> vector<8x1xf32>
    %112 = vector.broadcast %111 : vector<8x1xf32> to vector<8x8xf32>
    %113 = arith.mulf %110, %112 : vector<8x8xf32>
    %cst_52 = arith.constant dense<0.000000e+00> : vector<8x32xf32>
    %114 = tpu.matmul %113, %86, %cst_52 {dimension_numbers = #tpu.dot_dimension_numbers<[1], [0], [0], [1], [0, 0, 1, 1], [], []>} : vector<8x8xf32>, vector<8x32xf32>, vector<8x32xf32> -> vector<8x32xf32>
    %115 = arith.addf %78, %114 : vector<8x32xf32>
    %c3 = arith.constant 3 : index
    %c0_53 = arith.constant 0 : index
    %c0_54 = arith.constant 0 : index
    %116 = vector.load %arg1[%c3, %c0_53, %c0_54] : memref<32x8x32xf32, #tpu.memory_space<vmem>>, vector<1x8x32xf32>
    %117 = vector.shape_cast %116 : vector<1x8x32xf32> to vector<8x32xf32>
    %c7 = arith.constant 7 : index
    %c0_55 = arith.constant 0 : index
    %c0_56 = arith.constant 0 : index
    %118 = vector.load %arg1[%c7, %c0_55, %c0_56] : memref<32x8x32xf32, #tpu.memory_space<vmem>>, vector<1x8x32xf32>
    %119 = vector.shape_cast %118 : vector<1x8x32xf32> to vector<8x32xf32>
    %c11 = arith.constant 11 : index
    %c0_57 = arith.constant 0 : index
    %c0_58 = arith.constant 0 : index
    %120 = vector.load %arg1[%c11, %c0_57, %c0_58] : memref<32x8x32xf32, #tpu.memory_space<vmem>>, vector<1x8x32xf32>
    %121 = vector.shape_cast %120 : vector<1x8x32xf32> to vector<8x32xf32>
    %c15 = arith.constant 15 : index
    %c0_59 = arith.constant 0 : index
    %c0_60 = arith.constant 0 : index
    %122 = vector.load %arg1[%c15, %c0_59, %c0_60] : memref<32x8x32xf32, #tpu.memory_space<vmem>>, vector<1x8x32xf32>
    %123 = vector.shape_cast %122 : vector<1x8x32xf32> to vector<8x32xf32>
    %cst_61 = arith.constant dense<0.000000e+00> : vector<8x8xf32>
    %124 = tpu.matmul %3, %117, %cst_61 {dimension_numbers = #tpu.dot_dimension_numbers<[1], [1], [0], [0], [0, 0, 1, 0], [], []>} : vector<8x32xf32>, vector<8x32xf32>, vector<8x8xf32> -> vector<8x8xf32>
    %125 = vector.extract_strided_slice %0 {offsets = [0, 0], sizes = [1, 32], strides = [1, 1]} : vector<22x64xf32> to vector<1x32xf32>
    %126 = vector.extract_strided_slice %125 {offsets = [0, 24], sizes = [1, 8], strides = [1, 1]} : vector<1x32xf32> to vector<1x8xf32>
    %127 = vector.broadcast %126 : vector<1x8xf32> to vector<8x8xf32>
    %128 = arith.addf %124, %127 : vector<8x8xf32>
    %cst_62 = arith.constant dense<0.000000e+00> : vector<8x8xf32>
    %129 = tpu.matmul %3, %119, %cst_62 {dimension_numbers = #tpu.dot_dimension_numbers<[1], [1], [0], [0], [0, 0, 1, 0], [], []>} : vector<8x32xf32>, vector<8x32xf32>, vector<8x8xf32> -> vector<8x8xf32>
    %130 = vector.extract_strided_slice %0 {offsets = [1, 0], sizes = [1, 32], strides = [1, 1]} : vector<22x64xf32> to vector<1x32xf32>
    %131 = vector.extract_strided_slice %130 {offsets = [0, 24], sizes = [1, 8], strides = [1, 1]} : vector<1x32xf32> to vector<1x8xf32>
    %132 = vector.broadcast %131 : vector<1x8xf32> to vector<8x8xf32>
    %133 = arith.addf %129, %132 : vector<8x8xf32>
    %cst_63 = arith.constant dense<0.000000e+00> : vector<8x8xf32>
    %134 = tpu.matmul %3, %121, %cst_63 {dimension_numbers = #tpu.dot_dimension_numbers<[1], [1], [0], [0], [0, 0, 1, 0], [], []>} : vector<8x32xf32>, vector<8x32xf32>, vector<8x8xf32> -> vector<8x8xf32>
    %135 = vector.extract_strided_slice %0 {offsets = [2, 0], sizes = [1, 32], strides = [1, 1]} : vector<22x64xf32> to vector<1x32xf32>
    %136 = vector.extract_strided_slice %135 {offsets = [0, 24], sizes = [1, 8], strides = [1, 1]} : vector<1x32xf32> to vector<1x8xf32>
    %137 = vector.broadcast %136 : vector<1x8xf32> to vector<8x8xf32>
    %138 = arith.addf %134, %137 : vector<8x8xf32>
    %cst_64 = arith.constant dense<0.000000e+00> : vector<8x8xf32>
    %139 = tpu.matmul %128, %133, %cst_64 {dimension_numbers = #tpu.dot_dimension_numbers<[1], [1], [0], [0], [0, 0, 1, 0], [], []>} : vector<8x8xf32>, vector<8x8xf32>, vector<8x8xf32> -> vector<8x8xf32>
    %cst_65 = arith.constant dense<0xFF800000> : vector<8xf32>
    %140 = vector.multi_reduction <maximumf>, %139, %cst_65 [1] : vector<8x8xf32> to vector<8xf32>
    %141 = vector.shape_cast %140 : vector<8xf32> to vector<8x1xf32>
    %142 = vector.broadcast %141 : vector<8x1xf32> to vector<8x8xf32>
    %143 = arith.subf %139, %142 : vector<8x8xf32>
    %144 = math.exp %143 : vector<8x8xf32>
    %cst_66 = arith.constant dense<0.000000e+00> : vector<8xf32>
    %145 = vector.multi_reduction <add>, %144, %cst_66 [1] : vector<8x8xf32> to vector<8xf32>
    %146 = vector.shape_cast %145 : vector<8xf32> to vector<8x1xf32>
    %cst_67 = arith.constant dense<0.000000e+00> : vector<8x8xf32>
    %147 = tpu.matmul %144, %138, %cst_67 {dimension_numbers = #tpu.dot_dimension_numbers<[1], [0], [0], [1], [0, 0, 1, 1], [], []>} : vector<8x8xf32>, vector<8x8xf32>, vector<8x8xf32> -> vector<8x8xf32>
    %148 = tpu.reciprocal %146 {approx = true} : vector<8x1xf32> -> vector<8x1xf32>
    %149 = vector.broadcast %148 : vector<8x1xf32> to vector<8x8xf32>
    %150 = arith.mulf %147, %149 : vector<8x8xf32>
    %cst_68 = arith.constant dense<0.000000e+00> : vector<8x32xf32>
    %151 = tpu.matmul %150, %123, %cst_68 {dimension_numbers = #tpu.dot_dimension_numbers<[1], [0], [0], [1], [0, 0, 1, 1], [], []>} : vector<8x8xf32>, vector<8x32xf32>, vector<8x32xf32> -> vector<8x32xf32>
    %152 = arith.addf %115, %151 : vector<8x32xf32>
    %153 = vector.extract_strided_slice %0 {offsets = [3, 0], sizes = [1, 32], strides = [1, 1]} : vector<22x64xf32> to vector<1x32xf32>
    %154 = vector.broadcast %153 : vector<1x32xf32> to vector<8x32xf32>
    %155 = arith.addf %152, %154 : vector<8x32xf32>
    %156 = arith.addf %3, %155 : vector<8x32xf32>
    %157 = vector.extract_strided_slice %0 {offsets = [6, 0], sizes = [1, 32], strides = [1, 1]} : vector<22x64xf32> to vector<1x32xf32>
    %158 = vector.extract_strided_slice %0 {offsets = [7, 0], sizes = [1, 32], strides = [1, 1]} : vector<22x64xf32> to vector<1x32xf32>
    %cst_69 = arith.constant dense<0.000000e+00> : vector<8xf32>
    %159 = vector.multi_reduction <add>, %156, %cst_69 [1] : vector<8x32xf32> to vector<8xf32>
    %160 = vector.shape_cast %159 : vector<8xf32> to vector<8x1xf32>
    %cst_70 = arith.constant 3.200000e+01 : f32
    %161 = vector.broadcast %cst_70 : f32 to vector<8x1xf32>
    %162 = arith.divf %160, %161 : vector<8x1xf32>
    %163 = vector.broadcast %162 : vector<8x1xf32> to vector<8x32xf32>
    %164 = arith.subf %156, %163 : vector<8x32xf32>
    %165 = arith.mulf %164, %164 : vector<8x32xf32>
    %cst_71 = arith.constant dense<0.000000e+00> : vector<8xf32>
    %166 = vector.multi_reduction <add>, %165, %cst_71 [1] : vector<8x32xf32> to vector<8xf32>
    %167 = vector.shape_cast %166 : vector<8xf32> to vector<8x1xf32>
    %cst_72 = arith.constant 3.200000e+01 : f32
    %168 = vector.broadcast %cst_72 : f32 to vector<8x1xf32>
    %169 = arith.divf %167, %168 : vector<8x1xf32>
    %170 = vector.broadcast %162 : vector<8x1xf32> to vector<8x32xf32>
    %171 = arith.subf %156, %170 : vector<8x32xf32>
    %cst_73 = arith.constant 9.99999974E-6 : f32
    %172 = vector.broadcast %cst_73 : f32 to vector<8x1xf32>
    %173 = arith.addf %169, %172 : vector<8x1xf32>
    %174 = math.rsqrt %173 : vector<8x1xf32>
    %175 = vector.broadcast %174 : vector<8x1xf32> to vector<8x32xf32>
    %176 = arith.mulf %171, %175 : vector<8x32xf32>
    %177 = vector.broadcast %157 : vector<1x32xf32> to vector<8x32xf32>
    %178 = arith.mulf %176, %177 : vector<8x32xf32>
    %179 = vector.broadcast %158 : vector<1x32xf32> to vector<8x32xf32>
    %180 = arith.addf %178, %179 : vector<8x32xf32>
    %c0_74 = arith.constant 0 : index
    %c0_75 = arith.constant 0 : index
    %c0_76 = arith.constant 0 : index
    %181 = vector.load %arg2[%c0_74, %c0_75, %c0_76] : memref<4x32x64xf32, #tpu.memory_space<vmem>>, vector<1x32x64xf32>
    %182 = vector.shape_cast %181 : vector<1x32x64xf32> to vector<32x64xf32>
    %c1_77 = arith.constant 1 : index
    %c0_78 = arith.constant 0 : index
    %c0_79 = arith.constant 0 : index
    %183 = vector.load %arg2[%c1_77, %c0_78, %c0_79] : memref<4x32x64xf32, #tpu.memory_space<vmem>>, vector<1x32x64xf32>
    %184 = vector.shape_cast %183 : vector<1x32x64xf32> to vector<32x64xf32>
    %cst_80 = arith.constant dense<0.000000e+00> : vector<8x64xf32>
    %185 = tpu.matmul %180, %182, %cst_80 {dimension_numbers = #tpu.dot_dimension_numbers<[1], [0], [0], [1], [0, 0, 1, 1], [], []>} : vector<8x32xf32>, vector<32x64xf32>, vector<8x64xf32> -> vector<8x64xf32>
    %186 = vector.extract_strided_slice %0 {offsets = [4, 0], sizes = [1, 64], strides = [1, 1]} : vector<22x64xf32> to vector<1x64xf32>
    %187 = vector.broadcast %186 : vector<1x64xf32> to vector<8x64xf32>
    %188 = arith.addf %185, %187 : vector<8x64xf32>
    %cst_81 = arith.constant 0.000000e+00 : f32
    %189 = vector.broadcast %cst_81 : f32 to vector<8x64xf32>
    %190 = arith.maximumf %188, %189 : vector<8x64xf32>
    %cst_82 = arith.constant dense<0.000000e+00> : vector<8x32xf32>
    %191 = tpu.matmul %190, %184, %cst_82 {dimension_numbers = #tpu.dot_dimension_numbers<[1], [1], [0], [0], [0, 0, 1, 0], [], []>} : vector<8x64xf32>, vector<32x64xf32>, vector<8x32xf32> -> vector<8x32xf32>
    %192 = vector.extract_strided_slice %0 {offsets = [5, 0], sizes = [1, 32], strides = [1, 1]} : vector<22x64xf32> to vector<1x32xf32>
    %193 = vector.broadcast %192 : vector<1x32xf32> to vector<8x32xf32>
    %194 = arith.addf %191, %193 : vector<8x32xf32>
    %195 = arith.addf %180, %194 : vector<8x32xf32>
    %196 = vector.extract_strided_slice %0 {offsets = [8, 0], sizes = [1, 32], strides = [1, 1]} : vector<22x64xf32> to vector<1x32xf32>
    %197 = vector.extract_strided_slice %0 {offsets = [9, 0], sizes = [1, 32], strides = [1, 1]} : vector<22x64xf32> to vector<1x32xf32>
    %cst_83 = arith.constant dense<0.000000e+00> : vector<8xf32>
    %198 = vector.multi_reduction <add>, %195, %cst_83 [1] : vector<8x32xf32> to vector<8xf32>
    %199 = vector.shape_cast %198 : vector<8xf32> to vector<8x1xf32>
    %cst_84 = arith.constant 3.200000e+01 : f32
    %200 = vector.broadcast %cst_84 : f32 to vector<8x1xf32>
    %201 = arith.divf %199, %200 : vector<8x1xf32>
    %202 = vector.broadcast %201 : vector<8x1xf32> to vector<8x32xf32>
    %203 = arith.subf %195, %202 : vector<8x32xf32>
    %204 = arith.mulf %203, %203 : vector<8x32xf32>
    %cst_85 = arith.constant dense<0.000000e+00> : vector<8xf32>
    %205 = vector.multi_reduction <add>, %204, %cst_85 [1] : vector<8x32xf32> to vector<8xf32>
    %206 = vector.shape_cast %205 : vector<8xf32> to vector<8x1xf32>
    %cst_86 = arith.constant 3.200000e+01 : f32
    %207 = vector.broadcast %cst_86 : f32 to vector<8x1xf32>
    %208 = arith.divf %206, %207 : vector<8x1xf32>
    %209 = vector.broadcast %201 : vector<8x1xf32> to vector<8x32xf32>
    %210 = arith.subf %195, %209 : vector<8x32xf32>
    %cst_87 = arith.constant 9.99999974E-6 : f32
    %211 = vector.broadcast %cst_87 : f32 to vector<8x1xf32>
    %212 = arith.addf %208, %211 : vector<8x1xf32>
    %213 = math.rsqrt %212 : vector<8x1xf32>
    %214 = vector.broadcast %213 : vector<8x1xf32> to vector<8x32xf32>
    %215 = arith.mulf %210, %214 : vector<8x32xf32>
    %216 = vector.broadcast %196 : vector<1x32xf32> to vector<8x32xf32>
    %217 = arith.mulf %215, %216 : vector<8x32xf32>
    %218 = vector.broadcast %197 : vector<1x32xf32> to vector<8x32xf32>
    %219 = arith.addf %217, %218 : vector<8x32xf32>
    %cst_88 = arith.constant 0.000000e+00 : f32
    %220 = vector.broadcast %cst_88 : f32 to vector<8x32xf32>
    %cst_89 = arith.constant 0.000000e+00 : f32
    %221 = vector.broadcast %cst_89 : f32 to vector<8x8xf32>
    %c16 = arith.constant 16 : index
    %c0_90 = arith.constant 0 : index
    %c0_91 = arith.constant 0 : index
    %222 = vector.load %arg1[%c16, %c0_90, %c0_91] : memref<32x8x32xf32, #tpu.memory_space<vmem>>, vector<1x8x32xf32>
    %223 = vector.shape_cast %222 : vector<1x8x32xf32> to vector<8x32xf32>
    %c20 = arith.constant 20 : index
    %c0_92 = arith.constant 0 : index
    %c0_93 = arith.constant 0 : index
    %224 = vector.load %arg1[%c20, %c0_92, %c0_93] : memref<32x8x32xf32, #tpu.memory_space<vmem>>, vector<1x8x32xf32>
    %225 = vector.shape_cast %224 : vector<1x8x32xf32> to vector<8x32xf32>
    %c24 = arith.constant 24 : index
    %c0_94 = arith.constant 0 : index
    %c0_95 = arith.constant 0 : index
    %226 = vector.load %arg1[%c24, %c0_94, %c0_95] : memref<32x8x32xf32, #tpu.memory_space<vmem>>, vector<1x8x32xf32>
    %227 = vector.shape_cast %226 : vector<1x8x32xf32> to vector<8x32xf32>
    %c28 = arith.constant 28 : index
    %c0_96 = arith.constant 0 : index
    %c0_97 = arith.constant 0 : index
    %228 = vector.load %arg1[%c28, %c0_96, %c0_97] : memref<32x8x32xf32, #tpu.memory_space<vmem>>, vector<1x8x32xf32>
    %229 = vector.shape_cast %228 : vector<1x8x32xf32> to vector<8x32xf32>
    %cst_98 = arith.constant dense<0.000000e+00> : vector<8x8xf32>
    %230 = tpu.matmul %219, %223, %cst_98 {dimension_numbers = #tpu.dot_dimension_numbers<[1], [1], [0], [0], [0, 0, 1, 0], [], []>} : vector<8x32xf32>, vector<8x32xf32>, vector<8x8xf32> -> vector<8x8xf32>
    %231 = vector.extract_strided_slice %0 {offsets = [10, 0], sizes = [1, 32], strides = [1, 1]} : vector<22x64xf32> to vector<1x32xf32>
    %232 = vector.extract_strided_slice %231 {offsets = [0, 0], sizes = [1, 8], strides = [1, 1]} : vector<1x32xf32> to vector<1x8xf32>
    %233 = vector.broadcast %232 : vector<1x8xf32> to vector<8x8xf32>
    %234 = arith.addf %230, %233 : vector<8x8xf32>
    %cst_99 = arith.constant dense<0.000000e+00> : vector<8x8xf32>
    %235 = tpu.matmul %219, %225, %cst_99 {dimension_numbers = #tpu.dot_dimension_numbers<[1], [1], [0], [0], [0, 0, 1, 0], [], []>} : vector<8x32xf32>, vector<8x32xf32>, vector<8x8xf32> -> vector<8x8xf32>
    %236 = vector.extract_strided_slice %0 {offsets = [11, 0], sizes = [1, 32], strides = [1, 1]} : vector<22x64xf32> to vector<1x32xf32>
    %237 = vector.extract_strided_slice %236 {offsets = [0, 0], sizes = [1, 8], strides = [1, 1]} : vector<1x32xf32> to vector<1x8xf32>
    %238 = vector.broadcast %237 : vector<1x8xf32> to vector<8x8xf32>
    %239 = arith.addf %235, %238 : vector<8x8xf32>
    %cst_100 = arith.constant dense<0.000000e+00> : vector<8x8xf32>
    %240 = tpu.matmul %219, %227, %cst_100 {dimension_numbers = #tpu.dot_dimension_numbers<[1], [1], [0], [0], [0, 0, 1, 0], [], []>} : vector<8x32xf32>, vector<8x32xf32>, vector<8x8xf32> -> vector<8x8xf32>
    %241 = vector.extract_strided_slice %0 {offsets = [12, 0], sizes = [1, 32], strides = [1, 1]} : vector<22x64xf32> to vector<1x32xf32>
    %242 = vector.extract_strided_slice %241 {offsets = [0, 0], sizes = [1, 8], strides = [1, 1]} : vector<1x32xf32> to vector<1x8xf32>
    %243 = vector.broadcast %242 : vector<1x8xf32> to vector<8x8xf32>
    %244 = arith.addf %240, %243 : vector<8x8xf32>
    %cst_101 = arith.constant dense<0.000000e+00> : vector<8x8xf32>
    %245 = tpu.matmul %234, %239, %cst_101 {dimension_numbers = #tpu.dot_dimension_numbers<[1], [1], [0], [0], [0, 0, 1, 0], [], []>} : vector<8x8xf32>, vector<8x8xf32>, vector<8x8xf32> -> vector<8x8xf32>
    %cst_102 = arith.constant dense<0xFF800000> : vector<8xf32>
    %246 = vector.multi_reduction <maximumf>, %245, %cst_102 [1] : vector<8x8xf32> to vector<8xf32>
    %247 = vector.shape_cast %246 : vector<8xf32> to vector<8x1xf32>
    %248 = vector.broadcast %247 : vector<8x1xf32> to vector<8x8xf32>
    %249 = arith.subf %245, %248 : vector<8x8xf32>
    %250 = math.exp %249 : vector<8x8xf32>
    %cst_103 = arith.constant dense<0.000000e+00> : vector<8xf32>
    %251 = vector.multi_reduction <add>, %250, %cst_103 [1] : vector<8x8xf32> to vector<8xf32>
    %252 = vector.shape_cast %251 : vector<8xf32> to vector<8x1xf32>
    %253 = vector.broadcast %252 : vector<8x1xf32> to vector<8x8xf32>
    %254 = arith.divf %250, %253 : vector<8x8xf32>
    %255 = arith.addf %221, %254 : vector<8x8xf32>
    %cst_104 = arith.constant dense<0.000000e+00> : vector<8x8xf32>
    %256 = tpu.matmul %254, %244, %cst_104 {dimension_numbers = #tpu.dot_dimension_numbers<[1], [0], [0], [1], [0, 0, 1, 1], [], []>} : vector<8x8xf32>, vector<8x8xf32>, vector<8x8xf32> -> vector<8x8xf32>
    %cst_105 = arith.constant dense<0.000000e+00> : vector<8x32xf32>
    %257 = tpu.matmul %256, %229, %cst_105 {dimension_numbers = #tpu.dot_dimension_numbers<[1], [0], [0], [1], [0, 0, 1, 1], [], []>} : vector<8x8xf32>, vector<8x32xf32>, vector<8x32xf32> -> vector<8x32xf32>
    %258 = arith.addf %220, %257 : vector<8x32xf32>
    %c17 = arith.constant 17 : index
    %c0_106 = arith.constant 0 : index
    %c0_107 = arith.constant 0 : index
    %259 = vector.load %arg1[%c17, %c0_106, %c0_107] : memref<32x8x32xf32, #tpu.memory_space<vmem>>, vector<1x8x32xf32>
    %260 = vector.shape_cast %259 : vector<1x8x32xf32> to vector<8x32xf32>
    %c21 = arith.constant 21 : index
    %c0_108 = arith.constant 0 : index
    %c0_109 = arith.constant 0 : index
    %261 = vector.load %arg1[%c21, %c0_108, %c0_109] : memref<32x8x32xf32, #tpu.memory_space<vmem>>, vector<1x8x32xf32>
    %262 = vector.shape_cast %261 : vector<1x8x32xf32> to vector<8x32xf32>
    %c25 = arith.constant 25 : index
    %c0_110 = arith.constant 0 : index
    %c0_111 = arith.constant 0 : index
    %263 = vector.load %arg1[%c25, %c0_110, %c0_111] : memref<32x8x32xf32, #tpu.memory_space<vmem>>, vector<1x8x32xf32>
    %264 = vector.shape_cast %263 : vector<1x8x32xf32> to vector<8x32xf32>
    %c29 = arith.constant 29 : index
    %c0_112 = arith.constant 0 : index
    %c0_113 = arith.constant 0 : index
    %265 = vector.load %arg1[%c29, %c0_112, %c0_113] : memref<32x8x32xf32, #tpu.memory_space<vmem>>, vector<1x8x32xf32>
    %266 = vector.shape_cast %265 : vector<1x8x32xf32> to vector<8x32xf32>
    %cst_114 = arith.constant dense<0.000000e+00> : vector<8x8xf32>
    %267 = tpu.matmul %219, %260, %cst_114 {dimension_numbers = #tpu.dot_dimension_numbers<[1], [1], [0], [0], [0, 0, 1, 0], [], []>} : vector<8x32xf32>, vector<8x32xf32>, vector<8x8xf32> -> vector<8x8xf32>
    %268 = vector.extract_strided_slice %0 {offsets = [10, 0], sizes = [1, 32], strides = [1, 1]} : vector<22x64xf32> to vector<1x32xf32>
    %269 = vector.extract_strided_slice %268 {offsets = [0, 8], sizes = [1, 8], strides = [1, 1]} : vector<1x32xf32> to vector<1x8xf32>
    %270 = vector.broadcast %269 : vector<1x8xf32> to vector<8x8xf32>
    %271 = arith.addf %267, %270 : vector<8x8xf32>
    %cst_115 = arith.constant dense<0.000000e+00> : vector<8x8xf32>
    %272 = tpu.matmul %219, %262, %cst_115 {dimension_numbers = #tpu.dot_dimension_numbers<[1], [1], [0], [0], [0, 0, 1, 0], [], []>} : vector<8x32xf32>, vector<8x32xf32>, vector<8x8xf32> -> vector<8x8xf32>
    %273 = vector.extract_strided_slice %0 {offsets = [11, 0], sizes = [1, 32], strides = [1, 1]} : vector<22x64xf32> to vector<1x32xf32>
    %274 = vector.extract_strided_slice %273 {offsets = [0, 8], sizes = [1, 8], strides = [1, 1]} : vector<1x32xf32> to vector<1x8xf32>
    %275 = vector.broadcast %274 : vector<1x8xf32> to vector<8x8xf32>
    %276 = arith.addf %272, %275 : vector<8x8xf32>
    %cst_116 = arith.constant dense<0.000000e+00> : vector<8x8xf32>
    %277 = tpu.matmul %219, %264, %cst_116 {dimension_numbers = #tpu.dot_dimension_numbers<[1], [1], [0], [0], [0, 0, 1, 0], [], []>} : vector<8x32xf32>, vector<8x32xf32>, vector<8x8xf32> -> vector<8x8xf32>
    %278 = vector.extract_strided_slice %0 {offsets = [12, 0], sizes = [1, 32], strides = [1, 1]} : vector<22x64xf32> to vector<1x32xf32>
    %279 = vector.extract_strided_slice %278 {offsets = [0, 8], sizes = [1, 8], strides = [1, 1]} : vector<1x32xf32> to vector<1x8xf32>
    %280 = vector.broadcast %279 : vector<1x8xf32> to vector<8x8xf32>
    %281 = arith.addf %277, %280 : vector<8x8xf32>
    %cst_117 = arith.constant dense<0.000000e+00> : vector<8x8xf32>
    %282 = tpu.matmul %271, %276, %cst_117 {dimension_numbers = #tpu.dot_dimension_numbers<[1], [1], [0], [0], [0, 0, 1, 0], [], []>} : vector<8x8xf32>, vector<8x8xf32>, vector<8x8xf32> -> vector<8x8xf32>
    %cst_118 = arith.constant dense<0xFF800000> : vector<8xf32>
    %283 = vector.multi_reduction <maximumf>, %282, %cst_118 [1] : vector<8x8xf32> to vector<8xf32>
    %284 = vector.shape_cast %283 : vector<8xf32> to vector<8x1xf32>
    %285 = vector.broadcast %284 : vector<8x1xf32> to vector<8x8xf32>
    %286 = arith.subf %282, %285 : vector<8x8xf32>
    %287 = math.exp %286 : vector<8x8xf32>
    %cst_119 = arith.constant dense<0.000000e+00> : vector<8xf32>
    %288 = vector.multi_reduction <add>, %287, %cst_119 [1] : vector<8x8xf32> to vector<8xf32>
    %289 = vector.shape_cast %288 : vector<8xf32> to vector<8x1xf32>
    %290 = vector.broadcast %289 : vector<8x1xf32> to vector<8x8xf32>
    %291 = arith.divf %287, %290 : vector<8x8xf32>
    %292 = arith.addf %255, %291 : vector<8x8xf32>
    %cst_120 = arith.constant dense<0.000000e+00> : vector<8x8xf32>
    %293 = tpu.matmul %291, %281, %cst_120 {dimension_numbers = #tpu.dot_dimension_numbers<[1], [0], [0], [1], [0, 0, 1, 1], [], []>} : vector<8x8xf32>, vector<8x8xf32>, vector<8x8xf32> -> vector<8x8xf32>
    %cst_121 = arith.constant dense<0.000000e+00> : vector<8x32xf32>
    %294 = tpu.matmul %293, %266, %cst_121 {dimension_numbers = #tpu.dot_dimension_numbers<[1], [0], [0], [1], [0, 0, 1, 1], [], []>} : vector<8x8xf32>, vector<8x32xf32>, vector<8x32xf32> -> vector<8x32xf32>
    %295 = arith.addf %258, %294 : vector<8x32xf32>
    %c18 = arith.constant 18 : index
    %c0_122 = arith.constant 0 : index
    %c0_123 = arith.constant 0 : index
    %296 = vector.load %arg1[%c18, %c0_122, %c0_123] : memref<32x8x32xf32, #tpu.memory_space<vmem>>, vector<1x8x32xf32>
    %297 = vector.shape_cast %296 : vector<1x8x32xf32> to vector<8x32xf32>
    %c22 = arith.constant 22 : index
    %c0_124 = arith.constant 0 : index
    %c0_125 = arith.constant 0 : index
    %298 = vector.load %arg1[%c22, %c0_124, %c0_125] : memref<32x8x32xf32, #tpu.memory_space<vmem>>, vector<1x8x32xf32>
    %299 = vector.shape_cast %298 : vector<1x8x32xf32> to vector<8x32xf32>
    %c26 = arith.constant 26 : index
    %c0_126 = arith.constant 0 : index
    %c0_127 = arith.constant 0 : index
    %300 = vector.load %arg1[%c26, %c0_126, %c0_127] : memref<32x8x32xf32, #tpu.memory_space<vmem>>, vector<1x8x32xf32>
    %301 = vector.shape_cast %300 : vector<1x8x32xf32> to vector<8x32xf32>
    %c30 = arith.constant 30 : index
    %c0_128 = arith.constant 0 : index
    %c0_129 = arith.constant 0 : index
    %302 = vector.load %arg1[%c30, %c0_128, %c0_129] : memref<32x8x32xf32, #tpu.memory_space<vmem>>, vector<1x8x32xf32>
    %303 = vector.shape_cast %302 : vector<1x8x32xf32> to vector<8x32xf32>
    %cst_130 = arith.constant dense<0.000000e+00> : vector<8x8xf32>
    %304 = tpu.matmul %219, %297, %cst_130 {dimension_numbers = #tpu.dot_dimension_numbers<[1], [1], [0], [0], [0, 0, 1, 0], [], []>} : vector<8x32xf32>, vector<8x32xf32>, vector<8x8xf32> -> vector<8x8xf32>
    %305 = vector.extract_strided_slice %0 {offsets = [10, 0], sizes = [1, 32], strides = [1, 1]} : vector<22x64xf32> to vector<1x32xf32>
    %306 = vector.extract_strided_slice %305 {offsets = [0, 16], sizes = [1, 8], strides = [1, 1]} : vector<1x32xf32> to vector<1x8xf32>
    %307 = vector.broadcast %306 : vector<1x8xf32> to vector<8x8xf32>
    %308 = arith.addf %304, %307 : vector<8x8xf32>
    %cst_131 = arith.constant dense<0.000000e+00> : vector<8x8xf32>
    %309 = tpu.matmul %219, %299, %cst_131 {dimension_numbers = #tpu.dot_dimension_numbers<[1], [1], [0], [0], [0, 0, 1, 0], [], []>} : vector<8x32xf32>, vector<8x32xf32>, vector<8x8xf32> -> vector<8x8xf32>
    %310 = vector.extract_strided_slice %0 {offsets = [11, 0], sizes = [1, 32], strides = [1, 1]} : vector<22x64xf32> to vector<1x32xf32>
    %311 = vector.extract_strided_slice %310 {offsets = [0, 16], sizes = [1, 8], strides = [1, 1]} : vector<1x32xf32> to vector<1x8xf32>
    %312 = vector.broadcast %311 : vector<1x8xf32> to vector<8x8xf32>
    %313 = arith.addf %309, %312 : vector<8x8xf32>
    %cst_132 = arith.constant dense<0.000000e+00> : vector<8x8xf32>
    %314 = tpu.matmul %219, %301, %cst_132 {dimension_numbers = #tpu.dot_dimension_numbers<[1], [1], [0], [0], [0, 0, 1, 0], [], []>} : vector<8x32xf32>, vector<8x32xf32>, vector<8x8xf32> -> vector<8x8xf32>
    %315 = vector.extract_strided_slice %0 {offsets = [12, 0], sizes = [1, 32], strides = [1, 1]} : vector<22x64xf32> to vector<1x32xf32>
    %316 = vector.extract_strided_slice %315 {offsets = [0, 16], sizes = [1, 8], strides = [1, 1]} : vector<1x32xf32> to vector<1x8xf32>
    %317 = vector.broadcast %316 : vector<1x8xf32> to vector<8x8xf32>
    %318 = arith.addf %314, %317 : vector<8x8xf32>
    %cst_133 = arith.constant dense<0.000000e+00> : vector<8x8xf32>
    %319 = tpu.matmul %308, %313, %cst_133 {dimension_numbers = #tpu.dot_dimension_numbers<[1], [1], [0], [0], [0, 0, 1, 0], [], []>} : vector<8x8xf32>, vector<8x8xf32>, vector<8x8xf32> -> vector<8x8xf32>
    %cst_134 = arith.constant dense<0xFF800000> : vector<8xf32>
    %320 = vector.multi_reduction <maximumf>, %319, %cst_134 [1] : vector<8x8xf32> to vector<8xf32>
    %321 = vector.shape_cast %320 : vector<8xf32> to vector<8x1xf32>
    %322 = vector.broadcast %321 : vector<8x1xf32> to vector<8x8xf32>
    %323 = arith.subf %319, %322 : vector<8x8xf32>
    %324 = math.exp %323 : vector<8x8xf32>
    %cst_135 = arith.constant dense<0.000000e+00> : vector<8xf32>
    %325 = vector.multi_reduction <add>, %324, %cst_135 [1] : vector<8x8xf32> to vector<8xf32>
    %326 = vector.shape_cast %325 : vector<8xf32> to vector<8x1xf32>
    %327 = vector.broadcast %326 : vector<8x1xf32> to vector<8x8xf32>
    %328 = arith.divf %324, %327 : vector<8x8xf32>
    %329 = arith.addf %292, %328 : vector<8x8xf32>
    %cst_136 = arith.constant dense<0.000000e+00> : vector<8x8xf32>
    %330 = tpu.matmul %328, %318, %cst_136 {dimension_numbers = #tpu.dot_dimension_numbers<[1], [0], [0], [1], [0, 0, 1, 1], [], []>} : vector<8x8xf32>, vector<8x8xf32>, vector<8x8xf32> -> vector<8x8xf32>
    %cst_137 = arith.constant dense<0.000000e+00> : vector<8x32xf32>
    %331 = tpu.matmul %330, %303, %cst_137 {dimension_numbers = #tpu.dot_dimension_numbers<[1], [0], [0], [1], [0, 0, 1, 1], [], []>} : vector<8x8xf32>, vector<8x32xf32>, vector<8x32xf32> -> vector<8x32xf32>
    %332 = arith.addf %295, %331 : vector<8x32xf32>
    %c19 = arith.constant 19 : index
    %c0_138 = arith.constant 0 : index
    %c0_139 = arith.constant 0 : index
    %333 = vector.load %arg1[%c19, %c0_138, %c0_139] : memref<32x8x32xf32, #tpu.memory_space<vmem>>, vector<1x8x32xf32>
    %334 = vector.shape_cast %333 : vector<1x8x32xf32> to vector<8x32xf32>
    %c23 = arith.constant 23 : index
    %c0_140 = arith.constant 0 : index
    %c0_141 = arith.constant 0 : index
    %335 = vector.load %arg1[%c23, %c0_140, %c0_141] : memref<32x8x32xf32, #tpu.memory_space<vmem>>, vector<1x8x32xf32>
    %336 = vector.shape_cast %335 : vector<1x8x32xf32> to vector<8x32xf32>
    %c27 = arith.constant 27 : index
    %c0_142 = arith.constant 0 : index
    %c0_143 = arith.constant 0 : index
    %337 = vector.load %arg1[%c27, %c0_142, %c0_143] : memref<32x8x32xf32, #tpu.memory_space<vmem>>, vector<1x8x32xf32>
    %338 = vector.shape_cast %337 : vector<1x8x32xf32> to vector<8x32xf32>
    %c31 = arith.constant 31 : index
    %c0_144 = arith.constant 0 : index
    %c0_145 = arith.constant 0 : index
    %339 = vector.load %arg1[%c31, %c0_144, %c0_145] : memref<32x8x32xf32, #tpu.memory_space<vmem>>, vector<1x8x32xf32>
    %340 = vector.shape_cast %339 : vector<1x8x32xf32> to vector<8x32xf32>
    %cst_146 = arith.constant dense<0.000000e+00> : vector<8x8xf32>
    %341 = tpu.matmul %219, %334, %cst_146 {dimension_numbers = #tpu.dot_dimension_numbers<[1], [1], [0], [0], [0, 0, 1, 0], [], []>} : vector<8x32xf32>, vector<8x32xf32>, vector<8x8xf32> -> vector<8x8xf32>
    %342 = vector.extract_strided_slice %0 {offsets = [10, 0], sizes = [1, 32], strides = [1, 1]} : vector<22x64xf32> to vector<1x32xf32>
    %343 = vector.extract_strided_slice %342 {offsets = [0, 24], sizes = [1, 8], strides = [1, 1]} : vector<1x32xf32> to vector<1x8xf32>
    %344 = vector.broadcast %343 : vector<1x8xf32> to vector<8x8xf32>
    %345 = arith.addf %341, %344 : vector<8x8xf32>
    %cst_147 = arith.constant dense<0.000000e+00> : vector<8x8xf32>
    %346 = tpu.matmul %219, %336, %cst_147 {dimension_numbers = #tpu.dot_dimension_numbers<[1], [1], [0], [0], [0, 0, 1, 0], [], []>} : vector<8x32xf32>, vector<8x32xf32>, vector<8x8xf32> -> vector<8x8xf32>
    %347 = vector.extract_strided_slice %0 {offsets = [11, 0], sizes = [1, 32], strides = [1, 1]} : vector<22x64xf32> to vector<1x32xf32>
    %348 = vector.extract_strided_slice %347 {offsets = [0, 24], sizes = [1, 8], strides = [1, 1]} : vector<1x32xf32> to vector<1x8xf32>
    %349 = vector.broadcast %348 : vector<1x8xf32> to vector<8x8xf32>
    %350 = arith.addf %346, %349 : vector<8x8xf32>
    %cst_148 = arith.constant dense<0.000000e+00> : vector<8x8xf32>
    %351 = tpu.matmul %219, %338, %cst_148 {dimension_numbers = #tpu.dot_dimension_numbers<[1], [1], [0], [0], [0, 0, 1, 0], [], []>} : vector<8x32xf32>, vector<8x32xf32>, vector<8x8xf32> -> vector<8x8xf32>
    %352 = vector.extract_strided_slice %0 {offsets = [12, 0], sizes = [1, 32], strides = [1, 1]} : vector<22x64xf32> to vector<1x32xf32>
    %353 = vector.extract_strided_slice %352 {offsets = [0, 24], sizes = [1, 8], strides = [1, 1]} : vector<1x32xf32> to vector<1x8xf32>
    %354 = vector.broadcast %353 : vector<1x8xf32> to vector<8x8xf32>
    %355 = arith.addf %351, %354 : vector<8x8xf32>
    %cst_149 = arith.constant dense<0.000000e+00> : vector<8x8xf32>
    %356 = tpu.matmul %345, %350, %cst_149 {dimension_numbers = #tpu.dot_dimension_numbers<[1], [1], [0], [0], [0, 0, 1, 0], [], []>} : vector<8x8xf32>, vector<8x8xf32>, vector<8x8xf32> -> vector<8x8xf32>
    %cst_150 = arith.constant dense<0xFF800000> : vector<8xf32>
    %357 = vector.multi_reduction <maximumf>, %356, %cst_150 [1] : vector<8x8xf32> to vector<8xf32>
    %358 = vector.shape_cast %357 : vector<8xf32> to vector<8x1xf32>
    %359 = vector.broadcast %358 : vector<8x1xf32> to vector<8x8xf32>
    %360 = arith.subf %356, %359 : vector<8x8xf32>
    %361 = math.exp %360 : vector<8x8xf32>
    %cst_151 = arith.constant dense<0.000000e+00> : vector<8xf32>
    %362 = vector.multi_reduction <add>, %361, %cst_151 [1] : vector<8x8xf32> to vector<8xf32>
    %363 = vector.shape_cast %362 : vector<8xf32> to vector<8x1xf32>
    %364 = vector.broadcast %363 : vector<8x1xf32> to vector<8x8xf32>
    %365 = arith.divf %361, %364 : vector<8x8xf32>
    %366 = arith.addf %329, %365 : vector<8x8xf32>
    %cst_152 = arith.constant dense<0.000000e+00> : vector<8x8xf32>
    %367 = tpu.matmul %365, %355, %cst_152 {dimension_numbers = #tpu.dot_dimension_numbers<[1], [0], [0], [1], [0, 0, 1, 1], [], []>} : vector<8x8xf32>, vector<8x8xf32>, vector<8x8xf32> -> vector<8x8xf32>
    %cst_153 = arith.constant dense<0.000000e+00> : vector<8x32xf32>
    %368 = tpu.matmul %367, %340, %cst_153 {dimension_numbers = #tpu.dot_dimension_numbers<[1], [0], [0], [1], [0, 0, 1, 1], [], []>} : vector<8x8xf32>, vector<8x32xf32>, vector<8x32xf32> -> vector<8x32xf32>
    %369 = arith.addf %332, %368 : vector<8x32xf32>
    %370 = vector.extract_strided_slice %0 {offsets = [13, 0], sizes = [1, 32], strides = [1, 1]} : vector<22x64xf32> to vector<1x32xf32>
    %371 = vector.broadcast %370 : vector<1x32xf32> to vector<8x32xf32>
    %372 = arith.addf %369, %371 : vector<8x32xf32>
    %373 = arith.addf %219, %372 : vector<8x32xf32>
    %374 = vector.extract_strided_slice %0 {offsets = [16, 0], sizes = [1, 32], strides = [1, 1]} : vector<22x64xf32> to vector<1x32xf32>
    %375 = vector.extract_strided_slice %0 {offsets = [17, 0], sizes = [1, 32], strides = [1, 1]} : vector<22x64xf32> to vector<1x32xf32>
    %cst_154 = arith.constant dense<0.000000e+00> : vector<8xf32>
    %376 = vector.multi_reduction <add>, %373, %cst_154 [1] : vector<8x32xf32> to vector<8xf32>
    %377 = vector.shape_cast %376 : vector<8xf32> to vector<8x1xf32>
    %cst_155 = arith.constant 3.200000e+01 : f32
    %378 = vector.broadcast %cst_155 : f32 to vector<8x1xf32>
    %379 = arith.divf %377, %378 : vector<8x1xf32>
    %380 = vector.broadcast %379 : vector<8x1xf32> to vector<8x32xf32>
    %381 = arith.subf %373, %380 : vector<8x32xf32>
    %382 = arith.mulf %381, %381 : vector<8x32xf32>
    %cst_156 = arith.constant dense<0.000000e+00> : vector<8xf32>
    %383 = vector.multi_reduction <add>, %382, %cst_156 [1] : vector<8x32xf32> to vector<8xf32>
    %384 = vector.shape_cast %383 : vector<8xf32> to vector<8x1xf32>
    %cst_157 = arith.constant 3.200000e+01 : f32
    %385 = vector.broadcast %cst_157 : f32 to vector<8x1xf32>
    %386 = arith.divf %384, %385 : vector<8x1xf32>
    %387 = vector.broadcast %379 : vector<8x1xf32> to vector<8x32xf32>
    %388 = arith.subf %373, %387 : vector<8x32xf32>
    %cst_158 = arith.constant 9.99999974E-6 : f32
    %389 = vector.broadcast %cst_158 : f32 to vector<8x1xf32>
    %390 = arith.addf %386, %389 : vector<8x1xf32>
    %391 = math.rsqrt %390 : vector<8x1xf32>
    %392 = vector.broadcast %391 : vector<8x1xf32> to vector<8x32xf32>
    %393 = arith.mulf %388, %392 : vector<8x32xf32>
    %394 = vector.broadcast %374 : vector<1x32xf32> to vector<8x32xf32>
    %395 = arith.mulf %393, %394 : vector<8x32xf32>
    %396 = vector.broadcast %375 : vector<1x32xf32> to vector<8x32xf32>
    %397 = arith.addf %395, %396 : vector<8x32xf32>
    %c2_159 = arith.constant 2 : index
    %c0_160 = arith.constant 0 : index
    %c0_161 = arith.constant 0 : index
    %398 = vector.load %arg2[%c2_159, %c0_160, %c0_161] : memref<4x32x64xf32, #tpu.memory_space<vmem>>, vector<1x32x64xf32>
    %399 = vector.shape_cast %398 : vector<1x32x64xf32> to vector<32x64xf32>
    %c3_162 = arith.constant 3 : index
    %c0_163 = arith.constant 0 : index
    %c0_164 = arith.constant 0 : index
    %400 = vector.load %arg2[%c3_162, %c0_163, %c0_164] : memref<4x32x64xf32, #tpu.memory_space<vmem>>, vector<1x32x64xf32>
    %401 = vector.shape_cast %400 : vector<1x32x64xf32> to vector<32x64xf32>
    %cst_165 = arith.constant dense<0.000000e+00> : vector<8x64xf32>
    %402 = tpu.matmul %397, %399, %cst_165 {dimension_numbers = #tpu.dot_dimension_numbers<[1], [0], [0], [1], [0, 0, 1, 1], [], []>} : vector<8x32xf32>, vector<32x64xf32>, vector<8x64xf32> -> vector<8x64xf32>
    %403 = vector.extract_strided_slice %0 {offsets = [14, 0], sizes = [1, 64], strides = [1, 1]} : vector<22x64xf32> to vector<1x64xf32>
    %404 = vector.broadcast %403 : vector<1x64xf32> to vector<8x64xf32>
    %405 = arith.addf %402, %404 : vector<8x64xf32>
    %cst_166 = arith.constant 0.000000e+00 : f32
    %406 = vector.broadcast %cst_166 : f32 to vector<8x64xf32>
    %407 = arith.maximumf %405, %406 : vector<8x64xf32>
    %cst_167 = arith.constant dense<0.000000e+00> : vector<8x32xf32>
    %408 = tpu.matmul %407, %401, %cst_167 {dimension_numbers = #tpu.dot_dimension_numbers<[1], [1], [0], [0], [0, 0, 1, 0], [], []>} : vector<8x64xf32>, vector<32x64xf32>, vector<8x32xf32> -> vector<8x32xf32>
    %409 = vector.extract_strided_slice %0 {offsets = [15, 0], sizes = [1, 32], strides = [1, 1]} : vector<22x64xf32> to vector<1x32xf32>
    %410 = vector.broadcast %409 : vector<1x32xf32> to vector<8x32xf32>
    %411 = arith.addf %408, %410 : vector<8x32xf32>
    %412 = arith.addf %397, %411 : vector<8x32xf32>
    %413 = vector.extract_strided_slice %0 {offsets = [18, 0], sizes = [1, 32], strides = [1, 1]} : vector<22x64xf32> to vector<1x32xf32>
    %414 = vector.extract_strided_slice %0 {offsets = [19, 0], sizes = [1, 32], strides = [1, 1]} : vector<22x64xf32> to vector<1x32xf32>
    %cst_168 = arith.constant dense<0.000000e+00> : vector<8xf32>
    %415 = vector.multi_reduction <add>, %412, %cst_168 [1] : vector<8x32xf32> to vector<8xf32>
    %416 = vector.shape_cast %415 : vector<8xf32> to vector<8x1xf32>
    %cst_169 = arith.constant 3.200000e+01 : f32
    %417 = vector.broadcast %cst_169 : f32 to vector<8x1xf32>
    %418 = arith.divf %416, %417 : vector<8x1xf32>
    %419 = vector.broadcast %418 : vector<8x1xf32> to vector<8x32xf32>
    %420 = arith.subf %412, %419 : vector<8x32xf32>
    %421 = arith.mulf %420, %420 : vector<8x32xf32>
    %cst_170 = arith.constant dense<0.000000e+00> : vector<8xf32>
    %422 = vector.multi_reduction <add>, %421, %cst_170 [1] : vector<8x32xf32> to vector<8xf32>
    %423 = vector.shape_cast %422 : vector<8xf32> to vector<8x1xf32>
    %cst_171 = arith.constant 3.200000e+01 : f32
    %424 = vector.broadcast %cst_171 : f32 to vector<8x1xf32>
    %425 = arith.divf %423, %424 : vector<8x1xf32>
    %426 = vector.broadcast %418 : vector<8x1xf32> to vector<8x32xf32>
    %427 = arith.subf %412, %426 : vector<8x32xf32>
    %cst_172 = arith.constant 9.99999974E-6 : f32
    %428 = vector.broadcast %cst_172 : f32 to vector<8x1xf32>
    %429 = arith.addf %425, %428 : vector<8x1xf32>
    %430 = math.rsqrt %429 : vector<8x1xf32>
    %431 = vector.broadcast %430 : vector<8x1xf32> to vector<8x32xf32>
    %432 = arith.mulf %427, %431 : vector<8x32xf32>
    %433 = vector.broadcast %413 : vector<1x32xf32> to vector<8x32xf32>
    %434 = arith.mulf %432, %433 : vector<8x32xf32>
    %435 = vector.broadcast %414 : vector<1x32xf32> to vector<8x32xf32>
    %436 = arith.addf %434, %435 : vector<8x32xf32>
    %cst_173 = arith.constant 2.500000e-01 : f32
    %437 = vector.broadcast %cst_173 : f32 to vector<8x8xf32>
    %438 = arith.mulf %366, %437 : vector<8x8xf32>
    %439 = vector.extract_strided_slice %0 {offsets = [20, 0], sizes = [1, 32], strides = [1, 1]} : vector<22x64xf32> to vector<1x32xf32>
    %440 = vector.extract_strided_slice %0 {offsets = [21, 0], sizes = [1, 32], strides = [1, 1]} : vector<22x64xf32> to vector<1x32xf32>
    %cst_174 = arith.constant dense<0.000000e+00> : vector<8xf32>
    %441 = vector.multi_reduction <add>, %436, %cst_174 [1] : vector<8x32xf32> to vector<8xf32>
    %442 = vector.shape_cast %441 : vector<8xf32> to vector<8x1xf32>
    %cst_175 = arith.constant 3.200000e+01 : f32
    %443 = vector.broadcast %cst_175 : f32 to vector<8x1xf32>
    %444 = arith.divf %442, %443 : vector<8x1xf32>
    %445 = vector.broadcast %444 : vector<8x1xf32> to vector<8x32xf32>
    %446 = arith.subf %436, %445 : vector<8x32xf32>
    %447 = arith.mulf %446, %446 : vector<8x32xf32>
    %cst_176 = arith.constant dense<0.000000e+00> : vector<8xf32>
    %448 = vector.multi_reduction <add>, %447, %cst_176 [1] : vector<8x32xf32> to vector<8xf32>
    %449 = vector.shape_cast %448 : vector<8xf32> to vector<8x1xf32>
    %cst_177 = arith.constant 3.200000e+01 : f32
    %450 = vector.broadcast %cst_177 : f32 to vector<8x1xf32>
    %451 = arith.divf %449, %450 : vector<8x1xf32>
    %452 = vector.broadcast %444 : vector<8x1xf32> to vector<8x32xf32>
    %453 = arith.subf %436, %452 : vector<8x32xf32>
    %cst_178 = arith.constant 9.99999974E-6 : f32
    %454 = vector.broadcast %cst_178 : f32 to vector<8x1xf32>
    %455 = arith.addf %451, %454 : vector<8x1xf32>
    %456 = math.rsqrt %455 : vector<8x1xf32>
    %457 = vector.broadcast %456 : vector<8x1xf32> to vector<8x32xf32>
    %458 = arith.mulf %453, %457 : vector<8x32xf32>
    %459 = vector.broadcast %439 : vector<1x32xf32> to vector<8x32xf32>
    %460 = arith.mulf %458, %459 : vector<8x32xf32>
    %461 = vector.broadcast %440 : vector<1x32xf32> to vector<8x32xf32>
    %462 = arith.addf %460, %461 : vector<8x32xf32>
    %c0_179 = arith.constant 0 : index
    %c0_180 = arith.constant 0 : index
    %c0_181 = arith.constant 0 : index
    %463 = vector.load %arg4[%c0_179, %c0_180, %c0_181] : memref<8x2x32xf32, #tpu.memory_space<vmem>>, vector<8x1x32xf32>
    %464 = vector.shape_cast %463 : vector<8x1x32xf32> to vector<8x32xf32>
    %465 = vector.shape_cast %462 : vector<8x32xf32> to vector<8x1x32xf32>
    tpu.vector_store %arg4[%c0_179, %c0_180, %c0_181], %465 {strides = array<i32>} : memref<8x2x32xf32, #tpu.memory_space<vmem>>, vector<8x1x32xf32>,
    %c0_182 = arith.constant 0 : index
    %c0_183 = arith.constant 0 : index
    %c0_184 = arith.constant 0 : index
    %466 = vector.load %arg5[%c0_182, %c0_183, %c0_184] : memref<2x8x8xf32, #tpu.memory_space<vmem>>, vector<1x8x8xf32>
    %467 = vector.shape_cast %466 : vector<1x8x8xf32> to vector<8x8xf32>
    %468 = vector.shape_cast %438 : vector<8x8xf32> to vector<1x8x8xf32>
    tpu.vector_store %arg5[%c0_182, %c0_183, %c0_184], %468 {strides = array<i32>} : memref<2x8x8xf32, #tpu.memory_space<vmem>>, vector<1x8x8xf32>,
    %469 = vector.extract_strided_slice %1 {offsets = [0, 1, 0], sizes = [8, 1, 32], strides = [1, 1, 1]} : vector<8x2x32xf32> to vector<8x1x32xf32>
    %470 = vector.shape_cast %469 : vector<8x1x32xf32> to vector<8x32xf32>
    %cst_185 = arith.constant 0.000000e+00 : f32
    %471 = vector.broadcast %cst_185 : f32 to vector<8x32xf32>
    %c0_186 = arith.constant 0 : index
    %c0_187 = arith.constant 0 : index
    %c0_188 = arith.constant 0 : index
    %472 = vector.load %arg1[%c0_186, %c0_187, %c0_188] : memref<32x8x32xf32, #tpu.memory_space<vmem>>, vector<1x8x32xf32>
    %473 = vector.shape_cast %472 : vector<1x8x32xf32> to vector<8x32xf32>
    %c4_189 = arith.constant 4 : index
    %c0_190 = arith.constant 0 : index
    %c0_191 = arith.constant 0 : index
    %474 = vector.load %arg1[%c4_189, %c0_190, %c0_191] : memref<32x8x32xf32, #tpu.memory_space<vmem>>, vector<1x8x32xf32>
    %475 = vector.shape_cast %474 : vector<1x8x32xf32> to vector<8x32xf32>
    %c8_192 = arith.constant 8 : index
    %c0_193 = arith.constant 0 : index
    %c0_194 = arith.constant 0 : index
    %476 = vector.load %arg1[%c8_192, %c0_193, %c0_194] : memref<32x8x32xf32, #tpu.memory_space<vmem>>, vector<1x8x32xf32>
    %477 = vector.shape_cast %476 : vector<1x8x32xf32> to vector<8x32xf32>
    %c12_195 = arith.constant 12 : index
    %c0_196 = arith.constant 0 : index
    %c0_197 = arith.constant 0 : index
    %478 = vector.load %arg1[%c12_195, %c0_196, %c0_197] : memref<32x8x32xf32, #tpu.memory_space<vmem>>, vector<1x8x32xf32>
    %479 = vector.shape_cast %478 : vector<1x8x32xf32> to vector<8x32xf32>
    %cst_198 = arith.constant dense<0.000000e+00> : vector<8x8xf32>
    %480 = tpu.matmul %470, %473, %cst_198 {dimension_numbers = #tpu.dot_dimension_numbers<[1], [1], [0], [0], [0, 0, 1, 0], [], []>} : vector<8x32xf32>, vector<8x32xf32>, vector<8x8xf32> -> vector<8x8xf32>
    %481 = vector.extract_strided_slice %0 {offsets = [0, 0], sizes = [1, 32], strides = [1, 1]} : vector<22x64xf32> to vector<1x32xf32>
    %482 = vector.extract_strided_slice %481 {offsets = [0, 0], sizes = [1, 8], strides = [1, 1]} : vector<1x32xf32> to vector<1x8xf32>
    %483 = vector.broadcast %482 : vector<1x8xf32> to vector<8x8xf32>
    %484 = arith.addf %480, %483 : vector<8x8xf32>
    %cst_199 = arith.constant dense<0.000000e+00> : vector<8x8xf32>
    %485 = tpu.matmul %470, %475, %cst_199 {dimension_numbers = #tpu.dot_dimension_numbers<[1], [1], [0], [0], [0, 0, 1, 0], [], []>} : vector<8x32xf32>, vector<8x32xf32>, vector<8x8xf32> -> vector<8x8xf32>
    %486 = vector.extract_strided_slice %0 {offsets = [1, 0], sizes = [1, 32], strides = [1, 1]} : vector<22x64xf32> to vector<1x32xf32>
    %487 = vector.extract_strided_slice %486 {offsets = [0, 0], sizes = [1, 8], strides = [1, 1]} : vector<1x32xf32> to vector<1x8xf32>
    %488 = vector.broadcast %487 : vector<1x8xf32> to vector<8x8xf32>
    %489 = arith.addf %485, %488 : vector<8x8xf32>
    %cst_200 = arith.constant dense<0.000000e+00> : vector<8x8xf32>
    %490 = tpu.matmul %470, %477, %cst_200 {dimension_numbers = #tpu.dot_dimension_numbers<[1], [1], [0], [0], [0, 0, 1, 0], [], []>} : vector<8x32xf32>, vector<8x32xf32>, vector<8x8xf32> -> vector<8x8xf32>
    %491 = vector.extract_strided_slice %0 {offsets = [2, 0], sizes = [1, 32], strides = [1, 1]} : vector<22x64xf32> to vector<1x32xf32>
    %492 = vector.extract_strided_slice %491 {offsets = [0, 0], sizes = [1, 8], strides = [1, 1]} : vector<1x32xf32> to vector<1x8xf32>
    %493 = vector.broadcast %492 : vector<1x8xf32> to vector<8x8xf32>
    %494 = arith.addf %490, %493 : vector<8x8xf32>
    %cst_201 = arith.constant dense<0.000000e+00> : vector<8x8xf32>
    %495 = tpu.matmul %484, %489, %cst_201 {dimension_numbers = #tpu.dot_dimension_numbers<[1], [1], [0], [0], [0, 0, 1, 0], [], []>} : vector<8x8xf32>, vector<8x8xf32>, vector<8x8xf32> -> vector<8x8xf32>
    %cst_202 = arith.constant dense<0xFF800000> : vector<8xf32>
    %496 = vector.multi_reduction <maximumf>, %495, %cst_202 [1] : vector<8x8xf32> to vector<8xf32>
    %497 = vector.shape_cast %496 : vector<8xf32> to vector<8x1xf32>
    %498 = vector.broadcast %497 : vector<8x1xf32> to vector<8x8xf32>
    %499 = arith.subf %495, %498 : vector<8x8xf32>
    %500 = math.exp %499 : vector<8x8xf32>
    %cst_203 = arith.constant dense<0.000000e+00> : vector<8xf32>
    %501 = vector.multi_reduction <add>, %500, %cst_203 [1] : vector<8x8xf32> to vector<8xf32>
    %502 = vector.shape_cast %501 : vector<8xf32> to vector<8x1xf32>
    %cst_204 = arith.constant dense<0.000000e+00> : vector<8x8xf32>
    %503 = tpu.matmul %500, %494, %cst_204 {dimension_numbers = #tpu.dot_dimension_numbers<[1], [0], [0], [1], [0, 0, 1, 1], [], []>} : vector<8x8xf32>, vector<8x8xf32>, vector<8x8xf32> -> vector<8x8xf32>
    %504 = tpu.reciprocal %502 {approx = true} : vector<8x1xf32> -> vector<8x1xf32>
    %505 = vector.broadcast %504 : vector<8x1xf32> to vector<8x8xf32>
    %506 = arith.mulf %503, %505 : vector<8x8xf32>
    %cst_205 = arith.constant dense<0.000000e+00> : vector<8x32xf32>
    %507 = tpu.matmul %506, %479, %cst_205 {dimension_numbers = #tpu.dot_dimension_numbers<[1], [0], [0], [1], [0, 0, 1, 1], [], []>} : vector<8x8xf32>, vector<8x32xf32>, vector<8x32xf32> -> vector<8x32xf32>
    %508 = arith.addf %471, %507 : vector<8x32xf32>
    %c1_206 = arith.constant 1 : index
    %c0_207 = arith.constant 0 : index
    %c0_208 = arith.constant 0 : index
    %509 = vector.load %arg1[%c1_206, %c0_207, %c0_208] : memref<32x8x32xf32, #tpu.memory_space<vmem>>, vector<1x8x32xf32>
    %510 = vector.shape_cast %509 : vector<1x8x32xf32> to vector<8x32xf32>
    %c5_209 = arith.constant 5 : index
    %c0_210 = arith.constant 0 : index
    %c0_211 = arith.constant 0 : index
    %511 = vector.load %arg1[%c5_209, %c0_210, %c0_211] : memref<32x8x32xf32, #tpu.memory_space<vmem>>, vector<1x8x32xf32>
    %512 = vector.shape_cast %511 : vector<1x8x32xf32> to vector<8x32xf32>
    %c9_212 = arith.constant 9 : index
    %c0_213 = arith.constant 0 : index
    %c0_214 = arith.constant 0 : index
    %513 = vector.load %arg1[%c9_212, %c0_213, %c0_214] : memref<32x8x32xf32, #tpu.memory_space<vmem>>, vector<1x8x32xf32>
    %514 = vector.shape_cast %513 : vector<1x8x32xf32> to vector<8x32xf32>
    %c13_215 = arith.constant 13 : index
    %c0_216 = arith.constant 0 : index
    %c0_217 = arith.constant 0 : index
    %515 = vector.load %arg1[%c13_215, %c0_216, %c0_217] : memref<32x8x32xf32, #tpu.memory_space<vmem>>, vector<1x8x32xf32>
    %516 = vector.shape_cast %515 : vector<1x8x32xf32> to vector<8x32xf32>
    %cst_218 = arith.constant dense<0.000000e+00> : vector<8x8xf32>
    %517 = tpu.matmul %470, %510, %cst_218 {dimension_numbers = #tpu.dot_dimension_numbers<[1], [1], [0], [0], [0, 0, 1, 0], [], []>} : vector<8x32xf32>, vector<8x32xf32>, vector<8x8xf32> -> vector<8x8xf32>
    %518 = vector.extract_strided_slice %0 {offsets = [0, 0], sizes = [1, 32], strides = [1, 1]} : vector<22x64xf32> to vector<1x32xf32>
    %519 = vector.extract_strided_slice %518 {offsets = [0, 8], sizes = [1, 8], strides = [1, 1]} : vector<1x32xf32> to vector<1x8xf32>
    %520 = vector.broadcast %519 : vector<1x8xf32> to vector<8x8xf32>
    %521 = arith.addf %517, %520 : vector<8x8xf32>
    %cst_219 = arith.constant dense<0.000000e+00> : vector<8x8xf32>
    %522 = tpu.matmul %470, %512, %cst_219 {dimension_numbers = #tpu.dot_dimension_numbers<[1], [1], [0], [0], [0, 0, 1, 0], [], []>} : vector<8x32xf32>, vector<8x32xf32>, vector<8x8xf32> -> vector<8x8xf32>
    %523 = vector.extract_strided_slice %0 {offsets = [1, 0], sizes = [1, 32], strides = [1, 1]} : vector<22x64xf32> to vector<1x32xf32>
    %524 = vector.extract_strided_slice %523 {offsets = [0, 8], sizes = [1, 8], strides = [1, 1]} : vector<1x32xf32> to vector<1x8xf32>
    %525 = vector.broadcast %524 : vector<1x8xf32> to vector<8x8xf32>
    %526 = arith.addf %522, %525 : vector<8x8xf32>
    %cst_220 = arith.constant dense<0.000000e+00> : vector<8x8xf32>
    %527 = tpu.matmul %470, %514, %cst_220 {dimension_numbers = #tpu.dot_dimension_numbers<[1], [1], [0], [0], [0, 0, 1, 0], [], []>} : vector<8x32xf32>, vector<8x32xf32>, vector<8x8xf32> -> vector<8x8xf32>
    %528 = vector.extract_strided_slice %0 {offsets = [2, 0], sizes = [1, 32], strides = [1, 1]} : vector<22x64xf32> to vector<1x32xf32>
    %529 = vector.extract_strided_slice %528 {offsets = [0, 8], sizes = [1, 8], strides = [1, 1]} : vector<1x32xf32> to vector<1x8xf32>
    %530 = vector.broadcast %529 : vector<1x8xf32> to vector<8x8xf32>
    %531 = arith.addf %527, %530 : vector<8x8xf32>
    %cst_221 = arith.constant dense<0.000000e+00> : vector<8x8xf32>
    %532 = tpu.matmul %521, %526, %cst_221 {dimension_numbers = #tpu.dot_dimension_numbers<[1], [1], [0], [0], [0, 0, 1, 0], [], []>} : vector<8x8xf32>, vector<8x8xf32>, vector<8x8xf32> -> vector<8x8xf32>
    %cst_222 = arith.constant dense<0xFF800000> : vector<8xf32>
    %533 = vector.multi_reduction <maximumf>, %532, %cst_222 [1] : vector<8x8xf32> to vector<8xf32>
    %534 = vector.shape_cast %533 : vector<8xf32> to vector<8x1xf32>
    %535 = vector.broadcast %534 : vector<8x1xf32> to vector<8x8xf32>
    %536 = arith.subf %532, %535 : vector<8x8xf32>
    %537 = math.exp %536 : vector<8x8xf32>
    %cst_223 = arith.constant dense<0.000000e+00> : vector<8xf32>
    %538 = vector.multi_reduction <add>, %537, %cst_223 [1] : vector<8x8xf32> to vector<8xf32>
    %539 = vector.shape_cast %538 : vector<8xf32> to vector<8x1xf32>
    %cst_224 = arith.constant dense<0.000000e+00> : vector<8x8xf32>
    %540 = tpu.matmul %537, %531, %cst_224 {dimension_numbers = #tpu.dot_dimension_numbers<[1], [0], [0], [1], [0, 0, 1, 1], [], []>} : vector<8x8xf32>, vector<8x8xf32>, vector<8x8xf32> -> vector<8x8xf32>
    %541 = tpu.reciprocal %539 {approx = true} : vector<8x1xf32> -> vector<8x1xf32>
    %542 = vector.broadcast %541 : vector<8x1xf32> to vector<8x8xf32>
    %543 = arith.mulf %540, %542 : vector<8x8xf32>
    %cst_225 = arith.constant dense<0.000000e+00> : vector<8x32xf32>
    %544 = tpu.matmul %543, %516, %cst_225 {dimension_numbers = #tpu.dot_dimension_numbers<[1], [0], [0], [1], [0, 0, 1, 1], [], []>} : vector<8x8xf32>, vector<8x32xf32>, vector<8x32xf32> -> vector<8x32xf32>
    %545 = arith.addf %508, %544 : vector<8x32xf32>
    %c2_226 = arith.constant 2 : index
    %c0_227 = arith.constant 0 : index
    %c0_228 = arith.constant 0 : index
    %546 = vector.load %arg1[%c2_226, %c0_227, %c0_228] : memref<32x8x32xf32, #tpu.memory_space<vmem>>, vector<1x8x32xf32>
    %547 = vector.shape_cast %546 : vector<1x8x32xf32> to vector<8x32xf32>
    %c6_229 = arith.constant 6 : index
    %c0_230 = arith.constant 0 : index
    %c0_231 = arith.constant 0 : index
    %548 = vector.load %arg1[%c6_229, %c0_230, %c0_231] : memref<32x8x32xf32, #tpu.memory_space<vmem>>, vector<1x8x32xf32>
    %549 = vector.shape_cast %548 : vector<1x8x32xf32> to vector<8x32xf32>
    %c10_232 = arith.constant 10 : index
    %c0_233 = arith.constant 0 : index
    %c0_234 = arith.constant 0 : index
    %550 = vector.load %arg1[%c10_232, %c0_233, %c0_234] : memref<32x8x32xf32, #tpu.memory_space<vmem>>, vector<1x8x32xf32>
    %551 = vector.shape_cast %550 : vector<1x8x32xf32> to vector<8x32xf32>
    %c14_235 = arith.constant 14 : index
    %c0_236 = arith.constant 0 : index
    %c0_237 = arith.constant 0 : index
    %552 = vector.load %arg1[%c14_235, %c0_236, %c0_237] : memref<32x8x32xf32, #tpu.memory_space<vmem>>, vector<1x8x32xf32>
    %553 = vector.shape_cast %552 : vector<1x8x32xf32> to vector<8x32xf32>
    %cst_238 = arith.constant dense<0.000000e+00> : vector<8x8xf32>
    %554 = tpu.matmul %470, %547, %cst_238 {dimension_numbers = #tpu.dot_dimension_numbers<[1], [1], [0], [0], [0, 0, 1, 0], [], []>} : vector<8x32xf32>, vector<8x32xf32>, vector<8x8xf32> -> vector<8x8xf32>
    %555 = vector.extract_strided_slice %0 {offsets = [0, 0], sizes = [1, 32], strides = [1, 1]} : vector<22x64xf32> to vector<1x32xf32>
    %556 = vector.extract_strided_slice %555 {offsets = [0, 16], sizes = [1, 8], strides = [1, 1]} : vector<1x32xf32> to vector<1x8xf32>
    %557 = vector.broadcast %556 : vector<1x8xf32> to vector<8x8xf32>
    %558 = arith.addf %554, %557 : vector<8x8xf32>
    %cst_239 = arith.constant dense<0.000000e+00> : vector<8x8xf32>
    %559 = tpu.matmul %470, %549, %cst_239 {dimension_numbers = #tpu.dot_dimension_numbers<[1], [1], [0], [0], [0, 0, 1, 0], [], []>} : vector<8x32xf32>, vector<8x32xf32>, vector<8x8xf32> -> vector<8x8xf32>
    %560 = vector.extract_strided_slice %0 {offsets = [1, 0], sizes = [1, 32], strides = [1, 1]} : vector<22x64xf32> to vector<1x32xf32>
    %561 = vector.extract_strided_slice %560 {offsets = [0, 16], sizes = [1, 8], strides = [1, 1]} : vector<1x32xf32> to vector<1x8xf32>
    %562 = vector.broadcast %561 : vector<1x8xf32> to vector<8x8xf32>
    %563 = arith.addf %559, %562 : vector<8x8xf32>
    %cst_240 = arith.constant dense<0.000000e+00> : vector<8x8xf32>
    %564 = tpu.matmul %470, %551, %cst_240 {dimension_numbers = #tpu.dot_dimension_numbers<[1], [1], [0], [0], [0, 0, 1, 0], [], []>} : vector<8x32xf32>, vector<8x32xf32>, vector<8x8xf32> -> vector<8x8xf32>
    %565 = vector.extract_strided_slice %0 {offsets = [2, 0], sizes = [1, 32], strides = [1, 1]} : vector<22x64xf32> to vector<1x32xf32>
    %566 = vector.extract_strided_slice %565 {offsets = [0, 16], sizes = [1, 8], strides = [1, 1]} : vector<1x32xf32> to vector<1x8xf32>
    %567 = vector.broadcast %566 : vector<1x8xf32> to vector<8x8xf32>
    %568 = arith.addf %564, %567 : vector<8x8xf32>
    %cst_241 = arith.constant dense<0.000000e+00> : vector<8x8xf32>
    %569 = tpu.matmul %558, %563, %cst_241 {dimension_numbers = #tpu.dot_dimension_numbers<[1], [1], [0], [0], [0, 0, 1, 0], [], []>} : vector<8x8xf32>, vector<8x8xf32>, vector<8x8xf32> -> vector<8x8xf32>
    %cst_242 = arith.constant dense<0xFF800000> : vector<8xf32>
    %570 = vector.multi_reduction <maximumf>, %569, %cst_242 [1] : vector<8x8xf32> to vector<8xf32>
    %571 = vector.shape_cast %570 : vector<8xf32> to vector<8x1xf32>
    %572 = vector.broadcast %571 : vector<8x1xf32> to vector<8x8xf32>
    %573 = arith.subf %569, %572 : vector<8x8xf32>
    %574 = math.exp %573 : vector<8x8xf32>
    %cst_243 = arith.constant dense<0.000000e+00> : vector<8xf32>
    %575 = vector.multi_reduction <add>, %574, %cst_243 [1] : vector<8x8xf32> to vector<8xf32>
    %576 = vector.shape_cast %575 : vector<8xf32> to vector<8x1xf32>
    %cst_244 = arith.constant dense<0.000000e+00> : vector<8x8xf32>
    %577 = tpu.matmul %574, %568, %cst_244 {dimension_numbers = #tpu.dot_dimension_numbers<[1], [0], [0], [1], [0, 0, 1, 1], [], []>} : vector<8x8xf32>, vector<8x8xf32>, vector<8x8xf32> -> vector<8x8xf32>
    %578 = tpu.reciprocal %576 {approx = true} : vector<8x1xf32> -> vector<8x1xf32>
    %579 = vector.broadcast %578 : vector<8x1xf32> to vector<8x8xf32>
    %580 = arith.mulf %577, %579 : vector<8x8xf32>
    %cst_245 = arith.constant dense<0.000000e+00> : vector<8x32xf32>
    %581 = tpu.matmul %580, %553, %cst_245 {dimension_numbers = #tpu.dot_dimension_numbers<[1], [0], [0], [1], [0, 0, 1, 1], [], []>} : vector<8x8xf32>, vector<8x32xf32>, vector<8x32xf32> -> vector<8x32xf32>
    %582 = arith.addf %545, %581 : vector<8x32xf32>
    %c3_246 = arith.constant 3 : index
    %c0_247 = arith.constant 0 : index
    %c0_248 = arith.constant 0 : index
    %583 = vector.load %arg1[%c3_246, %c0_247, %c0_248] : memref<32x8x32xf32, #tpu.memory_space<vmem>>, vector<1x8x32xf32>
    %584 = vector.shape_cast %583 : vector<1x8x32xf32> to vector<8x32xf32>
    %c7_249 = arith.constant 7 : index
    %c0_250 = arith.constant 0 : index
    %c0_251 = arith.constant 0 : index
    %585 = vector.load %arg1[%c7_249, %c0_250, %c0_251] : memref<32x8x32xf32, #tpu.memory_space<vmem>>, vector<1x8x32xf32>
    %586 = vector.shape_cast %585 : vector<1x8x32xf32> to vector<8x32xf32>
    %c11_252 = arith.constant 11 : index
    %c0_253 = arith.constant 0 : index
    %c0_254 = arith.constant 0 : index
    %587 = vector.load %arg1[%c11_252, %c0_253, %c0_254] : memref<32x8x32xf32, #tpu.memory_space<vmem>>, vector<1x8x32xf32>
    %588 = vector.shape_cast %587 : vector<1x8x32xf32> to vector<8x32xf32>
    %c15_255 = arith.constant 15 : index
    %c0_256 = arith.constant 0 : index
    %c0_257 = arith.constant 0 : index
    %589 = vector.load %arg1[%c15_255, %c0_256, %c0_257] : memref<32x8x32xf32, #tpu.memory_space<vmem>>, vector<1x8x32xf32>
    %590 = vector.shape_cast %589 : vector<1x8x32xf32> to vector<8x32xf32>
    %cst_258 = arith.constant dense<0.000000e+00> : vector<8x8xf32>
    %591 = tpu.matmul %470, %584, %cst_258 {dimension_numbers = #tpu.dot_dimension_numbers<[1], [1], [0], [0], [0, 0, 1, 0], [], []>} : vector<8x32xf32>, vector<8x32xf32>, vector<8x8xf32> -> vector<8x8xf32>
    %592 = vector.extract_strided_slice %0 {offsets = [0, 0], sizes = [1, 32], strides = [1, 1]} : vector<22x64xf32> to vector<1x32xf32>
    %593 = vector.extract_strided_slice %592 {offsets = [0, 24], sizes = [1, 8], strides = [1, 1]} : vector<1x32xf32> to vector<1x8xf32>
    %594 = vector.broadcast %593 : vector<1x8xf32> to vector<8x8xf32>
    %595 = arith.addf %591, %594 : vector<8x8xf32>
    %cst_259 = arith.constant dense<0.000000e+00> : vector<8x8xf32>
    %596 = tpu.matmul %470, %586, %cst_259 {dimension_numbers = #tpu.dot_dimension_numbers<[1], [1], [0], [0], [0, 0, 1, 0], [], []>} : vector<8x32xf32>, vector<8x32xf32>, vector<8x8xf32> -> vector<8x8xf32>
    %597 = vector.extract_strided_slice %0 {offsets = [1, 0], sizes = [1, 32], strides = [1, 1]} : vector<22x64xf32> to vector<1x32xf32>
    %598 = vector.extract_strided_slice %597 {offsets = [0, 24], sizes = [1, 8], strides = [1, 1]} : vector<1x32xf32> to vector<1x8xf32>
    %599 = vector.broadcast %598 : vector<1x8xf32> to vector<8x8xf32>
    %600 = arith.addf %596, %599 : vector<8x8xf32>
    %cst_260 = arith.constant dense<0.000000e+00> : vector<8x8xf32>
    %601 = tpu.matmul %470, %588, %cst_260 {dimension_numbers = #tpu.dot_dimension_numbers<[1], [1], [0], [0], [0, 0, 1, 0], [], []>} : vector<8x32xf32>, vector<8x32xf32>, vector<8x8xf32> -> vector<8x8xf32>
    %602 = vector.extract_strided_slice %0 {offsets = [2, 0], sizes = [1, 32], strides = [1, 1]} : vector<22x64xf32> to vector<1x32xf32>
    %603 = vector.extract_strided_slice %602 {offsets = [0, 24], sizes = [1, 8], strides = [1, 1]} : vector<1x32xf32> to vector<1x8xf32>
    %604 = vector.broadcast %603 : vector<1x8xf32> to vector<8x8xf32>
    %605 = arith.addf %601, %604 : vector<8x8xf32>
    %cst_261 = arith.constant dense<0.000000e+00> : vector<8x8xf32>
    %606 = tpu.matmul %595, %600, %cst_261 {dimension_numbers = #tpu.dot_dimension_numbers<[1], [1], [0], [0], [0, 0, 1, 0], [], []>} : vector<8x8xf32>, vector<8x8xf32>, vector<8x8xf32> -> vector<8x8xf32>
    %cst_262 = arith.constant dense<0xFF800000> : vector<8xf32>
    %607 = vector.multi_reduction <maximumf>, %606, %cst_262 [1] : vector<8x8xf32> to vector<8xf32>
    %608 = vector.shape_cast %607 : vector<8xf32> to vector<8x1xf32>
    %609 = vector.broadcast %608 : vector<8x1xf32> to vector<8x8xf32>
    %610 = arith.subf %606, %609 : vector<8x8xf32>
    %611 = math.exp %610 : vector<8x8xf32>
    %cst_263 = arith.constant dense<0.000000e+00> : vector<8xf32>
    %612 = vector.multi_reduction <add>, %611, %cst_263 [1] : vector<8x8xf32> to vector<8xf32>
    %613 = vector.shape_cast %612 : vector<8xf32> to vector<8x1xf32>
    %cst_264 = arith.constant dense<0.000000e+00> : vector<8x8xf32>
    %614 = tpu.matmul %611, %605, %cst_264 {dimension_numbers = #tpu.dot_dimension_numbers<[1], [0], [0], [1], [0, 0, 1, 1], [], []>} : vector<8x8xf32>, vector<8x8xf32>, vector<8x8xf32> -> vector<8x8xf32>
    %615 = tpu.reciprocal %613 {approx = true} : vector<8x1xf32> -> vector<8x1xf32>
    %616 = vector.broadcast %615 : vector<8x1xf32> to vector<8x8xf32>
    %617 = arith.mulf %614, %616 : vector<8x8xf32>
    %cst_265 = arith.constant dense<0.000000e+00> : vector<8x32xf32>
    %618 = tpu.matmul %617, %590, %cst_265 {dimension_numbers = #tpu.dot_dimension_numbers<[1], [0], [0], [1], [0, 0, 1, 1], [], []>} : vector<8x8xf32>, vector<8x32xf32>, vector<8x32xf32> -> vector<8x32xf32>
    %619 = arith.addf %582, %618 : vector<8x32xf32>
    %620 = vector.extract_strided_slice %0 {offsets = [3, 0], sizes = [1, 32], strides = [1, 1]} : vector<22x64xf32> to vector<1x32xf32>
    %621 = vector.broadcast %620 : vector<1x32xf32> to vector<8x32xf32>
    %622 = arith.addf %619, %621 : vector<8x32xf32>
    %623 = arith.addf %470, %622 : vector<8x32xf32>
    %624 = vector.extract_strided_slice %0 {offsets = [6, 0], sizes = [1, 32], strides = [1, 1]} : vector<22x64xf32> to vector<1x32xf32>
    %625 = vector.extract_strided_slice %0 {offsets = [7, 0], sizes = [1, 32], strides = [1, 1]} : vector<22x64xf32> to vector<1x32xf32>
    %cst_266 = arith.constant dense<0.000000e+00> : vector<8xf32>
    %626 = vector.multi_reduction <add>, %623, %cst_266 [1] : vector<8x32xf32> to vector<8xf32>
    %627 = vector.shape_cast %626 : vector<8xf32> to vector<8x1xf32>
    %cst_267 = arith.constant 3.200000e+01 : f32
    %628 = vector.broadcast %cst_267 : f32 to vector<8x1xf32>
    %629 = arith.divf %627, %628 : vector<8x1xf32>
    %630 = vector.broadcast %629 : vector<8x1xf32> to vector<8x32xf32>
    %631 = arith.subf %623, %630 : vector<8x32xf32>
    %632 = arith.mulf %631, %631 : vector<8x32xf32>
    %cst_268 = arith.constant dense<0.000000e+00> : vector<8xf32>
    %633 = vector.multi_reduction <add>, %632, %cst_268 [1] : vector<8x32xf32> to vector<8xf32>
    %634 = vector.shape_cast %633 : vector<8xf32> to vector<8x1xf32>
    %cst_269 = arith.constant 3.200000e+01 : f32
    %635 = vector.broadcast %cst_269 : f32 to vector<8x1xf32>
    %636 = arith.divf %634, %635 : vector<8x1xf32>
    %637 = vector.broadcast %629 : vector<8x1xf32> to vector<8x32xf32>
    %638 = arith.subf %623, %637 : vector<8x32xf32>
    %cst_270 = arith.constant 9.99999974E-6 : f32
    %639 = vector.broadcast %cst_270 : f32 to vector<8x1xf32>
    %640 = arith.addf %636, %639 : vector<8x1xf32>
    %641 = math.rsqrt %640 : vector<8x1xf32>
    %642 = vector.broadcast %641 : vector<8x1xf32> to vector<8x32xf32>
    %643 = arith.mulf %638, %642 : vector<8x32xf32>
    %644 = vector.broadcast %624 : vector<1x32xf32> to vector<8x32xf32>
    %645 = arith.mulf %643, %644 : vector<8x32xf32>
    %646 = vector.broadcast %625 : vector<1x32xf32> to vector<8x32xf32>
    %647 = arith.addf %645, %646 : vector<8x32xf32>
    %c0_271 = arith.constant 0 : index
    %c0_272 = arith.constant 0 : index
    %c0_273 = arith.constant 0 : index
    %648 = vector.load %arg2[%c0_271, %c0_272, %c0_273] : memref<4x32x64xf32, #tpu.memory_space<vmem>>, vector<1x32x64xf32>
    %649 = vector.shape_cast %648 : vector<1x32x64xf32> to vector<32x64xf32>
    %c1_274 = arith.constant 1 : index
    %c0_275 = arith.constant 0 : index
    %c0_276 = arith.constant 0 : index
    %650 = vector.load %arg2[%c1_274, %c0_275, %c0_276] : memref<4x32x64xf32, #tpu.memory_space<vmem>>, vector<1x32x64xf32>
    %651 = vector.shape_cast %650 : vector<1x32x64xf32> to vector<32x64xf32>
    %cst_277 = arith.constant dense<0.000000e+00> : vector<8x64xf32>
    %652 = tpu.matmul %647, %649, %cst_277 {dimension_numbers = #tpu.dot_dimension_numbers<[1], [0], [0], [1], [0, 0, 1, 1], [], []>} : vector<8x32xf32>, vector<32x64xf32>, vector<8x64xf32> -> vector<8x64xf32>
    %653 = vector.extract_strided_slice %0 {offsets = [4, 0], sizes = [1, 64], strides = [1, 1]} : vector<22x64xf32> to vector<1x64xf32>
    %654 = vector.broadcast %653 : vector<1x64xf32> to vector<8x64xf32>
    %655 = arith.addf %652, %654 : vector<8x64xf32>
    %cst_278 = arith.constant 0.000000e+00 : f32
    %656 = vector.broadcast %cst_278 : f32 to vector<8x64xf32>
    %657 = arith.maximumf %655, %656 : vector<8x64xf32>
    %cst_279 = arith.constant dense<0.000000e+00> : vector<8x32xf32>
    %658 = tpu.matmul %657, %651, %cst_279 {dimension_numbers = #tpu.dot_dimension_numbers<[1], [1], [0], [0], [0, 0, 1, 0], [], []>} : vector<8x64xf32>, vector<32x64xf32>, vector<8x32xf32> -> vector<8x32xf32>
    %659 = vector.extract_strided_slice %0 {offsets = [5, 0], sizes = [1, 32], strides = [1, 1]} : vector<22x64xf32> to vector<1x32xf32>
    %660 = vector.broadcast %659 : vector<1x32xf32> to vector<8x32xf32>
    %661 = arith.addf %658, %660 : vector<8x32xf32>
    %662 = arith.addf %647, %661 : vector<8x32xf32>
    %663 = vector.extract_strided_slice %0 {offsets = [8, 0], sizes = [1, 32], strides = [1, 1]} : vector<22x64xf32> to vector<1x32xf32>
    %664 = vector.extract_strided_slice %0 {offsets = [9, 0], sizes = [1, 32], strides = [1, 1]} : vector<22x64xf32> to vector<1x32xf32>
    %cst_280 = arith.constant dense<0.000000e+00> : vector<8xf32>
    %665 = vector.multi_reduction <add>, %662, %cst_280 [1] : vector<8x32xf32> to vector<8xf32>
    %666 = vector.shape_cast %665 : vector<8xf32> to vector<8x1xf32>
    %cst_281 = arith.constant 3.200000e+01 : f32
    %667 = vector.broadcast %cst_281 : f32 to vector<8x1xf32>
    %668 = arith.divf %666, %667 : vector<8x1xf32>
    %669 = vector.broadcast %668 : vector<8x1xf32> to vector<8x32xf32>
    %670 = arith.subf %662, %669 : vector<8x32xf32>
    %671 = arith.mulf %670, %670 : vector<8x32xf32>
    %cst_282 = arith.constant dense<0.000000e+00> : vector<8xf32>
    %672 = vector.multi_reduction <add>, %671, %cst_282 [1] : vector<8x32xf32> to vector<8xf32>
    %673 = vector.shape_cast %672 : vector<8xf32> to vector<8x1xf32>
    %cst_283 = arith.constant 3.200000e+01 : f32
    %674 = vector.broadcast %cst_283 : f32 to vector<8x1xf32>
    %675 = arith.divf %673, %674 : vector<8x1xf32>
    %676 = vector.broadcast %668 : vector<8x1xf32> to vector<8x32xf32>
    %677 = arith.subf %662, %676 : vector<8x32xf32>
    %cst_284 = arith.constant 9.99999974E-6 : f32
    %678 = vector.broadcast %cst_284 : f32 to vector<8x1xf32>
    %679 = arith.addf %675, %678 : vector<8x1xf32>
    %680 = math.rsqrt %679 : vector<8x1xf32>
    %681 = vector.broadcast %680 : vector<8x1xf32> to vector<8x32xf32>
    %682 = arith.mulf %677, %681 : vector<8x32xf32>
    %683 = vector.broadcast %663 : vector<1x32xf32> to vector<8x32xf32>
    %684 = arith.mulf %682, %683 : vector<8x32xf32>
    %685 = vector.broadcast %664 : vector<1x32xf32> to vector<8x32xf32>
    %686 = arith.addf %684, %685 : vector<8x32xf32>
    %cst_285 = arith.constant 0.000000e+00 : f32
    %687 = vector.broadcast %cst_285 : f32 to vector<8x32xf32>
    %cst_286 = arith.constant 0.000000e+00 : f32
    %688 = vector.broadcast %cst_286 : f32 to vector<8x8xf32>
    %c16_287 = arith.constant 16 : index
    %c0_288 = arith.constant 0 : index
    %c0_289 = arith.constant 0 : index
    %689 = vector.load %arg1[%c16_287, %c0_288, %c0_289] : memref<32x8x32xf32, #tpu.memory_space<vmem>>, vector<1x8x32xf32>
    %690 = vector.shape_cast %689 : vector<1x8x32xf32> to vector<8x32xf32>
    %c20_290 = arith.constant 20 : index
    %c0_291 = arith.constant 0 : index
    %c0_292 = arith.constant 0 : index
    %691 = vector.load %arg1[%c20_290, %c0_291, %c0_292] : memref<32x8x32xf32, #tpu.memory_space<vmem>>, vector<1x8x32xf32>
    %692 = vector.shape_cast %691 : vector<1x8x32xf32> to vector<8x32xf32>
    %c24_293 = arith.constant 24 : index
    %c0_294 = arith.constant 0 : index
    %c0_295 = arith.constant 0 : index
    %693 = vector.load %arg1[%c24_293, %c0_294, %c0_295] : memref<32x8x32xf32, #tpu.memory_space<vmem>>, vector<1x8x32xf32>
    %694 = vector.shape_cast %693 : vector<1x8x32xf32> to vector<8x32xf32>
    %c28_296 = arith.constant 28 : index
    %c0_297 = arith.constant 0 : index
    %c0_298 = arith.constant 0 : index
    %695 = vector.load %arg1[%c28_296, %c0_297, %c0_298] : memref<32x8x32xf32, #tpu.memory_space<vmem>>, vector<1x8x32xf32>
    %696 = vector.shape_cast %695 : vector<1x8x32xf32> to vector<8x32xf32>
    %cst_299 = arith.constant dense<0.000000e+00> : vector<8x8xf32>
    %697 = tpu.matmul %686, %690, %cst_299 {dimension_numbers = #tpu.dot_dimension_numbers<[1], [1], [0], [0], [0, 0, 1, 0], [], []>} : vector<8x32xf32>, vector<8x32xf32>, vector<8x8xf32> -> vector<8x8xf32>
    %698 = vector.extract_strided_slice %0 {offsets = [10, 0], sizes = [1, 32], strides = [1, 1]} : vector<22x64xf32> to vector<1x32xf32>
    %699 = vector.extract_strided_slice %698 {offsets = [0, 0], sizes = [1, 8], strides = [1, 1]} : vector<1x32xf32> to vector<1x8xf32>
    %700 = vector.broadcast %699 : vector<1x8xf32> to vector<8x8xf32>
    %701 = arith.addf %697, %700 : vector<8x8xf32>
    %cst_300 = arith.constant dense<0.000000e+00> : vector<8x8xf32>
    %702 = tpu.matmul %686, %692, %cst_300 {dimension_numbers = #tpu.dot_dimension_numbers<[1], [1], [0], [0], [0, 0, 1, 0], [], []>} : vector<8x32xf32>, vector<8x32xf32>, vector<8x8xf32> -> vector<8x8xf32>
    %703 = vector.extract_strided_slice %0 {offsets = [11, 0], sizes = [1, 32], strides = [1, 1]} : vector<22x64xf32> to vector<1x32xf32>
    %704 = vector.extract_strided_slice %703 {offsets = [0, 0], sizes = [1, 8], strides = [1, 1]} : vector<1x32xf32> to vector<1x8xf32>
    %705 = vector.broadcast %704 : vector<1x8xf32> to vector<8x8xf32>
    %706 = arith.addf %702, %705 : vector<8x8xf32>
    %cst_301 = arith.constant dense<0.000000e+00> : vector<8x8xf32>
    %707 = tpu.matmul %686, %694, %cst_301 {dimension_numbers = #tpu.dot_dimension_numbers<[1], [1], [0], [0], [0, 0, 1, 0], [], []>} : vector<8x32xf32>, vector<8x32xf32>, vector<8x8xf32> -> vector<8x8xf32>
    %708 = vector.extract_strided_slice %0 {offsets = [12, 0], sizes = [1, 32], strides = [1, 1]} : vector<22x64xf32> to vector<1x32xf32>
    %709 = vector.extract_strided_slice %708 {offsets = [0, 0], sizes = [1, 8], strides = [1, 1]} : vector<1x32xf32> to vector<1x8xf32>
    %710 = vector.broadcast %709 : vector<1x8xf32> to vector<8x8xf32>
    %711 = arith.addf %707, %710 : vector<8x8xf32>
    %cst_302 = arith.constant dense<0.000000e+00> : vector<8x8xf32>
    %712 = tpu.matmul %701, %706, %cst_302 {dimension_numbers = #tpu.dot_dimension_numbers<[1], [1], [0], [0], [0, 0, 1, 0], [], []>} : vector<8x8xf32>, vector<8x8xf32>, vector<8x8xf32> -> vector<8x8xf32>
    %cst_303 = arith.constant dense<0xFF800000> : vector<8xf32>
    %713 = vector.multi_reduction <maximumf>, %712, %cst_303 [1] : vector<8x8xf32> to vector<8xf32>
    %714 = vector.shape_cast %713 : vector<8xf32> to vector<8x1xf32>
    %715 = vector.broadcast %714 : vector<8x1xf32> to vector<8x8xf32>
    %716 = arith.subf %712, %715 : vector<8x8xf32>
    %717 = math.exp %716 : vector<8x8xf32>
    %cst_304 = arith.constant dense<0.000000e+00> : vector<8xf32>
    %718 = vector.multi_reduction <add>, %717, %cst_304 [1] : vector<8x8xf32> to vector<8xf32>
    %719 = vector.shape_cast %718 : vector<8xf32> to vector<8x1xf32>
    %720 = vector.broadcast %719 : vector<8x1xf32> to vector<8x8xf32>
    %721 = arith.divf %717, %720 : vector<8x8xf32>
    %722 = arith.addf %688, %721 : vector<8x8xf32>
    %cst_305 = arith.constant dense<0.000000e+00> : vector<8x8xf32>
    %723 = tpu.matmul %721, %711, %cst_305 {dimension_numbers = #tpu.dot_dimension_numbers<[1], [0], [0], [1], [0, 0, 1, 1], [], []>} : vector<8x8xf32>, vector<8x8xf32>, vector<8x8xf32> -> vector<8x8xf32>
    %cst_306 = arith.constant dense<0.000000e+00> : vector<8x32xf32>
    %724 = tpu.matmul %723, %696, %cst_306 {dimension_numbers = #tpu.dot_dimension_numbers<[1], [0], [0], [1], [0, 0, 1, 1], [], []>} : vector<8x8xf32>, vector<8x32xf32>, vector<8x32xf32> -> vector<8x32xf32>
    %725 = arith.addf %687, %724 : vector<8x32xf32>
    %c17_307 = arith.constant 17 : index
    %c0_308 = arith.constant 0 : index
    %c0_309 = arith.constant 0 : index
    %726 = vector.load %arg1[%c17_307, %c0_308, %c0_309] : memref<32x8x32xf32, #tpu.memory_space<vmem>>, vector<1x8x32xf32>
    %727 = vector.shape_cast %726 : vector<1x8x32xf32> to vector<8x32xf32>
    %c21_310 = arith.constant 21 : index
    %c0_311 = arith.constant 0 : index
    %c0_312 = arith.constant 0 : index
    %728 = vector.load %arg1[%c21_310, %c0_311, %c0_312] : memref<32x8x32xf32, #tpu.memory_space<vmem>>, vector<1x8x32xf32>
    %729 = vector.shape_cast %728 : vector<1x8x32xf32> to vector<8x32xf32>
    %c25_313 = arith.constant 25 : index
    %c0_314 = arith.constant 0 : index
    %c0_315 = arith.constant 0 : index
    %730 = vector.load %arg1[%c25_313, %c0_314, %c0_315] : memref<32x8x32xf32, #tpu.memory_space<vmem>>, vector<1x8x32xf32>
    %731 = vector.shape_cast %730 : vector<1x8x32xf32> to vector<8x32xf32>
    %c29_316 = arith.constant 29 : index
    %c0_317 = arith.constant 0 : index
    %c0_318 = arith.constant 0 : index
    %732 = vector.load %arg1[%c29_316, %c0_317, %c0_318] : memref<32x8x32xf32, #tpu.memory_space<vmem>>, vector<1x8x32xf32>
    %733 = vector.shape_cast %732 : vector<1x8x32xf32> to vector<8x32xf32>
    %cst_319 = arith.constant dense<0.000000e+00> : vector<8x8xf32>
    %734 = tpu.matmul %686, %727, %cst_319 {dimension_numbers = #tpu.dot_dimension_numbers<[1], [1], [0], [0], [0, 0, 1, 0], [], []>} : vector<8x32xf32>, vector<8x32xf32>, vector<8x8xf32> -> vector<8x8xf32>
    %735 = vector.extract_strided_slice %0 {offsets = [10, 0], sizes = [1, 32], strides = [1, 1]} : vector<22x64xf32> to vector<1x32xf32>
    %736 = vector.extract_strided_slice %735 {offsets = [0, 8], sizes = [1, 8], strides = [1, 1]} : vector<1x32xf32> to vector<1x8xf32>
    %737 = vector.broadcast %736 : vector<1x8xf32> to vector<8x8xf32>
    %738 = arith.addf %734, %737 : vector<8x8xf32>
    %cst_320 = arith.constant dense<0.000000e+00> : vector<8x8xf32>
    %739 = tpu.matmul %686, %729, %cst_320 {dimension_numbers = #tpu.dot_dimension_numbers<[1], [1], [0], [0], [0, 0, 1, 0], [], []>} : vector<8x32xf32>, vector<8x32xf32>, vector<8x8xf32> -> vector<8x8xf32>
    %740 = vector.extract_strided_slice %0 {offsets = [11, 0], sizes = [1, 32], strides = [1, 1]} : vector<22x64xf32> to vector<1x32xf32>
    %741 = vector.extract_strided_slice %740 {offsets = [0, 8], sizes = [1, 8], strides = [1, 1]} : vector<1x32xf32> to vector<1x8xf32>
    %742 = vector.broadcast %741 : vector<1x8xf32> to vector<8x8xf32>
    %743 = arith.addf %739, %742 : vector<8x8xf32>
    %cst_321 = arith.constant dense<0.000000e+00> : vector<8x8xf32>
    %744 = tpu.matmul %686, %731, %cst_321 {dimension_numbers = #tpu.dot_dimension_numbers<[1], [1], [0], [0], [0, 0, 1, 0], [], []>} : vector<8x32xf32>, vector<8x32xf32>, vector<8x8xf32> -> vector<8x8xf32>
    %745 = vector.extract_strided_slice %0 {offsets = [12, 0], sizes = [1, 32], strides = [1, 1]} : vector<22x64xf32> to vector<1x32xf32>
    %746 = vector.extract_strided_slice %745 {offsets = [0, 8], sizes = [1, 8], strides = [1, 1]} : vector<1x32xf32> to vector<1x8xf32>
    %747 = vector.broadcast %746 : vector<1x8xf32> to vector<8x8xf32>
    %748 = arith.addf %744, %747 : vector<8x8xf32>
    %cst_322 = arith.constant dense<0.000000e+00> : vector<8x8xf32>
    %749 = tpu.matmul %738, %743, %cst_322 {dimension_numbers = #tpu.dot_dimension_numbers<[1], [1], [0], [0], [0, 0, 1, 0], [], []>} : vector<8x8xf32>, vector<8x8xf32>, vector<8x8xf32> -> vector<8x8xf32>
    %cst_323 = arith.constant dense<0xFF800000> : vector<8xf32>
    %750 = vector.multi_reduction <maximumf>, %749, %cst_323 [1] : vector<8x8xf32> to vector<8xf32>
    %751 = vector.shape_cast %750 : vector<8xf32> to vector<8x1xf32>
    %752 = vector.broadcast %751 : vector<8x1xf32> to vector<8x8xf32>
    %753 = arith.subf %749, %752 : vector<8x8xf32>
    %754 = math.exp %753 : vector<8x8xf32>
    %cst_324 = arith.constant dense<0.000000e+00> : vector<8xf32>
    %755 = vector.multi_reduction <add>, %754, %cst_324 [1] : vector<8x8xf32> to vector<8xf32>
    %756 = vector.shape_cast %755 : vector<8xf32> to vector<8x1xf32>
    %757 = vector.broadcast %756 : vector<8x1xf32> to vector<8x8xf32>
    %758 = arith.divf %754, %757 : vector<8x8xf32>
    %759 = arith.addf %722, %758 : vector<8x8xf32>
    %cst_325 = arith.constant dense<0.000000e+00> : vector<8x8xf32>
    %760 = tpu.matmul %758, %748, %cst_325 {dimension_numbers = #tpu.dot_dimension_numbers<[1], [0], [0], [1], [0, 0, 1, 1], [], []>} : vector<8x8xf32>, vector<8x8xf32>, vector<8x8xf32> -> vector<8x8xf32>
    %cst_326 = arith.constant dense<0.000000e+00> : vector<8x32xf32>
    %761 = tpu.matmul %760, %733, %cst_326 {dimension_numbers = #tpu.dot_dimension_numbers<[1], [0], [0], [1], [0, 0, 1, 1], [], []>} : vector<8x8xf32>, vector<8x32xf32>, vector<8x32xf32> -> vector<8x32xf32>
    %762 = arith.addf %725, %761 : vector<8x32xf32>
    %c18_327 = arith.constant 18 : index
    %c0_328 = arith.constant 0 : index
    %c0_329 = arith.constant 0 : index
    %763 = vector.load %arg1[%c18_327, %c0_328, %c0_329] : memref<32x8x32xf32, #tpu.memory_space<vmem>>, vector<1x8x32xf32>
    %764 = vector.shape_cast %763 : vector<1x8x32xf32> to vector<8x32xf32>
    %c22_330 = arith.constant 22 : index
    %c0_331 = arith.constant 0 : index
    %c0_332 = arith.constant 0 : index
    %765 = vector.load %arg1[%c22_330, %c0_331, %c0_332] : memref<32x8x32xf32, #tpu.memory_space<vmem>>, vector<1x8x32xf32>
    %766 = vector.shape_cast %765 : vector<1x8x32xf32> to vector<8x32xf32>
    %c26_333 = arith.constant 26 : index
    %c0_334 = arith.constant 0 : index
    %c0_335 = arith.constant 0 : index
    %767 = vector.load %arg1[%c26_333, %c0_334, %c0_335] : memref<32x8x32xf32, #tpu.memory_space<vmem>>, vector<1x8x32xf32>
    %768 = vector.shape_cast %767 : vector<1x8x32xf32> to vector<8x32xf32>
    %c30_336 = arith.constant 30 : index
    %c0_337 = arith.constant 0 : index
    %c0_338 = arith.constant 0 : index
    %769 = vector.load %arg1[%c30_336, %c0_337, %c0_338] : memref<32x8x32xf32, #tpu.memory_space<vmem>>, vector<1x8x32xf32>
    %770 = vector.shape_cast %769 : vector<1x8x32xf32> to vector<8x32xf32>
    %cst_339 = arith.constant dense<0.000000e+00> : vector<8x8xf32>
    %771 = tpu.matmul %686, %764, %cst_339 {dimension_numbers = #tpu.dot_dimension_numbers<[1], [1], [0], [0], [0, 0, 1, 0], [], []>} : vector<8x32xf32>, vector<8x32xf32>, vector<8x8xf32> -> vector<8x8xf32>
    %772 = vector.extract_strided_slice %0 {offsets = [10, 0], sizes = [1, 32], strides = [1, 1]} : vector<22x64xf32> to vector<1x32xf32>
    %773 = vector.extract_strided_slice %772 {offsets = [0, 16], sizes = [1, 8], strides = [1, 1]} : vector<1x32xf32> to vector<1x8xf32>
    %774 = vector.broadcast %773 : vector<1x8xf32> to vector<8x8xf32>
    %775 = arith.addf %771, %774 : vector<8x8xf32>
    %cst_340 = arith.constant dense<0.000000e+00> : vector<8x8xf32>
    %776 = tpu.matmul %686, %766, %cst_340 {dimension_numbers = #tpu.dot_dimension_numbers<[1], [1], [0], [0], [0, 0, 1, 0], [], []>} : vector<8x32xf32>, vector<8x32xf32>, vector<8x8xf32> -> vector<8x8xf32>
    %777 = vector.extract_strided_slice %0 {offsets = [11, 0], sizes = [1, 32], strides = [1, 1]} : vector<22x64xf32> to vector<1x32xf32>
    %778 = vector.extract_strided_slice %777 {offsets = [0, 16], sizes = [1, 8], strides = [1, 1]} : vector<1x32xf32> to vector<1x8xf32>
    %779 = vector.broadcast %778 : vector<1x8xf32> to vector<8x8xf32>
    %780 = arith.addf %776, %779 : vector<8x8xf32>
    %cst_341 = arith.constant dense<0.000000e+00> : vector<8x8xf32>
    %781 = tpu.matmul %686, %768, %cst_341 {dimension_numbers = #tpu.dot_dimension_numbers<[1], [1], [0], [0], [0, 0, 1, 0], [], []>} : vector<8x32xf32>, vector<8x32xf32>, vector<8x8xf32> -> vector<8x8xf32>
    %782 = vector.extract_strided_slice %0 {offsets = [12, 0], sizes = [1, 32], strides = [1, 1]} : vector<22x64xf32> to vector<1x32xf32>
    %783 = vector.extract_strided_slice %782 {offsets = [0, 16], sizes = [1, 8], strides = [1, 1]} : vector<1x32xf32> to vector<1x8xf32>
    %784 = vector.broadcast %783 : vector<1x8xf32> to vector<8x8xf32>
    %785 = arith.addf %781, %784 : vector<8x8xf32>
    %cst_342 = arith.constant dense<0.000000e+00> : vector<8x8xf32>
    %786 = tpu.matmul %775, %780, %cst_342 {dimension_numbers = #tpu.dot_dimension_numbers<[1], [1], [0], [0], [0, 0, 1, 0], [], []>} : vector<8x8xf32>, vector<8x8xf32>, vector<8x8xf32> -> vector<8x8xf32>
    %cst_343 = arith.constant dense<0xFF800000> : vector<8xf32>
    %787 = vector.multi_reduction <maximumf>, %786, %cst_343 [1] : vector<8x8xf32> to vector<8xf32>
    %788 = vector.shape_cast %787 : vector<8xf32> to vector<8x1xf32>
    %789 = vector.broadcast %788 : vector<8x1xf32> to vector<8x8xf32>
    %790 = arith.subf %786, %789 : vector<8x8xf32>
    %791 = math.exp %790 : vector<8x8xf32>
    %cst_344 = arith.constant dense<0.000000e+00> : vector<8xf32>
    %792 = vector.multi_reduction <add>, %791, %cst_344 [1] : vector<8x8xf32> to vector<8xf32>
    %793 = vector.shape_cast %792 : vector<8xf32> to vector<8x1xf32>
    %794 = vector.broadcast %793 : vector<8x1xf32> to vector<8x8xf32>
    %795 = arith.divf %791, %794 : vector<8x8xf32>
    %796 = arith.addf %759, %795 : vector<8x8xf32>
    %cst_345 = arith.constant dense<0.000000e+00> : vector<8x8xf32>
    %797 = tpu.matmul %795, %785, %cst_345 {dimension_numbers = #tpu.dot_dimension_numbers<[1], [0], [0], [1], [0, 0, 1, 1], [], []>} : vector<8x8xf32>, vector<8x8xf32>, vector<8x8xf32> -> vector<8x8xf32>
    %cst_346 = arith.constant dense<0.000000e+00> : vector<8x32xf32>
    %798 = tpu.matmul %797, %770, %cst_346 {dimension_numbers = #tpu.dot_dimension_numbers<[1], [0], [0], [1], [0, 0, 1, 1], [], []>} : vector<8x8xf32>, vector<8x32xf32>, vector<8x32xf32> -> vector<8x32xf32>
    %799 = arith.addf %762, %798 : vector<8x32xf32>
    %c19_347 = arith.constant 19 : index
    %c0_348 = arith.constant 0 : index
    %c0_349 = arith.constant 0 : index
    %800 = vector.load %arg1[%c19_347, %c0_348, %c0_349] : memref<32x8x32xf32, #tpu.memory_space<vmem>>, vector<1x8x32xf32>
    %801 = vector.shape_cast %800 : vector<1x8x32xf32> to vector<8x32xf32>
    %c23_350 = arith.constant 23 : index
    %c0_351 = arith.constant 0 : index
    %c0_352 = arith.constant 0 : index
    %802 = vector.load %arg1[%c23_350, %c0_351, %c0_352] : memref<32x8x32xf32, #tpu.memory_space<vmem>>, vector<1x8x32xf32>
    %803 = vector.shape_cast %802 : vector<1x8x32xf32> to vector<8x32xf32>
    %c27_353 = arith.constant 27 : index
    %c0_354 = arith.constant 0 : index
    %c0_355 = arith.constant 0 : index
    %804 = vector.load %arg1[%c27_353, %c0_354, %c0_355] : memref<32x8x32xf32, #tpu.memory_space<vmem>>, vector<1x8x32xf32>
    %805 = vector.shape_cast %804 : vector<1x8x32xf32> to vector<8x32xf32>
    %c31_356 = arith.constant 31 : index
    %c0_357 = arith.constant 0 : index
    %c0_358 = arith.constant 0 : index
    %806 = vector.load %arg1[%c31_356, %c0_357, %c0_358] : memref<32x8x32xf32, #tpu.memory_space<vmem>>, vector<1x8x32xf32>
    %807 = vector.shape_cast %806 : vector<1x8x32xf32> to vector<8x32xf32>
    %cst_359 = arith.constant dense<0.000000e+00> : vector<8x8xf32>
    %808 = tpu.matmul %686, %801, %cst_359 {dimension_numbers = #tpu.dot_dimension_numbers<[1], [1], [0], [0], [0, 0, 1, 0], [], []>} : vector<8x32xf32>, vector<8x32xf32>, vector<8x8xf32> -> vector<8x8xf32>
    %809 = vector.extract_strided_slice %0 {offsets = [10, 0], sizes = [1, 32], strides = [1, 1]} : vector<22x64xf32> to vector<1x32xf32>
    %810 = vector.extract_strided_slice %809 {offsets = [0, 24], sizes = [1, 8], strides = [1, 1]} : vector<1x32xf32> to vector<1x8xf32>
    %811 = vector.broadcast %810 : vector<1x8xf32> to vector<8x8xf32>
    %812 = arith.addf %808, %811 : vector<8x8xf32>
    %cst_360 = arith.constant dense<0.000000e+00> : vector<8x8xf32>
    %813 = tpu.matmul %686, %803, %cst_360 {dimension_numbers = #tpu.dot_dimension_numbers<[1], [1], [0], [0], [0, 0, 1, 0], [], []>} : vector<8x32xf32>, vector<8x32xf32>, vector<8x8xf32> -> vector<8x8xf32>
    %814 = vector.extract_strided_slice %0 {offsets = [11, 0], sizes = [1, 32], strides = [1, 1]} : vector<22x64xf32> to vector<1x32xf32>
    %815 = vector.extract_strided_slice %814 {offsets = [0, 24], sizes = [1, 8], strides = [1, 1]} : vector<1x32xf32> to vector<1x8xf32>
    %816 = vector.broadcast %815 : vector<1x8xf32> to vector<8x8xf32>
    %817 = arith.addf %813, %816 : vector<8x8xf32>
    %cst_361 = arith.constant dense<0.000000e+00> : vector<8x8xf32>
    %818 = tpu.matmul %686, %805, %cst_361 {dimension_numbers = #tpu.dot_dimension_numbers<[1], [1], [0], [0], [0, 0, 1, 0], [], []>} : vector<8x32xf32>, vector<8x32xf32>, vector<8x8xf32> -> vector<8x8xf32>
    %819 = vector.extract_strided_slice %0 {offsets = [12, 0], sizes = [1, 32], strides = [1, 1]} : vector<22x64xf32> to vector<1x32xf32>
    %820 = vector.extract_strided_slice %819 {offsets = [0, 24], sizes = [1, 8], strides = [1, 1]} : vector<1x32xf32> to vector<1x8xf32>
    %821 = vector.broadcast %820 : vector<1x8xf32> to vector<8x8xf32>
    %822 = arith.addf %818, %821 : vector<8x8xf32>
    %cst_362 = arith.constant dense<0.000000e+00> : vector<8x8xf32>
    %823 = tpu.matmul %812, %817, %cst_362 {dimension_numbers = #tpu.dot_dimension_numbers<[1], [1], [0], [0], [0, 0, 1, 0], [], []>} : vector<8x8xf32>, vector<8x8xf32>, vector<8x8xf32> -> vector<8x8xf32>
    %cst_363 = arith.constant dense<0xFF800000> : vector<8xf32>
    %824 = vector.multi_reduction <maximumf>, %823, %cst_363 [1] : vector<8x8xf32> to vector<8xf32>
    %825 = vector.shape_cast %824 : vector<8xf32> to vector<8x1xf32>
    %826 = vector.broadcast %825 : vector<8x1xf32> to vector<8x8xf32>
    %827 = arith.subf %823, %826 : vector<8x8xf32>
    %828 = math.exp %827 : vector<8x8xf32>
    %cst_364 = arith.constant dense<0.000000e+00> : vector<8xf32>
    %829 = vector.multi_reduction <add>, %828, %cst_364 [1] : vector<8x8xf32> to vector<8xf32>
    %830 = vector.shape_cast %829 : vector<8xf32> to vector<8x1xf32>
    %831 = vector.broadcast %830 : vector<8x1xf32> to vector<8x8xf32>
    %832 = arith.divf %828, %831 : vector<8x8xf32>
    %833 = arith.addf %796, %832 : vector<8x8xf32>
    %cst_365 = arith.constant dense<0.000000e+00> : vector<8x8xf32>
    %834 = tpu.matmul %832, %822, %cst_365 {dimension_numbers = #tpu.dot_dimension_numbers<[1], [0], [0], [1], [0, 0, 1, 1], [], []>} : vector<8x8xf32>, vector<8x8xf32>, vector<8x8xf32> -> vector<8x8xf32>
    %cst_366 = arith.constant dense<0.000000e+00> : vector<8x32xf32>
    %835 = tpu.matmul %834, %807, %cst_366 {dimension_numbers = #tpu.dot_dimension_numbers<[1], [0], [0], [1], [0, 0, 1, 1], [], []>} : vector<8x8xf32>, vector<8x32xf32>, vector<8x32xf32> -> vector<8x32xf32>
    %836 = arith.addf %799, %835 : vector<8x32xf32>
    %837 = vector.extract_strided_slice %0 {offsets = [13, 0], sizes = [1, 32], strides = [1, 1]} : vector<22x64xf32> to vector<1x32xf32>
    %838 = vector.broadcast %837 : vector<1x32xf32> to vector<8x32xf32>
    %839 = arith.addf %836, %838 : vector<8x32xf32>
    %840 = arith.addf %686, %839 : vector<8x32xf32>
    %841 = vector.extract_strided_slice %0 {offsets = [16, 0], sizes = [1, 32], strides = [1, 1]} : vector<22x64xf32> to vector<1x32xf32>
    %842 = vector.extract_strided_slice %0 {offsets = [17, 0], sizes = [1, 32], strides = [1, 1]} : vector<22x64xf32> to vector<1x32xf32>
    %cst_367 = arith.constant dense<0.000000e+00> : vector<8xf32>
    %843 = vector.multi_reduction <add>, %840, %cst_367 [1] : vector<8x32xf32> to vector<8xf32>
    %844 = vector.shape_cast %843 : vector<8xf32> to vector<8x1xf32>
    %cst_368 = arith.constant 3.200000e+01 : f32
    %845 = vector.broadcast %cst_368 : f32 to vector<8x1xf32>
    %846 = arith.divf %844, %845 : vector<8x1xf32>
    %847 = vector.broadcast %846 : vector<8x1xf32> to vector<8x32xf32>
    %848 = arith.subf %840, %847 : vector<8x32xf32>
    %849 = arith.mulf %848, %848 : vector<8x32xf32>
    %cst_369 = arith.constant dense<0.000000e+00> : vector<8xf32>
    %850 = vector.multi_reduction <add>, %849, %cst_369 [1] : vector<8x32xf32> to vector<8xf32>
    %851 = vector.shape_cast %850 : vector<8xf32> to vector<8x1xf32>
    %cst_370 = arith.constant 3.200000e+01 : f32
    %852 = vector.broadcast %cst_370 : f32 to vector<8x1xf32>
    %853 = arith.divf %851, %852 : vector<8x1xf32>
    %854 = vector.broadcast %846 : vector<8x1xf32> to vector<8x32xf32>
    %855 = arith.subf %840, %854 : vector<8x32xf32>
    %cst_371 = arith.constant 9.99999974E-6 : f32
    %856 = vector.broadcast %cst_371 : f32 to vector<8x1xf32>
    %857 = arith.addf %853, %856 : vector<8x1xf32>
    %858 = math.rsqrt %857 : vector<8x1xf32>
    %859 = vector.broadcast %858 : vector<8x1xf32> to vector<8x32xf32>
    %860 = arith.mulf %855, %859 : vector<8x32xf32>
    %861 = vector.broadcast %841 : vector<1x32xf32> to vector<8x32xf32>
    %862 = arith.mulf %860, %861 : vector<8x32xf32>
    %863 = vector.broadcast %842 : vector<1x32xf32> to vector<8x32xf32>
    %864 = arith.addf %862, %863 : vector<8x32xf32>
    %c2_372 = arith.constant 2 : index
    %c0_373 = arith.constant 0 : index
    %c0_374 = arith.constant 0 : index
    %865 = vector.load %arg2[%c2_372, %c0_373, %c0_374] : memref<4x32x64xf32, #tpu.memory_space<vmem>>, vector<1x32x64xf32>
    %866 = vector.shape_cast %865 : vector<1x32x64xf32> to vector<32x64xf32>
    %c3_375 = arith.constant 3 : index
    %c0_376 = arith.constant 0 : index
    %c0_377 = arith.constant 0 : index
    %867 = vector.load %arg2[%c3_375, %c0_376, %c0_377] : memref<4x32x64xf32, #tpu.memory_space<vmem>>, vector<1x32x64xf32>
    %868 = vector.shape_cast %867 : vector<1x32x64xf32> to vector<32x64xf32>
    %cst_378 = arith.constant dense<0.000000e+00> : vector<8x64xf32>
    %869 = tpu.matmul %864, %866, %cst_378 {dimension_numbers = #tpu.dot_dimension_numbers<[1], [0], [0], [1], [0, 0, 1, 1], [], []>} : vector<8x32xf32>, vector<32x64xf32>, vector<8x64xf32> -> vector<8x64xf32>
    %870 = vector.extract_strided_slice %0 {offsets = [14, 0], sizes = [1, 64], strides = [1, 1]} : vector<22x64xf32> to vector<1x64xf32>
    %871 = vector.broadcast %870 : vector<1x64xf32> to vector<8x64xf32>
    %872 = arith.addf %869, %871 : vector<8x64xf32>
    %cst_379 = arith.constant 0.000000e+00 : f32
    %873 = vector.broadcast %cst_379 : f32 to vector<8x64xf32>
    %874 = arith.maximumf %872, %873 : vector<8x64xf32>
    %cst_380 = arith.constant dense<0.000000e+00> : vector<8x32xf32>
    %875 = tpu.matmul %874, %868, %cst_380 {dimension_numbers = #tpu.dot_dimension_numbers<[1], [1], [0], [0], [0, 0, 1, 0], [], []>} : vector<8x64xf32>, vector<32x64xf32>, vector<8x32xf32> -> vector<8x32xf32>
    %876 = vector.extract_strided_slice %0 {offsets = [15, 0], sizes = [1, 32], strides = [1, 1]} : vector<22x64xf32> to vector<1x32xf32>
    %877 = vector.broadcast %876 : vector<1x32xf32> to vector<8x32xf32>
    %878 = arith.addf %875, %877 : vector<8x32xf32>
    %879 = arith.addf %864, %878 : vector<8x32xf32>
    %880 = vector.extract_strided_slice %0 {offsets = [18, 0], sizes = [1, 32], strides = [1, 1]} : vector<22x64xf32> to vector<1x32xf32>
    %881 = vector.extract_strided_slice %0 {offsets = [19, 0], sizes = [1, 32], strides = [1, 1]} : vector<22x64xf32> to vector<1x32xf32>
    %cst_381 = arith.constant dense<0.000000e+00> : vector<8xf32>
    %882 = vector.multi_reduction <add>, %879, %cst_381 [1] : vector<8x32xf32> to vector<8xf32>
    %883 = vector.shape_cast %882 : vector<8xf32> to vector<8x1xf32>
    %cst_382 = arith.constant 3.200000e+01 : f32
    %884 = vector.broadcast %cst_382 : f32 to vector<8x1xf32>
    %885 = arith.divf %883, %884 : vector<8x1xf32>
    %886 = vector.broadcast %885 : vector<8x1xf32> to vector<8x32xf32>
    %887 = arith.subf %879, %886 : vector<8x32xf32>
    %888 = arith.mulf %887, %887 : vector<8x32xf32>
    %cst_383 = arith.constant dense<0.000000e+00> : vector<8xf32>
    %889 = vector.multi_reduction <add>, %888, %cst_383 [1] : vector<8x32xf32> to vector<8xf32>
    %890 = vector.shape_cast %889 : vector<8xf32> to vector<8x1xf32>
    %cst_384 = arith.constant 3.200000e+01 : f32
    %891 = vector.broadcast %cst_384 : f32 to vector<8x1xf32>
    %892 = arith.divf %890, %891 : vector<8x1xf32>
    %893 = vector.broadcast %885 : vector<8x1xf32> to vector<8x32xf32>
    %894 = arith.subf %879, %893 : vector<8x32xf32>
    %cst_385 = arith.constant 9.99999974E-6 : f32
    %895 = vector.broadcast %cst_385 : f32 to vector<8x1xf32>
    %896 = arith.addf %892, %895 : vector<8x1xf32>
    %897 = math.rsqrt %896 : vector<8x1xf32>
    %898 = vector.broadcast %897 : vector<8x1xf32> to vector<8x32xf32>
    %899 = arith.mulf %894, %898 : vector<8x32xf32>
    %900 = vector.broadcast %880 : vector<1x32xf32> to vector<8x32xf32>
    %901 = arith.mulf %899, %900 : vector<8x32xf32>
    %902 = vector.broadcast %881 : vector<1x32xf32> to vector<8x32xf32>
    %903 = arith.addf %901, %902 : vector<8x32xf32>
    %cst_386 = arith.constant 2.500000e-01 : f32
    %904 = vector.broadcast %cst_386 : f32 to vector<8x8xf32>
    %905 = arith.mulf %833, %904 : vector<8x8xf32>
    %906 = vector.extract_strided_slice %0 {offsets = [20, 0], sizes = [1, 32], strides = [1, 1]} : vector<22x64xf32> to vector<1x32xf32>
    %907 = vector.extract_strided_slice %0 {offsets = [21, 0], sizes = [1, 32], strides = [1, 1]} : vector<22x64xf32> to vector<1x32xf32>
    %cst_387 = arith.constant dense<0.000000e+00> : vector<8xf32>
    %908 = vector.multi_reduction <add>, %903, %cst_387 [1] : vector<8x32xf32> to vector<8xf32>
    %909 = vector.shape_cast %908 : vector<8xf32> to vector<8x1xf32>
    %cst_388 = arith.constant 3.200000e+01 : f32
    %910 = vector.broadcast %cst_388 : f32 to vector<8x1xf32>
    %911 = arith.divf %909, %910 : vector<8x1xf32>
    %912 = vector.broadcast %911 : vector<8x1xf32> to vector<8x32xf32>
    %913 = arith.subf %903, %912 : vector<8x32xf32>
    %914 = arith.mulf %913, %913 : vector<8x32xf32>
    %cst_389 = arith.constant dense<0.000000e+00> : vector<8xf32>
    %915 = vector.multi_reduction <add>, %914, %cst_389 [1] : vector<8x32xf32> to vector<8xf32>
    %916 = vector.shape_cast %915 : vector<8xf32> to vector<8x1xf32>
    %cst_390 = arith.constant 3.200000e+01 : f32
    %917 = vector.broadcast %cst_390 : f32 to vector<8x1xf32>
    %918 = arith.divf %916, %917 : vector<8x1xf32>
    %919 = vector.broadcast %911 : vector<8x1xf32> to vector<8x32xf32>
    %920 = arith.subf %903, %919 : vector<8x32xf32>
    %cst_391 = arith.constant 9.99999974E-6 : f32
    %921 = vector.broadcast %cst_391 : f32 to vector<8x1xf32>
    %922 = arith.addf %918, %921 : vector<8x1xf32>
    %923 = math.rsqrt %922 : vector<8x1xf32>
    %924 = vector.broadcast %923 : vector<8x1xf32> to vector<8x32xf32>
    %925 = arith.mulf %920, %924 : vector<8x32xf32>
    %926 = vector.broadcast %906 : vector<1x32xf32> to vector<8x32xf32>
    %927 = arith.mulf %925, %926 : vector<8x32xf32>
    %928 = vector.broadcast %907 : vector<1x32xf32> to vector<8x32xf32>
    %929 = arith.addf %927, %928 : vector<8x32xf32>
    %c0_392 = arith.constant 0 : index
    %c1_393 = arith.constant 1 : index
    %c0_394 = arith.constant 0 : index
    %930 = vector.load %arg4[%c0_392, %c1_393, %c0_394] : memref<8x2x32xf32, #tpu.memory_space<vmem>>, vector<8x1x32xf32>
    %931 = vector.shape_cast %930 : vector<8x1x32xf32> to vector<8x32xf32>
    %932 = vector.shape_cast %929 : vector<8x32xf32> to vector<8x1x32xf32>
    tpu.vector_store %arg4[%c0_392, %c1_393, %c0_394], %932 {strides = array<i32>} : memref<8x2x32xf32, #tpu.memory_space<vmem>>, vector<8x1x32xf32>,
    %c1_395 = arith.constant 1 : index
    %c0_396 = arith.constant 0 : index
    %c0_397 = arith.constant 0 : index
    %933 = vector.load %arg5[%c1_395, %c0_396, %c0_397] : memref<2x8x8xf32, #tpu.memory_space<vmem>>, vector<1x8x8xf32>
    %934 = vector.shape_cast %933 : vector<1x8x8xf32> to vector<8x8xf32>
    %935 = vector.shape_cast %905 : vector<8x8xf32> to vector<1x8x8xf32>
    tpu.vector_store %arg5[%c1_395, %c0_396, %c0_397], %935 {strides = array<i32>} : memref<2x8x8xf32, #tpu.memory_space<vmem>>, vector<1x8x8xf32>,
    return
  }
}

</mosaic_0001>

<bundles_post_ra>
// kernel: _lambda_.1
= control target key start
LH: loop header
LB: loop body
LE: loop exit
PB: predicated region body
PF: predicated region fallthrough
CT: control target
= control target key end

     0   :  { %11 = vsyncpa [#allocation3], 0  ;;  %s13205_s0 = inlined_call_operand.vmem [shape: f32[8,2,32], index: 0, kind: input, shape index: {}]   ;;  %s13206_s1 = inlined_call_operand.hbm [shape: f32[32,8,32], index: 1, kind: input, shape index: {}]   ;;  %s13207_s2 = inlined_call_operand.hbm [shape: f32[4,32,64], index: 2, kind: input, shape index: {}]   ;;  %s13208_s3 = inlined_call_operand.vmem [shape: f32[22,64], index: 3, kind: input, shape index: {}]   ;;  %s13209_s4 = inlined_call_operand.hbm [shape: f32[8,2,32], index: 4, kind: output, shape index: {0}]   ;;  %s13210_s5 = inlined_call_operand.hbm [shape: f32[2,8,8], index: 5, kind: output, shape index: {1}]  }
   0x1   :  { %12 = vsyncpa [#allocation6], 0 }
   0x2   :  { %13 = vsyncpa [#allocation4], 0 }
   0x3   :  { %14 = vsyncpa [#allocation9], 0  ;;  %s11188_s18 = smov [#allocation2]  }
   0x4   :  { %s22_s19 = sshll.u32 %s11188_s18, 4  ;;  %s23_s19 = int_to_ptr.vmem [resolvable:$true] %s22_s19 }
   0x5   :  { %s11108_s20 = scalar_lea.vmem %s23_s19, 4096  ;;  %p11113_p1 = scmp.lt.s32.totalorder %s23_s19, %s23_s19 }
   0x6   :  { %p11109_p0 = scmp.ne.s32.totalorder %s23_s19, %s11108_s20  ;;  %p11114_p2 = scmp.lt.s32.totalorder %s11108_s20, %s11108_s20 }
   0x8   :  { %p11115_p3 = por %p11114_p2, %p11113_p1 }
   0xa   :  { %p11116_p4 = pnand %p11115_p3, %p11109_p0 }
   0xc   :  { %11119 = shalt.err (!%p11116_p4)
}
   0xd   :  { %s11189_s21 = smov 128   ;;  %s11190_s22 = smov 8  }
   0xe   :  { %28 = dma.hbm_to_vmem [thread:$0]  %s13206_s1, 4096, %s23_s19, [#allocation3], %s11189_s21, %s11189_s21, %s11190_s22  }
   0xf   :  { %s11191_s25 = smov [#allocation5]  }
  0x10   :  { %s34_s26 = sshll.u32 %s11191_s25, 4  ;;  %s35_s26 = int_to_ptr.vmem [resolvable:$true] %s34_s26 }
  0x11   :  { %s11128_s27 = scalar_lea.vmem %s35_s26, 2048  ;;  %p11133_p6 = scmp.lt.s32.totalorder %s35_s26, %s35_s26 }
  0x12   :  { %p11129_p5 = scmp.ne.s32.totalorder %s35_s26, %s11128_s27  ;;  %p11134_p7 = scmp.lt.s32.totalorder %s11128_s27, %s11128_s27 }
  0x14   :  { %p11135_p8 = por %p11134_p7, %p11133_p6 }
  0x16   :  { %p11136_p9 = pnand %p11135_p8, %p11129_p5 }
  0x18   :  { %11139 = shalt.err (!%p11136_p9)
}
  0x19   :  { %40 = dma.hbm_to_vmem [thread:$0]  %s13207_s2, 2048, %s35_s26, [#allocation6], %s11189_s21, %s11189_s21, %s11190_s22  }
  0x1a   :  { %11180 = dma.done.wait [#allocation3], 4096  }
  0x1b   :  { %11181 = vsyncadd [#allocation3], 4294963200 }
  0x1c   :  { %11182 = dma.done.wait [#allocation6], 2048  }
  0x1d   :  { %11183 = vsyncadd [#allocation6], 4294965248  ;;  %v13213_v0 = vmov 0.0   ;;  %vm11193_vm0 = vmmov 0   ;;  %vm100_vm1 = vcmask 261120   ;;  %v60_v1 = vld [vmem:[#allocation2] sm:$0xff]  ;;  %v67_v26 = vlaneseq }
  0x1e   :  { %10415 = vmatprep.subr.mxu0 %v13213_v0  ;;  %10417 = vmatprep.mubr.msk.f32.mxu0 %vm11193_vm0, %v13213_v0  ;;  %v11252_v2 = vld [vmem:[%s13205_s0 + $0x2] sm:$0x3]  ;;  %v11258_v3 = vld [vmem:[%s13205_s0 + $0x4] sm:$0x3]  ;;  %v11263_v4 = vld [vmem:[%s13205_s0 + $0x6] sm:$0x3] }
  0x1f   :  { %10430 = vmatprep.subr.mxu1 %v13213_v0  ;;  %10432 = vmatprep.mubr.msk.f32.mxu1 %vm11193_vm0, %v13213_v0  ;;  %v11268_v5 = vld [vmem:[%s13205_s0 + $0x8] sm:$0x3]  ;;  %v11273_v6 = vld [vmem:[%s13205_s0] sm:$0x3]  ;;  %v11278_v7 = vld [vmem:[%s13205_s0 + $0xa] sm:$0x3] }
  0x20   :  { %10416 = vmatpush3.xpose.msk.msra.mxu0 %vm100_vm1, %v60_v1  ;;  %vm80_vm2 = vcmask 1041409   ;;  %v11284_v8 = vld [vmem:[%s13205_s0 + $0xc] sm:$0x3]  ;;  %v79_v9 = vrot.slane %v11252_v2, 7  ;;  %v82_v10 = vrot.slane %v11258_v3, 6  ;;  %vm83_vm3 = vcmask 1042434  }
  0x21   :  { %10420 = vmatprep.subr.mxu0 %v13213_v0  ;;  %v85_v11 = vrot.slane %v11263_v4, 5  ;;  %v11292_v12 = vld [vmem:[%s13205_s0 + $0xe] sm:$0x3]  ;;  %vm86_vm4 = vcmask 1043459   ;;  %v88_v13 = vrot.slane %v11268_v5, 4  ;;  %vm89_vm5 = vcmask 1044484  }
  0x22   :  { %v81_v14 = vsel %vm80_vm2, %v79_v9, %v11273_v6  ;;  %v91_v15 = vrot.slane %v11278_v7, 3  ;;  %vm92_vm6 = vcmask 1045509   ;;  %v94_v17 = vrot.slane %v11284_v8, 2  ;;  %v62_v23 = vld [vmem:[#allocation2 + $0x20] sm:$0xff]  ;;  %s11194_s23 = smov 120   ;;  %v492_v47 = vld [vmem:[#allocation2 + $0x8] sm:$0xff] }
  0x23   :  { %v84_v16 = vsel %vm83_vm3, %v82_v10, %v81_v14  ;;  %vm95_vm7 = vcmask 1046534   ;;  %v97_v19 = vrot.slane %v11292_v12, 1  ;;  %vm98_vm8 = vcmask 1047559   ;;  %v64_v25 = vld [vmem:[#allocation2 + $0x40] sm:$0xff]  ;;  %v494_v51 = vld [vmem:[#allocation2 + $0x28] sm:$0xff]  ;;  %s11195_s24 = smov 112  }
  0x24   :  { %v87_v18 = vsel %vm86_vm4, %v85_v11, %v84_v16  ;;  %v11324_v27 = vshrl.u32 %v67_v26, 7  ;;  %v11332_v29 = vld [vmem:[%s13208_s3] sm:$0xff]  ;;  %vm330_vm9 = vcmask 64512   ;;  %v496_v56 = vld [vmem:[#allocation2 + $0x48] sm:$0xff]  ;;  %s11196_s25 = smov 104   ;;  %vm2254_vm10 = vcmask 523264  }
  0x25   :  { %v90_v20 = vsel %vm89_vm5, %v88_v13, %v87_v18  ;;  %vm6972_vm11 = vcmask 261121   ;;  %vm5072_vm12 = vcmask 253952  }
  0x26   :  { %v93_v21 = vsel %vm92_vm6, %v91_v15, %v90_v20  ;;  %v11327_v28 = vsub.s32 1, %v11324_v27  ;;  %v11335_v30 = vsub.s32 0, %v11324_v27  ;;  %v11356_v42 = vsub.s32 2, %v11324_v27 }
  0x27   :  { %v96_v22 = vsel %vm95_vm7, %v94_v17, %v93_v21  ;;  %v66_v21 = vld [vmem:[#allocation2 + $0x60] sm:$0xff] }
  0x28   :  { %v11306_v24 = vsel %vm98_vm8, %v97_v19, %v96_v22  ;;  %v11339_v32 = vrot.slane %v11332_v29, %v11327_v28  ;;  %v11343_v34 = vrot.slane %v11332_v29, %v11335_v30  ;;  %13224 = vst [vmem:[#allocation14_spill] sm:$0xff] %v11356_v42  ;;  %v11360_v43 = vrot.slane %v11332_v29, %v11356_v42 }
  0x29   :  { %10418 = vmatmul.mubr.msk.f32.vlgmr.msra.gmra.mxu0 %vm100_vm1, %v11306_v24 }
  0x2a   :  { %10421 = vmatpush3.xpose.msk.msra.mxu0 %vm100_vm1, %v62_v23  ;;  %10422 = vmatprep.mubr.msk.f32.mxu0 %vm11193_vm0, %v13213_v0 }
  0x2b   :  { %10425 = vmatprep.subr.mxu0 %v13213_v0  ;;  %500 = vrot.lane.b32.xlu1 %v11343_v34, %s11194_s23 }
  0x2d   :  { %10423 = vmatmul.mubr.msk.f32.vlgmr.msra.gmra.mxu0 %vm100_vm1, %v11306_v24 }
  0x2e   :  { %10427 = vmatprep.mubr.msk.f32.mxu0 %vm11193_vm0, %v13213_v0  ;;  %10426 = vmatpush3.xpose.msk.msra.mxu0 %vm100_vm1, %v64_v25 }
  0x2f   :  { %10435 = vmatprep.subr.mxu0 %v13213_v0 }
  0x31   :  { %10428 = vmatmul.mubr.msk.f32.vlgmr.msra.gmra.mxu0 %vm100_vm1, %v11306_v24 }
  0x32   :  { %10437 = vmatprep.mubr.msk.f32.mxu0 %vm11193_vm0, %v13213_v0 }
  0x9d   :  { %v11390_v59 = vpop.permute.xlu1 %500 }
  0xe9   :  { %v172_v31 = vpop.f32.mrf.mxu0 }
  0xea   :  { %v173_v38 = vadd.f32 %v172_v31, %v11343_v34  ;;  %v1039_v31 = vld [vmem:[#allocation2 + $0x30] sm:$0xff] }
  0xeb   :  { %v10419_v33 = vpop.f32.mrf.mxu0 }
  0xec   :  { %v498_v33 = vld [vmem:[#allocation2 + $0x68] sm:$0xff] }
  0xed   :  { %v249_v35 = vpop.f32.mrf.mxu0 }
  0xee   :  { %v250_v36 = vadd.f32 %v249_v35, %v11339_v32 }
  0xef   :  { %v10424_v37 = vpop.f32.mrf.mxu0 }
  0xf0   :  { %10431 = vmatpush3.xpose.msk.msra.mxu1 %vm330_vm9, %v250_v36 }
  0xf1   :  { %10440 = vmatprep.subr.mxu1 %v13213_v0  ;;  %v326_v44 = vpop.f32.mrf.mxu0 }
  0xf2   :  { %v327_v45 = vadd.f32 %v326_v44, %v11360_v43 }
  0xf3   :  { %10433 = vmatmul.mubr.msk.f32.vlgmr.msra.gmra.mxu1 %vm330_vm9, %v173_v38  ;;  %v10429_v46 = vpop.f32.mrf.mxu0 }
  0xf4   :  { %10442 = vmatprep.mubr.msk.f32.mxu1 %vm11193_vm0, %v13213_v0  ;;  %10436 = vmatpush3.msra.mxu0 %v327_v45 }
  0xf5   :  { %10445 = vmatprep.subr.mxu0 %v13213_v0  ;;  %10441 = vmatpush3.xpose.msk.msra.mxu1 %vm100_vm1, %v492_v47 }
  0xf6   :  { %10450 = vmatprep.subr.mxu1 %v13213_v0 }
  0xf8   :  { %10443 = vmatmul.mubr.msk.f32.vlgmr.msra.gmra.mxu1 %vm100_vm1, %v11306_v24 }
  0xf9   :  { %10452 = vmatprep.mubr.msk.f32.mxu1 %vm11193_vm0, %v13213_v0  ;;  %10451 = vmatpush3.xpose.msk.msra.mxu1 %vm100_vm1, %v496_v56 }
  0xfa   :  { %10460 = vmatprep.subr.mxu1 %v13213_v0 }
  0xfc   :  { %10453 = vmatmul.mubr.msk.f32.vlgmr.msra.gmra.mxu1 %vm100_vm1, %v11306_v24 }
  0xfd   :  { %10462 = vmatprep.mubr.msk.f32.mxu1 %vm11193_vm0, %v13213_v0 }
 0x1b3   :  { %v403_v39 = vpop.f32.mrf.mxu1 }
 0x1b4   :  { %v407_v40 = vsel %vm330_vm9, %v403_v39, -inf }
 0x1b5   :  { %408 = vmax.xlane.f32.xlu0 %v407_v40  ;;  %v10434_v41 = vpop.f32.mrf.mxu1 }
 0x1b8   :  { %v572_v54 = vpop.f32.mrf.mxu1 }
 0x1b9   :  { %v573_v1 = vadd.f32 %v572_v54, %v11390_v59 }
 0x1ba   :  { %v10444_v55 = vpop.f32.mrf.mxu1 }
 0x1bc   :  { %v726_v14 = vpop.f32.mrf.mxu1 }
 0x1be   :  { %v10454_v16 = vpop.f32.mrf.mxu1 }
 0x1bf   :  { %v1043_v16 = vld [vmem:[#allocation2 + $0x70] sm:$0xff] }
 0x1cb   :  { %577 = vrot.lane.b32.xlu0 %v11339_v32, %s11194_s23 }
 0x1cf   :  { %654 = vrot.lane.b32.xlu0 %v11360_v43, %s11194_s23 }
 0x23e   :  { %v409_v48 = vpop.xlane.xlu0 %408 }
 0x23f   :  { %v410_v49 = vsub.f32 %v403_v39, %v409_v48  ;;  %v1037_v39 = vld [vmem:[#allocation2 + $0x10] sm:$0xff] }
 0x241   :  { %v411_v50 = vmul.f32 1.442695, %v410_v49  ;;  %v1041_v49 = vld [vmem:[#allocation2 + $0x50] sm:$0xff] }
 0x242   :  { %v11392_v60 = vpop.permute.xlu0 %577 }
 0x243   :  { %10996 = vpow2.f32 %v411_v50 }
 0x246   :  { %v11402_v13 = vpop.permute.xlu0 %654 }
 0x247   :  { %v727_v15 = vadd.f32 %v726_v14, %v11402_v13 }
 0x249   :  { %10461 = vmatpush3.msra.mxu1 %v727_v15 }
 0x24a   :  { %10470 = vmatprep.subr.mxu1 %v13213_v0 }
 0x250   :  { %v10997_v52 = vpop.eup %10996 }
 0x251   :  { %10438 = vmatmul.mubr.msk.f32.vlgmr.msra.gmra.mxu0 %vm330_vm9, %v10997_v52  ;;  %v413_v53 = vsel %vm330_vm9, %v10997_v52, 0.0 }
 0x252   :  { %10446 = vmatpush3.xpose.msk.msra.mxu0 %vm100_vm1, %v494_v51  ;;  %414 = vadd.xlane.f32.xlu0 %v413_v53 }
 0x253   :  { %10447 = vmatprep.mubr.msk.f32.mxu0 %vm11193_vm0, %v13213_v0  ;;  %10455 = vmatprep.subr.mxu0 %v13213_v0 }
 0x255   :  { %10448 = vmatmul.mubr.msk.f32.vlgmr.msra.gmra.mxu0 %vm100_vm1, %v11306_v24 }
 0x256   :  { %10457 = vmatprep.mubr.msk.f32.mxu0 %vm11193_vm0, %v13213_v0 }
 0x268   :  { %1044 = vrot.lane.b32.xlu0 %v11343_v34, %s11195_s24 }
 0x26c   :  { %1196 = vrot.lane.b32.xlu0 %v11360_v43, %s11195_s24 }
 0x2db   :  { %v415_v20 = vpop.xlane.xlu0 %414 }
 0x2df   :  { %v11449_v52 = vpop.permute.xlu0 %1044 }
 0x311   :  { %v485_v57 = vpop.f32.mrf.mxu0 }
 0x313   :  { %v10439_v58 = vpop.f32.mrf.mxu0 }
 0x315   :  { %v649_v61 = vpop.f32.mrf.mxu0 }
 0x316   :  { %v650_v62 = vadd.f32 %v649_v61, %v11392_v60 }
 0x317   :  { %v10449_v63 = vpop.f32.mrf.mxu0 }
 0x318   :  { %10456 = vmatpush3.xpose.msk.msra.mxu0 %vm330_vm9, %v650_v62  ;;  %v11456_v62 = vpop.permute.xlu0 %1196 }
 0x319   :  { %10465 = vmatprep.subr.mxu0 %v13213_v0 }
 0x31b   :  { %10458 = vmatmul.mubr.msk.f32.vlgmr.msra.gmra.mxu0 %vm330_vm9, %v573_v1 }
 0x31c   :  { %10467 = vmatprep.mubr.msk.f32.mxu0 %vm11193_vm0, %v13213_v0  ;;  %10466 = vmatpush3.msra.mxu0 %v498_v33 }
 0x31d   :  { %10475 = vmatprep.subr.mxu0 %v13213_v0 }
 0x3db   :  { %v802_v9 = vpop.f32.mrf.mxu0 }
 0x3dc   :  { %v806_v10 = vsel %vm330_vm9, %v802_v9, -inf }
 0x3dd   :  { %807 = vmax.xlane.f32.xlu1 %v806_v10  ;;  %v10459_v11 = vpop.f32.mrf.mxu0 }
 0x466   :  { %v808_v17 = vpop.xlane.xlu1 %807 }
 0x467   :  { %v809_v18 = vsub.f32 %v802_v9, %v808_v17  ;;  %v1507_v17 = vld [vmem:[#allocation2 + $0x18] sm:$0xff] }
 0x469   :  { %v810_v19 = vmul.f32 1.442695, %v809_v18 }
 0x46b   :  { %10998 = vpow2.f32 %v810_v19 }
 0x46c   :  { %11000 = vrcp.f32 %v415_v20 }
 0x478   :  { %v10999_v22 = vpop.eup %10998 }
 0x479   :  { %10463 = vmatmul.mubr.msk.f32.vlgmr.msra.gmra.mxu1 %vm330_vm9, %v10999_v22  ;;  %v812_v23 = vsel %vm330_vm9, %v10999_v22, 0.0  ;;  %v11001_v25 = vpop.eup %11000  ;;  %v1509_v22 = vld [vmem:[#allocation2 + $0x38] sm:$0xff] }
 0x47a   :  { %813 = vadd.xlane.f32.xlu1 %v812_v23  ;;  %10471 = vmatpush3.msra.mxu1 %v66_v21  ;;  %v490_v26 = vmul.f32 %v11001_v25, %v485_v57 }
 0x47b   :  { %10472 = vmatprep.mubr.msk.f32.mxu1 %vm11193_vm0, %v13213_v0  ;;  %10480 = vmatprep.subr.mxu1 %v13213_v0 }
 0x47d   :  { %10473 = vmatmul.mubr.msk.f32.vlgmr.msra.gmra.mxu1 %vm330_vm9, %v490_v26 }
 0x47e   :  { %10482 = vmatprep.mubr.msk.f32.mxu1 %vm11193_vm0, %v13213_v0  ;;  %10481 = vmatpush3.xpose.msk.msra.mxu1 %vm100_vm1, %v1039_v31  ;;  %v1511_v31 = vld [vmem:[#allocation2 + $0x58] sm:$0xff] }
 0x47f   :  { %10490 = vmatprep.subr.mxu1 %v13213_v0 }
 0x481   :  { %10483 = vmatmul.mubr.msk.f32.vlgmr.msra.gmra.mxu1 %vm100_vm1, %v11306_v24 }
 0x482   :  { %10492 = vmatprep.mubr.msk.f32.mxu1 %vm11193_vm0, %v13213_v0 }
 0x48b   :  { %1120 = vrot.lane.b32.xlu1 %v11339_v32, %s11195_s24 }
 0x503   :  { %v814_v35 = vpop.xlane.xlu1 %813 }
 0x504   :  { %11002 = vrcp.f32 %v814_v35 }
 0x507   :  { %v11438_v47 = vpop.permute.xlu1 %1120 }
 0x511   :  { %v11003_v36 = vpop.eup %11002 }
 0x539   :  { %v884_v37 = vpop.f32.mrf.mxu1 }
 0x53a   :  { %v889_v38 = vmul.f32 %v11003_v36, %v884_v37 }
 0x53b   :  { %v10464_v40 = vpop.f32.mrf.mxu1 }
 0x53c   :  { %10468 = vmatmul.mubr.msk.f32.vlgmr.msra.gmra.mxu0 %vm330_vm9, %v889_v38 }
 0x53d   :  { %v11428_v41 = vpop.f32.mrf.mxu1  ;;  %10476 = vmatpush3.xpose.msk.msra.mxu0 %vm100_vm1, %v1037_v39  ;;  %10477 = vmatprep.mubr.msk.f32.mxu0 %vm11193_vm0, %v13213_v0 }
 0x53e   :  { %10485 = vmatprep.subr.mxu0 %v13213_v0 }
 0x53f   :  { %v10474_v44 = vpop.f32.mrf.mxu1 }
 0x540   :  { %10478 = vmatmul.mubr.msk.f32.vlgmr.msra.gmra.mxu0 %vm100_vm1, %v11306_v24 }
 0x541   :  { %10487 = vmatprep.mubr.msk.f32.mxu0 %vm11193_vm0, %v13213_v0  ;;  %v1192_v45 = vpop.f32.mrf.mxu1  ;;  %10486 = vmatpush3.xpose.msk.msra.mxu0 %vm100_vm1, %v1041_v49 }
 0x542   :  { %v1193_v48 = vadd.f32 %v1192_v45, %v11438_v47  ;;  %10495 = vmatprep.subr.mxu0 %v13213_v0 }
 0x543   :  { %v10484_v46 = vpop.f32.mrf.mxu1 }
 0x544   :  { %10491 = vmatpush3.xpose.msk.msra.mxu1 %vm330_vm9, %v1193_v48  ;;  %10488 = vmatmul.mubr.msk.f32.vlgmr.msra.gmra.mxu0 %vm100_vm1, %v11306_v24 }
 0x545   :  { %10500 = vmatprep.subr.mxu1 %v13213_v0  ;;  %10497 = vmatprep.mubr.msk.f32.mxu0 %vm11193_vm0, %v13213_v0 }
 0x5fc   :  { %v959_v50 = vpop.f32.mrf.mxu0 }
 0x5fd   :  { %v1033_v35 = vadd.f32 %v11428_v41, %v959_v50 }
 0x5fe   :  { %v10469_v51 = vpop.f32.mrf.mxu0 }
 0x600   :  { %v1116_v53 = vpop.f32.mrf.mxu0 }
 0x601   :  { %v1117_v54 = vadd.f32 %v1116_v53, %v11449_v52 }
 0x602   :  { %v10479_v55 = vpop.f32.mrf.mxu0 }
 0x603   :  { %10493 = vmatmul.mubr.msk.f32.vlgmr.msra.gmra.mxu1 %vm330_vm9, %v1117_v54 }
 0x604   :  { %10502 = vmatprep.mubr.msk.f32.mxu1 %vm11193_vm0, %v13213_v0  ;;  %v1268_v61 = vpop.f32.mrf.mxu0  ;;  %10501 = vmatpush3.msra.mxu1 %v1043_v16 }
 0x605   :  { %v1269_v63 = vadd.f32 %v1268_v61, %v11456_v62  ;;  %10510 = vmatprep.subr.mxu1 %v13213_v0  ;;  %v1513_v61 = vld [vmem:[#allocation2 + $0x78] sm:$0xff] }
 0x606   :  { %v10489_v1 = vpop.f32.mrf.mxu0 }
 0x607   :  { %10496 = vmatpush3.msra.mxu0 %v1269_v63 }
 0x608   :  { %10505 = vmatprep.subr.mxu0 %v13213_v0 }
 0x6c3   :  { %v1344_v56 = vpop.f32.mrf.mxu1 }
 0x6c4   :  { %v1348_v57 = vsel %vm330_vm9, %v1344_v56, -inf }
 0x6c5   :  { %1349 = vmax.xlane.f32.xlu1 %v1348_v57  ;;  %v10494_v58 = vpop.f32.mrf.mxu1 }
 0x6d6   :  { %1590 = vrot.lane.b32.xlu1 %v11339_v32, %s11196_s25 }
 0x6da   :  { %1514 = vrot.lane.b32.xlu1 %v11343_v34, %s11196_s25 }
 0x6de   :  { %1666 = vrot.lane.b32.xlu1 %v11360_v43, %s11196_s25 }
 0x74e   :  { %v1350_v9 = vpop.xlane.xlu1 %1349 }
 0x74f   :  { %v1351_v10 = vsub.f32 %v1344_v56, %v1350_v9 }
 0x751   :  { %v1352_v11 = vmul.f32 1.442695, %v1351_v10 }
 0x752   :  { %v11492_v33 = vpop.permute.xlu1 %1590 }
 0x753   :  { %11004 = vpow2.f32 %v1352_v11 }
 0x756   :  { %v11495_v39 = vpop.permute.xlu1 %1514 }
 0x75a   :  { %v11505_v50 = vpop.permute.xlu1 %1666 }
 0x760   :  { %v11005_v14 = vpop.eup %11004 }
 0x761   :  { %10498 = vmatmul.mubr.msk.f32.vlgmr.msra.gmra.mxu0 %vm330_vm9, %v11005_v14  ;;  %v1354_v15 = vsel %vm330_vm9, %v11005_v14, 0.0  ;;  %v11518_v14 = vsub.s32 3, %v11324_v27 }
 0x762   :  { %1355 = vadd.xlane.f32.xlu0 %v1354_v15  ;;  %10507 = vmatprep.mubr.msk.f32.mxu0 %vm11193_vm0, %v13213_v0 }
 0x763   :  { %10506 = vmatpush3.xpose.msk.msra.mxu0 %vm100_vm1, %v1507_v17  ;;  %13225 = vst [vmem:[#allocation15_spill] sm:$0xff] %v11518_v14  ;;  %v11522_v15 = vrot.slane %v11332_v29, %v11518_v14 }
 0x764   :  { %10515 = vmatprep.subr.mxu0 %v13213_v0 }
 0x766   :  { %10508 = vmatmul.mubr.msk.f32.vlgmr.msra.gmra.mxu0 %vm100_vm1, %v11306_v24 }
 0x767   :  { %10517 = vmatprep.mubr.msk.f32.mxu0 %vm11193_vm0, %v13213_v0  ;;  %10516 = vmatpush3.xpose.msk.msra.mxu0 %vm100_vm1, %v1511_v31 }
 0x768   :  { %10525 = vmatprep.subr.mxu0 %v13213_v0 }
 0x76a   :  { %10518 = vmatmul.mubr.msk.f32.vlgmr.msra.gmra.mxu0 %vm100_vm1, %v11306_v24 }
 0x76b   :  { %10527 = vmatprep.mubr.msk.f32.mxu0 %vm11193_vm0, %v13213_v0 }
 0x7eb   :  { %v1356_v18 = vpop.xlane.xlu0 %1355 }
 0x7ec   :  { %11006 = vrcp.f32 %v1356_v18 }
 0x7f9   :  { %v11007_v19 = vpop.eup %11006 }
 0x821   :  { %v1426_v20 = vpop.f32.mrf.mxu0 }
 0x822   :  { %v1431_v21 = vmul.f32 %v11007_v19, %v1426_v20 }
 0x823   :  { %v10499_v23 = vpop.f32.mrf.mxu0 }
 0x824   :  { %10503 = vmatmul.mubr.msk.f32.vlgmr.msra.gmra.mxu1 %vm330_vm9, %v1431_v21 }
 0x825   :  { %10511 = vmatpush3.xpose.msk.msra.mxu1 %vm100_vm1, %v1509_v22  ;;  %10512 = vmatprep.mubr.msk.f32.mxu1 %vm11193_vm0, %v13213_v0 }
 0x826   :  { %10520 = vmatprep.subr.mxu1 %v13213_v0  ;;  %v1586_v25 = vpop.f32.mrf.mxu0 }
 0x827   :  { %v1587_v46 = vadd.f32 %v1586_v25, %v11495_v39 }
 0x828   :  { %10513 = vmatmul.mubr.msk.f32.vlgmr.msra.gmra.mxu1 %vm100_vm1, %v11306_v24  ;;  %v10509_v26 = vpop.f32.mrf.mxu0 }
 0x829   :  { %10522 = vmatprep.mubr.msk.f32.mxu1 %vm11193_vm0, %v13213_v0 }
 0x82a   :  { %v1738_v49 = vpop.f32.mrf.mxu0 }
 0x82b   :  { %v1739_v51 = vadd.f32 %v1738_v49, %v11505_v50 }
 0x82c   :  { %v10519_v53 = vpop.f32.mrf.mxu0 }
 0x82d   :  { %10526 = vmatpush3.msra.mxu0 %v1739_v51 }
 0x82e   :  { %10535 = vmatprep.subr.mxu0 %v13213_v0 }
 0x8e4   :  { %v1501_v36 = vpop.f32.mrf.mxu1 }
 0x8e5   :  { %v1505_v37 = vadd.f32 %v1501_v36, %v1033_v35 }
 0x8e6   :  { %v10504_v38 = vpop.f32.mrf.mxu1 }
 0x8e8   :  { %v1662_v40 = vpop.f32.mrf.mxu1 }
 0x8e9   :  { %v1663_v44 = vadd.f32 %v1662_v40, %v11492_v33 }
 0x8ea   :  { %v10514_v45 = vpop.f32.mrf.mxu1 }
 0x8eb   :  { %10521 = vmatpush3.xpose.msk.msra.mxu1 %vm330_vm9, %v1663_v44 }
 0x8ec   :  { %10530 = vmatprep.subr.mxu1 %v13213_v0 }
 0x8ee   :  { %10523 = vmatmul.mubr.msk.f32.vlgmr.msra.gmra.mxu1 %vm330_vm9, %v1587_v46 }
 0x8ef   :  { %10532 = vmatprep.mubr.msk.f32.mxu1 %vm11193_vm0, %v13213_v0  ;;  %10531 = vmatpush3.msra.mxu1 %v1513_v61 }
 0x8f0   :  { %10546 = vmatprep.subr.mxu1 %v13213_v0 }
 0x9ae   :  { %v1814_v24 = vpop.f32.mrf.mxu1 }
 0x9af   :  { %v1818_v41 = vsel %vm330_vm9, %v1814_v24, -inf }
 0x9b0   :  { %1819 = vmax.xlane.f32.xlu0 %v1818_v41  ;;  %v10524_v48 = vpop.f32.mrf.mxu1 }
 0xa39   :  { %v1820_v54 = vpop.xlane.xlu0 %1819 }
 0xa3a   :  { %v1821_v55 = vsub.f32 %v1814_v24, %v1820_v54 }
 0xa3c   :  { %v1822_v56 = vmul.f32 1.442695, %v1821_v55 }
 0xa3e   :  { %11008 = vpow2.f32 %v1822_v56 }
 0xa4b   :  { %v11009_v57 = vpop.eup %11008 }
 0xa4c   :  { %10528 = vmatmul.mubr.msk.f32.vlgmr.msra.gmra.mxu0 %vm330_vm9, %v11009_v57  ;;  %v1824_v58 = vsel %vm330_vm9, %v11009_v57, 0.0 }
 0xa4d   :  { %1825 = vadd.xlane.f32.xlu0 %v1824_v58  ;;  %10543 = vmatprep.mubr.msk.f32.mxu0 %vm11193_vm0, %v13213_v0 }
 0xad6   :  { %v1826_v63 = vpop.xlane.xlu0 %1825 }
 0xad7   :  { %11010 = vrcp.f32 %v1826_v63 }
 0xae4   :  { %v11011_v1 = vpop.eup %11010 }
 0xb0c   :  { %v1896_v9 = vpop.f32.mrf.mxu0 }
 0xb0d   :  { %v1901_v10 = vmul.f32 %v11011_v1, %v1896_v9 }
 0xb0e   :  { %v10529_v11 = vpop.f32.mrf.mxu0 }
 0xb0f   :  { %10533 = vmatmul.mubr.msk.f32.vlgmr.msra.gmra.mxu1 %vm330_vm9, %v1901_v10 }
 0xb10   :  { %10554 = vmatprep.mubr.msk.f32.mxu1 %vm11193_vm0, %v13213_v0 }
 0xbcf   :  { %v1971_v16 = vpop.f32.mrf.mxu1 }
 0xbd0   :  { %v1975_v17 = vadd.f32 %v1971_v16, %v1505_v37 }
 0xbd1   :  { %v10534_v18 = vpop.f32.mrf.mxu1 }
 0xbd2   :  { %v1980_v19 = vadd.f32 %v11522_v15, %v1975_v17 }
 0xbd4   :  { %v1982_v20 = vrot.slane %v1980_v19, 1  ;;  %v1983_v21 = vrot.slane %v1980_v19, 2  ;;  %v1984_v22 = vrot.slane %v1980_v19, 3  ;;  %v1985_v23 = vrot.slane %v1980_v19, 4 }
 0xbd5   :  { %v1986_v25 = vrot.slane %v1980_v19, 5  ;;  %v1987_v26 = vrot.slane %v1980_v19, 6  ;;  %v1988_v31 = vrot.slane %v1980_v19, 7  ;;  %v1997_v37 = vadd.f32 %v1980_v19, %v11273_v6 }
 0xbd6   :  { %v1998_v35 = vadd.f32 %v1982_v20, %v11252_v2  ;;  %v1999_v36 = vadd.f32 %v1983_v21, %v11258_v3  ;;  %v2000_v38 = vadd.f32 %v1984_v22, %v11263_v4  ;;  %v2001_v40 = vadd.f32 %v1985_v23, %v11268_v5 }
 0xbd7   :  { %v2002_v44 = vadd.f32 %v1986_v25, %v11278_v7  ;;  %v2003_v24 = vadd.f32 %v1987_v26, %v11284_v8  ;;  %v2004_v41 = vadd.f32 %v1988_v31, %v11292_v12 }
 0xbd8   :  { %v2013_v45 = vrot.slane %v1998_v35, 7  ;;  %v2015_v46 = vrot.slane %v1999_v36, 6  ;;  %v2017_v49 = vrot.slane %v2000_v38, 5  ;;  %v2019_v3 = vrot.slane %v2001_v40, 4 }
 0xbd9   :  { %v2021_v51 = vrot.slane %v2002_v44, 3  ;;  %v2023_v6 = vrot.slane %v2003_v24, 2  ;;  %v2025_v53 = vrot.slane %v2004_v41, 1 }
 0xbda   :  { %v2014_v48 = vsel %vm80_vm2, %v2013_v45, %v1997_v37 }
 0xbdb   :  { %v2016_v2 = vsel %vm83_vm3, %v2015_v46, %v2014_v48 }
 0xbdc   :  { %v2018_v4 = vsel %vm86_vm4, %v2017_v49, %v2016_v2 }
 0xbdd   :  { %v2020_v5 = vsel %vm89_vm5, %v2019_v3, %v2018_v4 }
 0xbde   :  { %v2022_v7 = vsel %vm92_vm6, %v2021_v51, %v2020_v5 }
 0xbdf   :  { %v2024_v54 = vsel %vm95_vm7, %v2023_v6, %v2022_v7 }
 0xbe0   :  { %v2026_v8 = vsel %vm98_vm8, %v2025_v53, %v2024_v54  ;;  %v2145_v53 = vld [vmem:[#allocation5 + $0x18] sm:$0xff]  ;;  %v2144_v54 = vld [vmem:[#allocation5 + $0x10] sm:$0xff] }
 0xbe1   :  { %v2028_v12 = vsel %vm100_vm1, %v2026_v8, 0.0  ;;  %10536 = vmatpush3.msra.mxu0 %v2145_v53  ;;  %v2143_v8 = vld [vmem:[#allocation5 + $0x8] sm:$0xff] }
 0xbe2   :  { %2029 = vadd.xlane.f32.xlu1 %v2028_v12  ;;  %10537 = vmatprep.subr.mxu0 %v13213_v0  ;;  %v2142_v12 = vld [vmem:[#allocation5] sm:$0xff] }
 0xbe3   :  { %10538 = vmatpush3.msra.mxu0 %v2144_v54 }
 0xbe4   :  { %10539 = vmatprep.subr.mxu0 %v13213_v0 }
 0xbe5   :  { %10540 = vmatpush3.msra.mxu0 %v2143_v8 }
 0xbe6   :  { %10541 = vmatprep.subr.mxu0 %v13213_v0 }
 0xbe7   :  { %10542 = vmatpush3.msra.mxu0 %v2142_v12 }
 0xbe8   :  { %10557 = vmatprep.subr.mxu0 %v13213_v0 }
 0xc6b   :  { %v2030_v55 = vpop.xlane.xlu1 %2029 }
 0xc6c   :  { %v2032_v56 = vmul.f32 0.03125, %v2030_v55  ;;  %v2150_v55 = vld [vmem:[#allocation5 + $0x38] sm:$0xff] }
 0xc6d   :  { %10547 = vmatpush3.xpose.msk.msra.mxu1 %vm2254_vm10, %v2150_v55 }
 0xc6e   :  { %v2034_v57 = vrot.slane %v2032_v56, 1  ;;  %v2035_v58 = vrot.slane %v2032_v56, 2  ;;  %v2036_v61 = vrot.slane %v2032_v56, 3  ;;  %v2037_v63 = vrot.slane %v2032_v56, 4  ;;  %10548 = vmatprep.subr.mxu1 %v13213_v0 }
 0xc6f   :  { %v2038_v1 = vrot.slane %v2032_v56, 5  ;;  %v2039_v9 = vrot.slane %v2032_v56, 6  ;;  %v2040_v10 = vrot.slane %v2032_v56, 7  ;;  %v11541_v11 = vsub.f32 %v1997_v37, %v2032_v56  ;;  %v2149_v56 = vld [vmem:[#allocation5 + $0x30] sm:$0xff] }
 0xc70   :  { %v11543_v16 = vsub.f32 %v1998_v35, %v2034_v57  ;;  %v11545_v17 = vsub.f32 %v1999_v36, %v2035_v58  ;;  %v11547_v18 = vsub.f32 %v2000_v38, %v2036_v61  ;;  %v11549_v19 = vsub.f32 %v2001_v40, %v2037_v63  ;;  %v2148_v57 = vld [vmem:[#allocation5 + $0x28] sm:$0xff] }
 0xc71   :  { %v11551_v20 = vsub.f32 %v2002_v44, %v2038_v1  ;;  %v11553_v21 = vsub.f32 %v2003_v24, %v2039_v9  ;;  %v11555_v22 = vsub.f32 %v2004_v41, %v2040_v10  ;;  %v2057_v35 = vmul.f32 %v11541_v11, %v11541_v11  ;;  %10549 = vmatpush3.xpose.msk.msra.mxu1 %vm2254_vm10, %v2149_v56 }
 0xc72   :  { %v2058_v23 = vmul.f32 %v11543_v16, %v11543_v16  ;;  %v2059_v25 = vmul.f32 %v11545_v17, %v11545_v17  ;;  %v2060_v26 = vmul.f32 %v11547_v18, %v11547_v18  ;;  %v2061_v31 = vmul.f32 %v11549_v19, %v11549_v19  ;;  %10550 = vmatprep.subr.mxu1 %v13213_v0 }
 0xc73   :  { %v2062_v36 = vmul.f32 %v11551_v20, %v11551_v20  ;;  %v2063_v37 = vmul.f32 %v11553_v21, %v11553_v21  ;;  %v2064_v44 = vmul.f32 %v11555_v22, %v11555_v22  ;;  %v13212_v1 = vsub.s32 6, %v11324_v27 }
 0xc74   :  { %v2073_v38 = vrot.slane %v2058_v23, 7  ;;  %v2075_v40 = vrot.slane %v2059_v25, 6  ;;  %v2077_v46 = vrot.slane %v2060_v26, 5  ;;  %v2079_v41 = vrot.slane %v2061_v31, 4 }
 0xc75   :  { %v2081_v49 = vrot.slane %v2062_v36, 3  ;;  %v2083_v3 = vrot.slane %v2063_v37, 2  ;;  %v2085_v51 = vrot.slane %v2064_v44, 1  ;;  %10551 = vmatpush3.xpose.msk.msra.mxu1 %vm2254_vm10, %v2148_v57  ;;  %v13211_v9 = vsub.s32 7, %v11324_v27 }
 0xc76   :  { %v2074_v45 = vsel %vm80_vm2, %v2073_v38, %v2057_v35  ;;  %10552 = vmatprep.subr.mxu1 %v13213_v0  ;;  %v11596_v23 = vrot.slane %v11332_v29, %v13212_v1 }
 0xc77   :  { %v2076_v24 = vsel %vm83_vm3, %v2075_v40, %v2074_v45  ;;  %v11601_v25 = vrot.slane %v11332_v29, %v13211_v9 }
 0xc78   :  { %v2078_v48 = vsel %vm86_vm4, %v2077_v46, %v2076_v24 }
 0xc79   :  { %v2080_v2 = vsel %vm89_vm5, %v2079_v41, %v2078_v48 }
 0xc7a   :  { %v2082_v4 = vsel %vm92_vm6, %v2081_v49, %v2080_v2 }
 0xc7b   :  { %v2084_v5 = vsel %vm95_vm7, %v2083_v3, %v2082_v4 }
 0xc7c   :  { %v2086_v6 = vsel %vm98_vm8, %v2085_v51, %v2084_v5 }
 0xc7d   :  { %v2088_v7 = vsel %vm100_vm1, %v2086_v6, 0.0 }
 0xc7e   :  { %2089 = vadd.xlane.f32.xlu0 %v2088_v7 }
 0xd07   :  { %v2090_v58 = vpop.xlane.xlu0 %2089 }
 0xd08   :  { %v2091_v61 = vmul.f32 0.03125, %v2090_v58 }
 0xd0a   :  { %v2092_v63 = vadd.f32 1e-05, %v2091_v61 }
 0xd0c   :  { %11012 = vrsqrt.f32 %v2092_v63 }
 0xd19   :  { %v11013_v10 = vpop.eup %11012 }
 0xd1a   :  { %v2095_v26 = vrot.slane %v11013_v10, 1  ;;  %v2096_v31 = vrot.slane %v11013_v10, 2  ;;  %v2097_v35 = vrot.slane %v11013_v10, 3  ;;  %v2098_v36 = vrot.slane %v11013_v10, 4 }
 0xd1b   :  { %v2099_v38 = vrot.slane %v11013_v10, 5  ;;  %v2100_v40 = vrot.slane %v11013_v10, 6  ;;  %v2101_v37 = vrot.slane %v11013_v10, 7  ;;  %v2110_v44 = vmul.f32 %v11013_v10, %v11541_v11 }
 0xd1c   :  { %v2111_v45 = vmul.f32 %v2095_v26, %v11543_v16  ;;  %v2112_v46 = vmul.f32 %v2096_v31, %v11545_v17  ;;  %v2113_v24 = vmul.f32 %v2097_v35, %v11547_v18  ;;  %v2114_v41 = vmul.f32 %v2098_v36, %v11549_v19 }
 0xd1d   :  { %v2115_v48 = vmul.f32 %v2099_v38, %v11551_v20  ;;  %v2116_v49 = vmul.f32 %v2100_v40, %v11553_v21  ;;  %v2117_v2 = vmul.f32 %v2101_v37, %v11555_v22  ;;  %v2122_v3 = vmul.f32 %v11596_v23, %v2110_v44  ;;  %v2147_v40 = vld [vmem:[#allocation5 + $0x20] sm:$0xff] }
 0xd1e   :  { %v2123_v4 = vmul.f32 %v11596_v23, %v2111_v45  ;;  %v2124_v11 = vmul.f32 %v11596_v23, %v2112_v46  ;;  %v2125_v16 = vmul.f32 %v11596_v23, %v2113_v24  ;;  %v2126_v17 = vmul.f32 %v11596_v23, %v2114_v41  ;;  %10553 = vmatpush3.xpose.msk.msra.mxu1 %vm2254_vm10, %v2147_v40 }
 0xd1f   :  { %v2127_v18 = vmul.f32 %v11596_v23, %v2115_v48  ;;  %v2128_v19 = vmul.f32 %v11596_v23, %v2116_v49  ;;  %v2129_v20 = vmul.f32 %v11596_v23, %v2117_v2  ;;  %v2134_v6 = vadd.f32 %v11601_v25, %v2122_v3  ;;  %10572 = vmatprep.subr.mxu1 %v13213_v0 }
 0xd20   :  { %v2135_v21 = vadd.f32 %v11601_v25, %v2123_v4  ;;  %v2136_v22 = vadd.f32 %v11601_v25, %v2124_v11  ;;  %v2137_v51 = vadd.f32 %v11601_v25, %v2125_v16  ;;  %v2138_v5 = vadd.f32 %v11601_v25, %v2126_v17 }
 0xd21   :  { %v2139_v7 = vadd.f32 %v11601_v25, %v2127_v18  ;;  %v2140_v8 = vadd.f32 %v11601_v25, %v2128_v19  ;;  %v2141_v12 = vadd.f32 %v11601_v25, %v2129_v20  ;;  %v11640_v37 = vsub.s32 4, %v11324_v27 }
 0xd22   :  { %v2163_v53 = vrot.slane %v2135_v21, 7  ;;  %v2165_v54 = vrot.slane %v2136_v22, 6  ;;  %v2167_v56 = vrot.slane %v2137_v51, 5  ;;  %v2169_v58 = vrot.slane %v2138_v5, 4 }
 0xd23   :  { %v2171_v63 = vrot.slane %v2139_v7, 3  ;;  %v2173_v26 = vrot.slane %v2140_v8, 2  ;;  %v2175_v35 = vrot.slane %v2141_v12, 1  ;;  %13226 = vst [vmem:[#allocation16_spill] sm:$0xff] %v11640_v37  ;;  %v11644_v44 = vrot.slane %v11332_v29, %v11640_v37 }
 0xd24   :  { %v2164_v55 = vsel %vm80_vm2, %v2163_v53, %v2134_v6  ;;  %v11651_v48 = vsub.s32 5, %v11324_v27 }
 0xd25   :  { %v2166_v57 = vsel %vm83_vm3, %v2165_v54, %v2164_v55 }
 0xd26   :  { %v2168_v61 = vsel %vm86_vm4, %v2167_v56, %v2166_v57  ;;  %13227 = vst [vmem:[#allocation17_spill] sm:$0xff] %v11651_v48  ;;  %v11655_v49 = vrot.slane %v11332_v29, %v11651_v48 }
 0xd27   :  { %v2170_v10 = vsel %vm89_vm5, %v2169_v58, %v2168_v61 }
 0xd28   :  { %v2172_v31 = vsel %vm92_vm6, %v2171_v63, %v2170_v10 }
 0xd29   :  { %v2174_v36 = vsel %vm95_vm7, %v2173_v26, %v2172_v31 }
 0xd2a   :  { %v2176_v38 = vsel %vm98_vm8, %v2175_v35, %v2174_v36 }
 0xd2b   :  { %10544 = vmatmul.mubr.msk.f32.vlgmr.msra.gmra.mxu0 %vm100_vm1, %v2176_v38 }
 0xd2c   :  { %10559 = vmatprep.mubr.msk.f32.mxu0 %vm11193_vm0, %v13213_v0 }
 0xdeb   :  { %v2245_v45 = vpop.f32.mrf.mxu0 }
 0xdec   :  { %v2246_v46 = vadd.f32 %v2245_v45, %v11644_v44 }
 0xded   :  { %v10545_v24 = vpop.f32.mrf.mxu0 }
 0xdee   :  { %v2249_v41 = vmax.f32 %v2246_v46, 0.0 }
 0xdf0   :  { %10555 = vmatmul.mubr.msk.f32.vlgmr.msra.gmra.mxu1 %vm2254_vm10, %v2249_v41 }
 0xdf1   :  { %10574 = vmatprep.mubr.msk.f32.mxu1 %vm11193_vm0, %v13213_v0 }
 0xeb0   :  { %v2336_v2 = vpop.f32.mrf.mxu1 }
 0xeb1   :  { %v2337_v3 = vadd.f32 %v2336_v2, %v11655_v49 }
 0xeb2   :  { %v10556_v4 = vpop.f32.mrf.mxu1 }
 0xeb3   :  { %v2341_v11 = vrot.slane %v2337_v3, 1  ;;  %v2342_v16 = vrot.slane %v2337_v3, 2  ;;  %v2343_v17 = vrot.slane %v2337_v3, 3  ;;  %v2344_v18 = vrot.slane %v2337_v3, 4 }
 0xeb4   :  { %v2345_v19 = vrot.slane %v2337_v3, 5  ;;  %v2346_v20 = vrot.slane %v2337_v3, 6  ;;  %v2347_v53 = vrot.slane %v2337_v3, 7  ;;  %v2356_v58 = vadd.f32 %v2337_v3, %v2134_v6 }
 0xeb5   :  { %v2357_v54 = vadd.f32 %v2341_v11, %v2135_v21  ;;  %v2358_v55 = vadd.f32 %v2342_v16, %v2136_v22  ;;  %v2359_v56 = vadd.f32 %v2343_v17, %v2137_v51  ;;  %v2360_v57 = vadd.f32 %v2344_v18, %v2138_v5 }
 0xeb6   :  { %v2361_v61 = vadd.f32 %v2345_v19, %v2139_v7  ;;  %v2362_v10 = vadd.f32 %v2346_v20, %v2140_v8  ;;  %v2363_v26 = vadd.f32 %v2347_v53, %v2141_v12 }
 0xeb7   :  { %v2372_v63 = vrot.slane %v2357_v54, 7  ;;  %v2374_v29 = vrot.slane %v2358_v55, 6  ;;  %v2376_v35 = vrot.slane %v2359_v56, 5  ;;  %v2378_v38 = vrot.slane %v2360_v57, 4 }
 0xeb8   :  { %v2380_v45 = vrot.slane %v2361_v61, 3  ;;  %v2382_v22 = vrot.slane %v2362_v10, 2  ;;  %v2384_v5 = vrot.slane %v2363_v26, 1 }
 0xeb9   :  { %v2373_v31 = vsel %vm80_vm2, %v2372_v63, %v2356_v58 }
 0xeba   :  { %v2375_v36 = vsel %vm83_vm3, %v2374_v29, %v2373_v31 }
 0xebb   :  { %v2377_v40 = vsel %vm86_vm4, %v2376_v35, %v2375_v36 }
 0xebc   :  { %v2379_v21 = vsel %vm89_vm5, %v2378_v38, %v2377_v40 }
 0xebd   :  { %v2381_v51 = vsel %vm92_vm6, %v2380_v45, %v2379_v21 }
 0xebe   :  { %v2383_v6 = vsel %vm95_vm7, %v2382_v22, %v2381_v51 }
 0xebf   :  { %v2385_v7 = vsel %vm98_vm8, %v2384_v5, %v2383_v6 }
 0xec0   :  { %v2387_v8 = vsel %vm100_vm1, %v2385_v7, 0.0 }
 0xec1   :  { %2388 = vadd.xlane.f32.xlu0 %v2387_v8 }
 0xf4a   :  { %v2389_v12 = vpop.xlane.xlu0 %2388 }
 0xf4b   :  { %v2390_v46 = vmul.f32 0.03125, %v2389_v12 }
 0xf4d   :  { %v2392_v24 = vrot.slane %v2390_v46, 1  ;;  %v2393_v41 = vrot.slane %v2390_v46, 2  ;;  %v2394_v2 = vrot.slane %v2390_v46, 3  ;;  %v2395_v3 = vrot.slane %v2390_v46, 4 }
 0xf4e   :  { %v2396_v4 = vrot.slane %v2390_v46, 5  ;;  %v2397_v11 = vrot.slane %v2390_v46, 6  ;;  %v2398_v16 = vrot.slane %v2390_v46, 7  ;;  %v2407_v17 = vsub.f32 %v2356_v58, %v2390_v46 }
 0xf4f   :  { %v2408_v18 = vsub.f32 %v2357_v54, %v2392_v24  ;;  %v2409_v19 = vsub.f32 %v2358_v55, %v2393_v41  ;;  %v2410_v20 = vsub.f32 %v2359_v56, %v2394_v2  ;;  %v2411_v53 = vsub.f32 %v2360_v57, %v2395_v3  ;;  %v2501_v41 = vld [vmem:[#allocation2 + $0x80] sm:$0xff]  ;;  %v11679_v2 = vld [vmem:[%s13208_s3 + $0x8] sm:$0xff] }
 0xf50   :  { %v2412_v63 = vsub.f32 %v2361_v61, %v2396_v4  ;;  %v2413_v29 = vsub.f32 %v2362_v10, %v2397_v11  ;;  %v2414_v31 = vsub.f32 %v2363_v26, %v2398_v16  ;;  %v2415_v45 = vmul.f32 %v2407_v17, %v2407_v17  ;;  %10558 = vmatpush3.xpose.msk.msra.mxu0 %vm100_vm1, %v2501_v41 }
 0xf51   :  { %v2416_v35 = vmul.f32 %v2408_v18, %v2408_v18  ;;  %v2417_v36 = vmul.f32 %v2409_v19, %v2409_v19  ;;  %v2418_v38 = vmul.f32 %v2410_v20, %v2410_v20  ;;  %v2419_v40 = vmul.f32 %v2411_v53, %v2411_v53  ;;  %10562 = vmatprep.subr.mxu0 %v13213_v0 }
 0xf52   :  { %v2420_v21 = vmul.f32 %v2412_v63, %v2412_v63  ;;  %v2421_v5 = vmul.f32 %v2413_v29, %v2413_v29  ;;  %v2422_v6 = vmul.f32 %v2414_v31, %v2414_v31  ;;  %v11683_v3 = vrot.slane %v11679_v2, %v11356_v42 }
 0xf53   :  { %v2431_v22 = vrot.slane %v2416_v35, 7  ;;  %v2433_v51 = vrot.slane %v2417_v36, 6  ;;  %v2435_v58 = vrot.slane %v2418_v38, 5  ;;  %v2437_v55 = vrot.slane %v2419_v40, 4 }
 0xf54   :  { %v2439_v57 = vrot.slane %v2420_v21, 3  ;;  %v2441_v10 = vrot.slane %v2421_v5, 2  ;;  %v2443_v8 = vrot.slane %v2422_v6, 1  ;;  %2933 = vrot.lane.b32.xlu1 %v11683_v3, %s11194_s23  ;;  %v11689_v36 = vrot.slane %v11679_v2, %v11335_v30 }
 0xf55   :  { %v2432_v7 = vsel %vm80_vm2, %v2431_v22, %v2415_v45  ;;  %v11693_v38 = vrot.slane %v11679_v2, %v11327_v28 }
 0xf56   :  { %v2434_v54 = vsel %vm83_vm3, %v2433_v51, %v2432_v7 }
 0xf57   :  { %v2436_v56 = vsel %vm86_vm4, %v2435_v58, %v2434_v54 }
 0xf58   :  { %v2438_v61 = vsel %vm89_vm5, %v2437_v55, %v2436_v56 }
 0xf59   :  { %v2440_v26 = vsel %vm92_vm6, %v2439_v57, %v2438_v61 }
 0xf5a   :  { %v2442_v12 = vsel %vm95_vm7, %v2441_v10, %v2440_v26 }
 0xf5b   :  { %v2444_v46 = vsel %vm98_vm8, %v2443_v8, %v2442_v12 }
 0xf5c   :  { %v2446_v24 = vsel %vm100_vm1, %v2444_v46, 0.0 }
 0xf5d   :  { %2447 = vadd.xlane.f32.xlu0 %v2446_v24 }
 0xfe6   :  { %v2448_v4 = vpop.xlane.xlu0 %2447 }
 0xfe7   :  { %v2449_v11 = vmul.f32 0.03125, %v2448_v4 }
 0xfe9   :  { %v2450_v16 = vadd.f32 1e-05, %v2449_v11 }
 0xfeb   :  { %11014 = vrsqrt.f32 %v2450_v16 }
 0xff8   :  { %v11015_v35 = vpop.eup %11014 }
 0xff9   :  { %v2453_v40 = vrot.slane %v11015_v35, 1  ;;  %v2454_v45 = vrot.slane %v11015_v35, 2  ;;  %v2455_v21 = vrot.slane %v11015_v35, 3  ;;  %v2456_v22 = vrot.slane %v11015_v35, 4 }
 0xffa   :  { %v2457_v51 = vrot.slane %v11015_v35, 5  ;;  %v2458_v5 = vrot.slane %v11015_v35, 6  ;;  %v2459_v6 = vrot.slane %v11015_v35, 7  ;;  %v2468_v7 = vmul.f32 %v11015_v35, %v2407_v17 }
 0xffb   :  { %v2469_v58 = vmul.f32 %v2453_v40, %v2408_v18  ;;  %v2470_v54 = vmul.f32 %v2454_v45, %v2409_v19  ;;  %v2471_v55 = vmul.f32 %v2455_v21, %v2410_v20  ;;  %v2472_v56 = vmul.f32 %v2456_v22, %v2411_v53 }
 0xffc   :  { %v2473_v57 = vmul.f32 %v2457_v51, %v2412_v63  ;;  %v2474_v61 = vmul.f32 %v2458_v5, %v2413_v29  ;;  %v2475_v10 = vmul.f32 %v2459_v6, %v2414_v31  ;;  %v2480_v26 = vmul.f32 %v11689_v36, %v2468_v7 }
 0xffd   :  { %v2481_v8 = vmul.f32 %v11689_v36, %v2469_v58  ;;  %v2482_v12 = vmul.f32 %v11689_v36, %v2470_v54  ;;  %v2483_v46 = vmul.f32 %v11689_v36, %v2471_v55  ;;  %v2484_v24 = vmul.f32 %v11689_v36, %v2472_v56  ;;  %v2503_v56 = vld [vmem:[#allocation2 + $0xa0] sm:$0xff] }
 0xffe   :  { %v2485_v41 = vmul.f32 %v11689_v36, %v2473_v57  ;;  %v2486_v17 = vmul.f32 %v11689_v36, %v2474_v61  ;;  %v2487_v18 = vmul.f32 %v11689_v36, %v2475_v10  ;;  %v11716_v29 = vadd.f32 %v11693_v38, %v2480_v26  ;;  %v2505_v61 = vld [vmem:[#allocation2 + $0xc0] sm:$0xff] }
 0xfff   :  { %v11704_v19 = vadd.f32 %v11693_v38, %v2481_v8  ;;  %v11707_v20 = vadd.f32 %v11693_v38, %v2482_v12  ;;  %v11710_v53 = vadd.f32 %v11693_v38, %v2483_v46  ;;  %v11713_v63 = vadd.f32 %v11693_v38, %v2484_v24 }
0x1000   :  { %v11719_v31 = vadd.f32 %v11693_v38, %v2485_v41  ;;  %v11724_v16 = vadd.f32 %v11693_v38, %v2486_v17  ;;  %v11727_v35 = vadd.f32 %v11693_v38, %v2487_v18  ;;  %v11762_v26 = vrot.slane %v11679_v2, %v11518_v14 }
0x1001   :  { %v2520_v4 = vrot.slane %v11704_v19, 7  ;;  %v2522_v11 = vrot.slane %v11707_v20, 6  ;;  %v2524_v45 = vrot.slane %v11710_v53, 5  ;;  %v2526_v22 = vrot.slane %v11713_v63, 4 }
0x1002   :  { %v2528_v5 = vrot.slane %v11719_v31, 3  ;;  %v2530_v7 = vrot.slane %v11724_v16, 2  ;;  %v2532_v54 = vrot.slane %v11727_v35, 1  ;;  %v11766_v46 = vrot.slane %v11679_v2, %v11640_v37 }
0x1003   :  { %v2521_v40 = vsel %vm80_vm2, %v2520_v4, %v11716_v29  ;;  %v2925_v4 = vld [vmem:[#allocation2 + $0x88] sm:$0xff] }
0x1004   :  { %v2523_v21 = vsel %vm83_vm3, %v2522_v11, %v2521_v40 }
0x1005   :  { %v2525_v51 = vsel %vm86_vm4, %v2524_v45, %v2523_v21  ;;  %v2929_v45 = vld [vmem:[#allocation2 + $0xc8] sm:$0xff] }
0x1006   :  { %v2527_v6 = vsel %vm89_vm5, %v2526_v22, %v2525_v51 }
0x1007   :  { %v2529_v58 = vsel %vm92_vm6, %v2528_v5, %v2527_v6 }
0x1008   :  { %v2531_v55 = vsel %vm95_vm7, %v2530_v7, %v2529_v58 }
0x1009   :  { %v11742_v57 = vsel %vm98_vm8, %v2532_v54, %v2531_v55 }
0x100a   :  { %10560 = vmatmul.mubr.msk.f32.vlgmr.msra.gmra.mxu0 %vm100_vm1, %v11742_v57 }
0x100b   :  { %10563 = vmatpush3.xpose.msk.msra.mxu0 %vm100_vm1, %v2503_v56  ;;  %10564 = vmatprep.mubr.msk.f32.mxu0 %vm11193_vm0, %v13213_v0 }
0x100c   :  { %10567 = vmatprep.subr.mxu0 %v13213_v0 }
0x100e   :  { %10565 = vmatmul.mubr.msk.f32.vlgmr.msra.gmra.mxu0 %vm100_vm1, %v11742_v57 }
0x100f   :  { %10568 = vmatpush3.xpose.msk.msra.mxu0 %vm100_vm1, %v2505_v61  ;;  %10569 = vmatprep.mubr.msk.f32.mxu0 %vm11193_vm0, %v13213_v0 }
0x1010   :  { %10577 = vmatprep.subr.mxu0 %v13213_v0 }
0x1012   :  { %10570 = vmatmul.mubr.msk.f32.vlgmr.msra.gmra.mxu0 %vm100_vm1, %v11742_v57 }
0x1013   :  { %10579 = vmatprep.mubr.msk.f32.mxu0 %vm11193_vm0, %v13213_v0 }
0x10ca   :  { %v2605_v10 = vpop.f32.mrf.mxu0 }
0x10cb   :  { %v2606_v17 = vadd.f32 %v2605_v10, %v11683_v3 }
0x10cc   :  { %v10561_v8 = vpop.f32.mrf.mxu0 }
0x10ce   :  { %v2682_v12 = vpop.f32.mrf.mxu0 }
0x10cf   :  { %v2683_v24 = vadd.f32 %v2682_v12, %v11762_v26 }
0x10d0   :  { %v10566_v41 = vpop.f32.mrf.mxu0 }
0x10d1   :  { %10573 = vmatpush3.xpose.msk.msra.mxu1 %vm330_vm9, %v2683_v24  ;;  %v2927_v41 = vld [vmem:[#allocation2 + $0xa8] sm:$0xff] }
0x10d2   :  { %v2759_v18 = vpop.f32.mrf.mxu0  ;;  %10582 = vmatprep.subr.mxu1 %v13213_v0 }
0x10d3   :  { %v2760_v11 = vadd.f32 %v2759_v18, %v11766_v46 }
0x10d4   :  { %v10571_v40 = vpop.f32.mrf.mxu0  ;;  %10575 = vmatmul.mubr.msk.f32.vlgmr.msra.gmra.mxu1 %vm330_vm9, %v2606_v17 }
0x10d5   :  { %10578 = vmatpush3.msra.mxu0 %v2760_v11  ;;  %10583 = vmatpush3.xpose.msk.msra.mxu1 %vm100_vm1, %v2925_v4  ;;  %v11807_v40 = vpop.permute.xlu1 %2933 }
0x10d6   :  { %10584 = vmatprep.mubr.msk.f32.mxu1 %vm11193_vm0, %v13213_v0  ;;  %10592 = vmatprep.subr.mxu1 %v13213_v0 }
0x10d7   :  { %10587 = vmatprep.subr.mxu0 %v13213_v0 }
0x10d8   :  { %10585 = vmatmul.mubr.msk.f32.vlgmr.msra.gmra.mxu1 %vm100_vm1, %v11742_v57 }
0x10d9   :  { %10593 = vmatpush3.xpose.msk.msra.mxu1 %vm100_vm1, %v2929_v45  ;;  %10594 = vmatprep.mubr.msk.f32.mxu1 %vm11193_vm0, %v13213_v0 }
0x10da   :  { %10602 = vmatprep.subr.mxu1 %v13213_v0 }
0x10dc   :  { %10595 = vmatmul.mubr.msk.f32.vlgmr.msra.gmra.mxu1 %vm100_vm1, %v11742_v57 }
0x10dd   :  { %10604 = vmatprep.mubr.msk.f32.mxu1 %vm11193_vm0, %v13213_v0 }
0x1194   :  { %v2835_v21 = vpop.f32.mrf.mxu1 }
0x1195   :  { %v2839_v22 = vsel %vm330_vm9, %v2835_v21, -inf }
0x1196   :  { %2840 = vmax.xlane.f32.xlu0 %v2839_v22  ;;  %v10576_v51 = vpop.f32.mrf.mxu1 }
0x1198   :  { %v3005_v5 = vpop.f32.mrf.mxu1 }
0x1199   :  { %v3006_v22 = vadd.f32 %v3005_v5, %v11807_v40 }
0x119a   :  { %v10586_v6 = vpop.f32.mrf.mxu1 }
0x119c   :  { %v3159_v7 = vpop.f32.mrf.mxu1 }
0x119e   :  { %v10596_v58 = vpop.f32.mrf.mxu1 }
0x121f   :  { %v2841_v54 = vpop.xlane.xlu0 %2840 }
0x1220   :  { %v2842_v55 = vsub.f32 %v2835_v21, %v2841_v54 }
0x1222   :  { %v2843_v56 = vmul.f32 1.442695, %v2842_v55 }
0x1224   :  { %11016 = vpow2.f32 %v2843_v56 }
0x1231   :  { %v11017_v61 = vpop.eup %11016 }
0x1232   :  { %v2845_v10 = vsel %vm330_vm9, %v11017_v61, 0.0 }
0x1233   :  { %2846 = vadd.xlane.f32.xlu0 %v2845_v10 }
0x1249   :  { %3010 = vrot.lane.b32.xlu0 %v11762_v26, %s11194_s23 }
0x12bc   :  { %v2847_v8 = vpop.xlane.xlu0 %2846 }
0x12bd   :  { %11018 = vrcp.f32 %v2847_v8 }
0x12c0   :  { %v11805_v4 = vpop.permute.xlu0 %3010 }
0x12ca   :  { %v11019_v12 = vpop.eup %11018 }
0x12cb   :  { %v11793_v24 = vmul.f32 %v11019_v12, %v11017_v61  ;;  %v2931_v12 = vld [vmem:[#allocation2 + $0xe8] sm:$0xff] }
0x12cd   :  { %10580 = vmatmul.mubr.msk.f32.vlgmr.msra.gmra.mxu0 %vm330_vm9, %v11793_v24 }
0x12ce   :  { %10588 = vmatpush3.xpose.msk.msra.mxu0 %vm100_vm1, %v2927_v41  ;;  %10589 = vmatprep.mubr.msk.f32.mxu0 %vm11193_vm0, %v13213_v0 }
0x12cf   :  { %10597 = vmatprep.subr.mxu0 %v13213_v0 }
0x12d1   :  { %10590 = vmatmul.mubr.msk.f32.vlgmr.msra.gmra.mxu0 %vm100_vm1, %v11742_v57 }
0x12d2   :  { %10599 = vmatprep.mubr.msk.f32.mxu0 %vm11193_vm0, %v13213_v0 }
0x138d   :  { %v2920_v17 = vpop.f32.mrf.mxu0 }
0x138f   :  { %v10581_v18 = vpop.f32.mrf.mxu0 }
0x1391   :  { %v3082_v11 = vpop.f32.mrf.mxu0 }
0x1392   :  { %v3083_v45 = vadd.f32 %v3082_v11, %v11805_v4 }
0x1393   :  { %v10591_v21 = vpop.f32.mrf.mxu0 }
0x1394   :  { %10598 = vmatpush3.xpose.msk.msra.mxu0 %vm330_vm9, %v3083_v45  ;;  %v3473_v45 = vld [vmem:[#allocation2 + $0xb0] sm:$0xff] }
0x1395   :  { %10607 = vmatprep.subr.mxu0 %v13213_v0  ;;  %v3471_v21 = vld [vmem:[#allocation2 + $0x90] sm:$0xff] }
0x1397   :  { %10600 = vmatmul.mubr.msk.f32.vlgmr.msra.gmra.mxu0 %vm330_vm9, %v3006_v22 }
0x1398   :  { %10609 = vmatprep.mubr.msk.f32.mxu0 %vm11193_vm0, %v13213_v0  ;;  %10608 = vmatpush3.msra.mxu0 %v2931_v12 }
0x1399   :  { %10617 = vmatprep.subr.mxu0 %v13213_v0 }
0x1457   :  { %v3235_v51 = vpop.f32.mrf.mxu0 }
0x1458   :  { %v3239_v6 = vsel %vm330_vm9, %v3235_v51, -inf }
0x1459   :  { %3240 = vmax.xlane.f32.xlu0 %v3239_v6  ;;  %v10601_v58 = vpop.f32.mrf.mxu0 }
0x146f   :  { %3087 = vrot.lane.b32.xlu0 %v11766_v46, %s11194_s23 }
0x1473   :  { %3478 = vrot.lane.b32.xlu0 %v11683_v3, %s11195_s24 }
0x14e2   :  { %v3241_v54 = vpop.xlane.xlu0 %3240 }
0x14e3   :  { %v3242_v5 = vsub.f32 %v3235_v51, %v3241_v54 }
0x14e5   :  { %v3243_v55 = vmul.f32 1.442695, %v3242_v5 }
0x14e6   :  { %v11821_v56 = vpop.permute.xlu0 %3087 }
0x14e7   :  { %11020 = vpow2.f32 %v3243_v55  ;;  %v3160_v61 = vadd.f32 %v3159_v7, %v11821_v56  ;;  %v2507_v7 = vld [vmem:[#allocation2 + $0xe0] sm:$0xff] }
0x14e9   :  { %10603 = vmatpush3.msra.mxu1 %v3160_v61 }
0x14ea   :  { %10612 = vmatprep.subr.mxu1 %v13213_v0  ;;  %v11867_v12 = vpop.permute.xlu0 %3478 }
0x14f4   :  { %v11021_v10 = vpop.eup %11020 }
0x14f5   :  { %v3245_v8 = vsel %vm330_vm9, %v11021_v10, 0.0 }
0x14f6   :  { %3246 = vadd.xlane.f32.xlu1 %v3245_v8 }
0x1507   :  { %3554 = vrot.lane.b32.xlu1 %v11762_v26, %s11195_s24 }
0x157f   :  { %v3247_v41 = vpop.xlane.xlu1 %3246 }
0x1580   :  { %11022 = vrcp.f32 %v3247_v41 }
0x1583   :  { %v11855_v54 = vpop.permute.xlu1 %3554 }
0x158d   :  { %v11023_v18 = vpop.eup %11022 }
0x158e   :  { %v11829_v11 = vmul.f32 %v11023_v18, %v11021_v10 }
0x1590   :  { %10605 = vmatmul.mubr.msk.f32.vlgmr.msra.gmra.mxu1 %vm330_vm9, %v11829_v11 }
0x1591   :  { %10613 = vmatpush3.msra.mxu1 %v2507_v7  ;;  %10614 = vmatprep.mubr.msk.f32.mxu1 %vm11193_vm0, %v13213_v0 }
0x1592   :  { %10622 = vmatprep.subr.mxu1 %v13213_v0 }
0x1594   :  { %10615 = vmatmul.mubr.msk.f32.vlgmr.msra.gmra.mxu1 %vm330_vm9, %v2920_v17  ;;  %v3475_v17 = vld [vmem:[#allocation2 + $0xd0] sm:$0xff] }
0x1595   :  { %10623 = vmatpush3.xpose.msk.msra.mxu1 %vm100_vm1, %v3473_v45  ;;  %10624 = vmatprep.mubr.msk.f32.mxu1 %vm11193_vm0, %v13213_v0 }
0x1596   :  { %10632 = vmatprep.subr.mxu1 %v13213_v0 }
0x1598   :  { %10625 = vmatmul.mubr.msk.f32.vlgmr.msra.gmra.mxu1 %vm100_vm1, %v11742_v57 }
0x1599   :  { %10634 = vmatprep.mubr.msk.f32.mxu1 %vm11193_vm0, %v13213_v0 }
0x1650   :  { %v3320_v22 = vpop.f32.mrf.mxu1 }
0x1651   :  { %10610 = vmatmul.mubr.msk.f32.vlgmr.msra.gmra.mxu0 %vm330_vm9, %v3320_v22 }
0x1652   :  { %v10606_v51 = vpop.f32.mrf.mxu1  ;;  %10618 = vmatpush3.xpose.msk.msra.mxu0 %vm100_vm1, %v3471_v21  ;;  %10619 = vmatprep.mubr.msk.f32.mxu0 %vm11193_vm0, %v13213_v0 }
0x1653   :  { %10627 = vmatprep.subr.mxu0 %v13213_v0 }
0x1654   :  { %v11850_v6 = vpop.f32.mrf.mxu1 }
0x1655   :  { %10620 = vmatmul.mubr.msk.f32.vlgmr.msra.gmra.mxu0 %vm100_vm1, %v11742_v57 }
0x1656   :  { %v10616_v58 = vpop.f32.mrf.mxu1  ;;  %10628 = vmatpush3.xpose.msk.msra.mxu0 %vm100_vm1, %v3475_v17  ;;  %10629 = vmatprep.mubr.msk.f32.mxu0 %vm11193_vm0, %v13213_v0 }
0x1657   :  { %10637 = vmatprep.subr.mxu0 %v13213_v0 }
0x1658   :  { %v3626_v5 = vpop.f32.mrf.mxu1 }
0x1659   :  { %v3627_v55 = vadd.f32 %v3626_v5, %v11855_v54  ;;  %10630 = vmatmul.mubr.msk.f32.vlgmr.msra.gmra.mxu0 %vm100_vm1, %v11742_v57 }
0x165a   :  { %v10626_v61 = vpop.f32.mrf.mxu1  ;;  %10639 = vmatprep.mubr.msk.f32.mxu0 %vm11193_vm0, %v13213_v0 }
0x165b   :  { %10633 = vmatpush3.xpose.msk.msra.mxu1 %vm330_vm9, %v3627_v55 }
0x165c   :  { %10642 = vmatprep.subr.mxu1 %v13213_v0 }
0x1711   :  { %v3393_v10 = vpop.f32.mrf.mxu0 }
0x1713   :  { %v10611_v8 = vpop.f32.mrf.mxu0 }
0x1715   :  { %v3550_v41 = vpop.f32.mrf.mxu0 }
0x1716   :  { %v3551_v18 = vadd.f32 %v3550_v41, %v11867_v12 }
0x1717   :  { %v10621_v7 = vpop.f32.mrf.mxu0 }
0x1718   :  { %10635 = vmatmul.mubr.msk.f32.vlgmr.msra.gmra.mxu1 %vm330_vm9, %v3551_v18  ;;  %v3477_v7 = vld [vmem:[#allocation2 + $0xf0] sm:$0xff] }
0x1719   :  { %v3702_v45 = vpop.f32.mrf.mxu0  ;;  %10644 = vmatprep.mubr.msk.f32.mxu1 %vm11193_vm0, %v13213_v0  ;;  %10643 = vmatpush3.msra.mxu1 %v3477_v7 }
0x171a   :  { %10652 = vmatprep.subr.mxu1 %v13213_v0 }
0x171b   :  { %v10631_v21 = vpop.f32.mrf.mxu0 }
0x17d8   :  { %v3778_v22 = vpop.f32.mrf.mxu1 }
0x17d9   :  { %v3782_v51 = vsel %vm330_vm9, %v3778_v22, -inf }
0x17da   :  { %3783 = vmax.xlane.f32.xlu0 %v3782_v51  ;;  %v10636_v17 = vpop.f32.mrf.mxu1 }
0x17db   :  { %v3942_v17 = vld [vmem:[#allocation2 + $0x98] sm:$0xff] }
0x17f0   :  { %3630 = vrot.lane.b32.xlu0 %v11766_v46, %s11195_s24 }
0x17f4   :  { %3949 = vrot.lane.b32.xlu0 %v11683_v3, %s11196_s25 }
0x1863   :  { %v3784_v58 = vpop.xlane.xlu0 %3783 }
0x1864   :  { %v3785_v5 = vsub.f32 %v3778_v22, %v3784_v58 }
0x1866   :  { %v3786_v55 = vmul.f32 1.442695, %v3785_v5  ;;  %v3946_v5 = vld [vmem:[#allocation2 + $0xd8] sm:$0xff] }
0x1867   :  { %v11878_v61 = vpop.permute.xlu0 %3630 }
0x1868   :  { %13228 = vst [vmem:[#allocation18_spill] sm:$0xff] %v11878_v61  ;;  %11024 = vpow2.f32 %v3786_v55  ;;  %v3703_v8 = vadd.f32 %v3702_v45, %v11878_v61  ;;  %v3250_v45 = vadd.f32 %v11829_v11, %v11793_v24  ;;  %v3944_v24 = vld [vmem:[#allocation2 + $0xb8] sm:$0xff] }
0x186a   :  { %10638 = vmatpush3.msra.mxu0 %v3703_v8 }
0x186b   :  { %10647 = vmatprep.subr.mxu0 %v13213_v0 }
0x1875   :  { %v11025_v41 = vpop.eup %11024 }
0x1876   :  { %v3788_v18 = vsel %vm330_vm9, %v11025_v41, 0.0 }
0x1877   :  { %3789 = vadd.xlane.f32.xlu1 %v3788_v18 }
0x1888   :  { %4025 = vrot.lane.b32.xlu1 %v11762_v26, %s11196_s25 }
0x1900   :  { %v3790_v21 = vpop.xlane.xlu1 %3789 }
0x1901   :  { %11026 = vrcp.f32 %v3790_v21  ;;  %v3467_v21 = vadd.f32 %v11850_v6, %v3393_v10 }
0x190e   :  { %v11027_v22 = vpop.eup %11026 }
0x190f   :  { %v3792_v51 = vmul.f32 %v11027_v22, %v11025_v41 }
0x1911   :  { %10640 = vmatmul.mubr.msk.f32.vlgmr.msra.gmra.mxu0 %vm330_vm9, %v3792_v51  ;;  %v3793_v58 = vadd.f32 %v3792_v51, %v3250_v45  ;;  %v11913_v45 = vpop.permute.xlu1 %4025 }
0x1912   :  { %10648 = vmatpush3.xpose.msk.msra.mxu0 %vm100_vm1, %v3942_v17  ;;  %10649 = vmatprep.mubr.msk.f32.mxu0 %vm11193_vm0, %v13213_v0  ;;  %13229 = vst [vmem:[#allocation19_spill] sm:$0xff] %v11913_v45 }
0x1913   :  { %10657 = vmatprep.subr.mxu0 %v13213_v0 }
0x1915   :  { %10650 = vmatmul.mubr.msk.f32.vlgmr.msra.gmra.mxu0 %vm100_vm1, %v11742_v57 }
0x1916   :  { %10658 = vmatpush3.xpose.msk.msra.mxu0 %vm100_vm1, %v3946_v5  ;;  %10659 = vmatprep.mubr.msk.f32.mxu0 %vm11193_vm0, %v13213_v0 }
0x1917   :  { %10667 = vmatprep.subr.mxu0 %v13213_v0 }
0x1919   :  { %10660 = vmatmul.mubr.msk.f32.vlgmr.msra.gmra.mxu0 %vm100_vm1, %v11742_v57 }
0x191a   :  { %10669 = vmatprep.mubr.msk.f32.mxu0 %vm11193_vm0, %v13213_v0 }
0x19d1   :  { %v3863_v11 = vpop.f32.mrf.mxu0 }
0x19d2   :  { %10645 = vmatmul.mubr.msk.f32.vlgmr.msra.gmra.mxu1 %vm330_vm9, %v3863_v11 }
0x19d3   :  { %v10641_v55 = vpop.f32.mrf.mxu0  ;;  %10653 = vmatpush3.xpose.msk.msra.mxu1 %vm100_vm1, %v3944_v24  ;;  %10654 = vmatprep.mubr.msk.f32.mxu1 %vm11193_vm0, %v13213_v0  ;;  %v11915_v24 = vpop.permute.xlu0 %3949 }
0x19d4   :  { %10662 = vmatprep.subr.mxu1 %v13213_v0  ;;  %13230 = vst [vmem:[#allocation20_spill] sm:$0xff] %v11915_v24 }
0x19d5   :  { %v4021_v8 = vpop.f32.mrf.mxu0 }
0x19d6   :  { %10655 = vmatmul.mubr.msk.f32.vlgmr.msra.gmra.mxu1 %vm100_vm1, %v11742_v57  ;;  %v4022_v57 = vadd.f32 %v4021_v8, %v11915_v24  ;;  %v3948_v8 = vld [vmem:[#allocation2 + $0xf8] sm:$0xff] }
0x19d7   :  { %v10651_v41 = vpop.f32.mrf.mxu0  ;;  %10664 = vmatprep.mubr.msk.f32.mxu1 %vm11193_vm0, %v13213_v0 }
0x19d9   :  { %v4173_v18 = vpop.f32.mrf.mxu0 }
0x19db   :  { %v10661_v7 = vpop.f32.mrf.mxu0 }
0x1a92   :  { %v3936_v22 = vpop.f32.mrf.mxu1 }
0x1a93   :  { %v3940_v51 = vadd.f32 %v3936_v22, %v3467_v21 }
0x1a94   :  { %v10646_v17 = vpop.f32.mrf.mxu1 }
0x1a96   :  { %v4097_v5 = vpop.f32.mrf.mxu1 }
0x1a97   :  { %v4098_v11 = vadd.f32 %v4097_v5, %v11913_v45 }
0x1a98   :  { %v10656_v55 = vpop.f32.mrf.mxu1 }
0x1a99   :  { %10663 = vmatpush3.xpose.msk.msra.mxu1 %vm330_vm9, %v4098_v11 }
0x1a9a   :  { %10672 = vmatprep.subr.mxu1 %v13213_v0 }
0x1a9c   :  { %10665 = vmatmul.mubr.msk.f32.vlgmr.msra.gmra.mxu1 %vm330_vm9, %v4022_v57 }
0x1a9d   :  { %10674 = vmatprep.mubr.msk.f32.mxu1 %vm11193_vm0, %v13213_v0  ;;  %10673 = vmatpush3.msra.mxu1 %v3948_v8 }
0x1a9e   :  { %10688 = vmatprep.subr.mxu1 %v13213_v0 }
0x1b5c   :  { %v4249_v6 = vpop.f32.mrf.mxu1 }
0x1b5d   :  { %v4253_v10 = vsel %vm330_vm9, %v4249_v6, -inf }
0x1b5e   :  { %4254 = vmax.xlane.f32.xlu1 %v4253_v10  ;;  %v10666_v41 = vpop.f32.mrf.mxu1 }
0x1be7   :  { %v4255_v7 = vpop.xlane.xlu1 %4254 }
0x1be8   :  { %v4256_v21 = vsub.f32 %v4249_v6, %v4255_v7 }
0x1bea   :  { %v4257_v22 = vmul.f32 1.442695, %v4256_v21 }
0x1bec   :  { %11028 = vpow2.f32 %v4257_v22 }
0x1bf9   :  { %v11029_v17 = vpop.eup %11028 }
0x1bfa   :  { %v4259_v5 = vsel %vm330_vm9, %v11029_v17, 0.0 }
0x1bfb   :  { %4260 = vadd.xlane.f32.xlu0 %v4259_v5 }
0x1c11   :  { %4101 = vrot.lane.b32.xlu0 %v11766_v46, %s11196_s25 }
0x1c84   :  { %v4261_v11 = vpop.xlane.xlu0 %4260 }
0x1c85   :  { %11030 = vrcp.f32 %v4261_v11 }
0x1c88   :  { %v11929_v55 = vpop.permute.xlu0 %4101 }
0x1c89   :  { %13231 = vst [vmem:[#allocation21_spill] sm:$0xff] %v11929_v55  ;;  %v4174_v57 = vadd.f32 %v4173_v18, %v11929_v55  ;;  %v11942_v18 = vrot.slane %v11679_v2, %v11651_v48 }
0x1c8b   :  { %10668 = vmatpush3.msra.mxu0 %v4174_v57  ;;  %13232 = vst [vmem:[#allocation22_spill] sm:$0xff] %v11942_v18 }
0x1c8c   :  { %10677 = vmatprep.subr.mxu0 %v13213_v0 }
0x1c92   :  { %v11031_v6 = vpop.eup %11030 }
0x1c93   :  { %v4263_v10 = vmul.f32 %v11031_v6, %v11029_v17 }
0x1c95   :  { %10670 = vmatmul.mubr.msk.f32.vlgmr.msra.gmra.mxu0 %vm330_vm9, %v4263_v10  ;;  %v4264_v41 = vadd.f32 %v4263_v10, %v3793_v58 }
0x1c96   :  { %10685 = vmatprep.mubr.msk.f32.mxu0 %vm11193_vm0, %v13213_v0 }
0x1c97   :  { %v4935_v7 = vmul.f32 0.25, %v4264_v41 }
0x1c99   :  { %5081 = vst.msk [vmem:[#allocation8] sm:$0xff] %vm330_vm9, %v4935_v7 }
0x1d55   :  { %v4334_v21 = vpop.f32.mrf.mxu0 }
0x1d56   :  { %10675 = vmatmul.mubr.msk.f32.vlgmr.msra.gmra.mxu1 %vm330_vm9, %v4334_v21 }
0x1d57   :  { %v10671_v22 = vpop.f32.mrf.mxu0  ;;  %10696 = vmatprep.mubr.msk.f32.mxu1 %vm11193_vm0, %v13213_v0 }
0x1e16   :  { %v4407_v17 = vpop.f32.mrf.mxu1 }
0x1e17   :  { %v4411_v5 = vadd.f32 %v4407_v17, %v3940_v51 }
0x1e18   :  { %v10676_v58 = vpop.f32.mrf.mxu1 }
0x1e19   :  { %v4416_v8 = vadd.f32 %v11942_v18, %v4411_v5 }
0x1e1b   :  { %v4418_v11 = vrot.slane %v4416_v8, 1  ;;  %v4419_v57 = vrot.slane %v4416_v8, 2  ;;  %v4420_v6 = vrot.slane %v4416_v8, 3  ;;  %v4421_v10 = vrot.slane %v4416_v8, 4 }
0x1e1c   :  { %v4422_v41 = vrot.slane %v4416_v8, 5  ;;  %v4423_v7 = vrot.slane %v4416_v8, 6  ;;  %v4424_v21 = vrot.slane %v4416_v8, 7  ;;  %v4433_v51 = vadd.f32 %v4416_v8, %v11716_v29 }
0x1e1d   :  { %v4434_v22 = vadd.f32 %v4418_v11, %v11704_v19  ;;  %v4435_v9 = vadd.f32 %v4419_v57, %v11707_v20  ;;  %v4436_v1 = vadd.f32 %v4420_v6, %v11710_v53  ;;  %v4437_v0 = vadd.f32 %v4421_v10, %v11713_v63 }
0x1e1e   :  { %v4438_v17 = vadd.f32 %v4422_v41, %v11719_v31  ;;  %v4439_v48 = vadd.f32 %v4423_v7, %v11724_v16  ;;  %v4440_v37 = vadd.f32 %v4424_v21, %v11727_v35 }
0x1e1f   :  { %v4449_v5 = vrot.slane %v4434_v22, 7  ;;  %v4451_v58 = vrot.slane %v4435_v9, 6  ;;  %v4453_v42 = vrot.slane %v4436_v1, 5  ;;  %v4455_v20 = vrot.slane %v4437_v0, 4 }
0x1e20   :  { %v4457_v11 = vrot.slane %v4438_v17, 3  ;;  %v4459_v29 = vrot.slane %v4439_v48, 2  ;;  %v4461_v8 = vrot.slane %v4440_v37, 1 }
0x1e21   :  { %v4450_v14 = vsel %vm80_vm2, %v4449_v5, %v4433_v51 }
0x1e22   :  { %v4452_v19 = vsel %vm83_vm3, %v4451_v58, %v4450_v14 }
0x1e23   :  { %v4454_v53 = vsel %vm86_vm4, %v4453_v42, %v4452_v19 }
0x1e24   :  { %v4456_v63 = vsel %vm89_vm5, %v4455_v20, %v4454_v53 }
0x1e25   :  { %v4458_v31 = vsel %vm92_vm6, %v4457_v11, %v4456_v63 }
0x1e26   :  { %v4460_v57 = vsel %vm95_vm7, %v4459_v29, %v4458_v31 }
0x1e27   :  { %v4462_v16 = vsel %vm98_vm8, %v4461_v8, %v4460_v57 }
0x1e28   :  { %v4464_v35 = vsel %vm100_vm1, %v4462_v16, 0.0 }
0x1e29   :  { %4465 = vadd.xlane.f32.xlu1 %v4464_v35 }
0x1eb2   :  { %v4466_v6 = vpop.xlane.xlu1 %4465 }
0x1eb3   :  { %v4467_v10 = vmul.f32 0.03125, %v4466_v6 }
0x1eb5   :  { %v4469_v14 = vrot.slane %v4467_v10, 1  ;;  %v4470_v41 = vrot.slane %v4467_v10, 2  ;;  %v4471_v7 = vrot.slane %v4467_v10, 3  ;;  %v4472_v42 = vrot.slane %v4467_v10, 4 }
0x1eb6   :  { %v4473_v21 = vrot.slane %v4467_v10, 5  ;;  %v4474_v5 = vrot.slane %v4467_v10, 6  ;;  %v4475_v58 = vrot.slane %v4467_v10, 7  ;;  %v11961_v19 = vsub.f32 %v4433_v51, %v4467_v10 }
0x1eb7   :  { %v11963_v20 = vsub.f32 %v4434_v22, %v4469_v14  ;;  %v11965_v53 = vsub.f32 %v4435_v9, %v4470_v41  ;;  %v11967_v11 = vsub.f32 %v4436_v1, %v4471_v7  ;;  %v11969_v63 = vsub.f32 %v4437_v0, %v4472_v42 }
0x1eb8   :  { %v11971_v29 = vsub.f32 %v4438_v17, %v4473_v21  ;;  %v11973_v31 = vsub.f32 %v4439_v48, %v4474_v5  ;;  %v11975_v8 = vsub.f32 %v4440_v37, %v4475_v58  ;;  %v4492_v0 = vmul.f32 %v11961_v19, %v11961_v19 }
0x1eb9   :  { %v4493_v57 = vmul.f32 %v11963_v20, %v11963_v20  ;;  %v4494_v51 = vmul.f32 %v11965_v53, %v11965_v53  ;;  %v4495_v9 = vmul.f32 %v11967_v11, %v11967_v11  ;;  %v4496_v1 = vmul.f32 %v11969_v63, %v11969_v63 }
0x1eba   :  { %v4497_v48 = vmul.f32 %v11971_v29, %v11971_v29  ;;  %v4498_v17 = vmul.f32 %v11973_v31, %v11973_v31  ;;  %v4499_v16 = vmul.f32 %v11975_v8, %v11975_v8 }
0x1ebb   :  { %v4508_v37 = vrot.slane %v4493_v57, 7  ;;  %v4510_v22 = vrot.slane %v4494_v51, 6  ;;  %v4512_v6 = vrot.slane %v4495_v9, 5  ;;  %v4514_v14 = vrot.slane %v4496_v1, 4  ;;  %v4581_v9 = vld [vmem:[#allocation5 + $0x58] sm:$0xff] }
0x1ebc   :  { %v4516_v7 = vrot.slane %v4497_v48, 3  ;;  %v4518_v21 = vrot.slane %v4498_v17, 2  ;;  %v4520_v58 = vrot.slane %v4499_v16, 1  ;;  %10678 = vmatpush3.msra.mxu0 %v4581_v9  ;;  %v13233_v1 = vmov 0.0   ;;  %v4578_v48 = vld [vmem:[#allocation5 + $0x40] sm:$0xff]  ;;  %v4584_v17 = vld [vmem:[#allocation5 + $0x68] sm:$0xff] }
0x1ebd   :  { %v4509_v35 = vsel %vm80_vm2, %v4508_v37, %v4492_v0  ;;  %v4580_v0 = vld [vmem:[#allocation5 + $0x50] sm:$0xff]  ;;  %10679 = vmatprep.subr.mxu0 %v13233_v1  ;;  %v4579_v37 = vld [vmem:[#allocation5 + $0x48] sm:$0xff] }
0x1ebe   :  { %v4511_v10 = vsel %vm83_vm3, %v4510_v22, %v4509_v35  ;;  %10680 = vmatpush3.msra.mxu0 %v4580_v0  ;;  %v4586_v22 = vld [vmem:[#allocation5 + $0x78] sm:$0xff]  ;;  %v12043_v0 = vld [vmem:[%s13205_s0 + $0x6] sm:$0x3] }
0x1ebf   :  { %v4513_v41 = vsel %vm86_vm4, %v4512_v6, %v4511_v10  ;;  %10681 = vmatprep.subr.mxu0 %v13233_v1  ;;  %10689 = vmatpush3.xpose.msk.msra.mxu1 %vm2254_vm10, %v4586_v22  ;;  %v12014_v10 = vld [vmem:[%s13205_s0] sm:$0x3] }
0x1ec0   :  { %v4515_v42 = vsel %vm89_vm5, %v4514_v14, %v4513_v41  ;;  %10682 = vmatpush3.msra.mxu0 %v4579_v37  ;;  %10690 = vmatprep.subr.mxu1 %v13233_v1  ;;  %v5086_v14 = vrot.slane %v12014_v10, 1  ;;  %v12020_v41 = vld [vmem:[%s13205_s0 + $0x4] sm:$0x3]  ;;  %v5090_v37 = vrot.slane %v12043_v0, 6 }
0x1ec1   :  { %v4517_v5 = vsel %vm92_vm6, %v4516_v7, %v4515_v42  ;;  %10683 = vmatprep.subr.mxu0 %v13233_v1  ;;  %v5088_v7 = vrot.slane %v12020_v41, 7  ;;  %v51_v42 = vld [vmem:[%s13208_s3 + $0x10] sm:$0x3f] }
0x1ec2   :  { %v4519_v57 = vsel %vm95_vm7, %v4518_v21, %v4517_v5  ;;  %10684 = vmatpush3.msra.mxu0 %v4578_v48  ;;  %v12029_v21 = vld [vmem:[%s13205_s0 + $0x2] sm:$0x3] }
0x1ec3   :  { %v4521_v51 = vsel %vm98_vm8, %v4520_v58, %v4519_v57  ;;  %10699 = vmatprep.subr.mxu0 %v13233_v1  ;;  %v5087_v5 = vsel %vm80_vm2, %v12029_v21, %v5086_v14  ;;  %v12034_v57 = vrot.slane %v51_v42, %v11335_v30 }
0x1ec4   :  { %v4523_v18 = vsel %vm100_vm1, %v4521_v51, 0.0  ;;  %v12037_v51 = vrot.slane %v51_v42, %v11327_v28  ;;  %v5089_v9 = vsel %vm83_vm3, %v5088_v7, %v5087_v5 }
0x1ec5   :  { %4524 = vadd.xlane.f32.xlu1 %v4523_v18  ;;  %v4585_v18 = vld [vmem:[#allocation5 + $0x70] sm:$0xff] }
0x1ec6   :  { %10691 = vmatpush3.xpose.msk.msra.mxu1 %vm2254_vm10, %v4585_v18 }
0x1ec7   :  { %10692 = vmatprep.subr.mxu1 %v13233_v1 }
0x1eca   :  { %10693 = vmatpush3.xpose.msk.msra.mxu1 %vm2254_vm10, %v4584_v17 }
0x1ecb   :  { %10694 = vmatprep.subr.mxu1 %v13233_v1 }
0x1f4e   :  { %v4525_v16 = vpop.xlane.xlu1 %4524 }
0x1f4f   :  { %v4526_v35 = vmul.f32 0.03125, %v4525_v16 }
0x1f51   :  { %v4527_v6 = vadd.f32 1e-05, %v4526_v35 }
0x1f53   :  { %11032 = vrsqrt.f32 %v4527_v6 }
0x1f60   :  { %v11033_v58 = vpop.eup %11032 }
0x1f61   :  { %v4530_v48 = vrot.slane %v11033_v58, 1  ;;  %v4531_v22 = vrot.slane %v11033_v58, 2  ;;  %v4532_v18 = vrot.slane %v11033_v58, 3  ;;  %v4533_v17 = vrot.slane %v11033_v58, 4 }
0x1f62   :  { %v4534_v16 = vrot.slane %v11033_v58, 5  ;;  %v4535_v35 = vrot.slane %v11033_v58, 6  ;;  %v4536_v30 = vrot.slane %v11033_v58, 7  ;;  %v4545_v6 = vmul.f32 %v11033_v58, %v11961_v19 }
0x1f63   :  { %v4546_v28 = vmul.f32 %v4530_v48, %v11963_v20  ;;  %v4547_v14 = vmul.f32 %v4531_v22, %v11965_v53  ;;  %v4548_v7 = vmul.f32 %v4532_v18, %v11967_v11  ;;  %v4549_v42 = vmul.f32 %v4533_v17, %v11969_v63 }
0x1f64   :  { %v4550_v5 = vmul.f32 %v4534_v16, %v11971_v29  ;;  %v4551_v24 = vmul.f32 %v4535_v35, %v11973_v31  ;;  %v4552_v45 = vmul.f32 %v4536_v30, %v11975_v8  ;;  %v4557_v55 = vmul.f32 %v12034_v57, %v4545_v6  ;;  %v12065_v31 = vld [vmem:[%s13205_s0 + $0x8] sm:$0x3] }
0x1f65   :  { %v4558_v61 = vmul.f32 %v12034_v57, %v4546_v28  ;;  %v4559_v19 = vmul.f32 %v12034_v57, %v4547_v14  ;;  %v4560_v20 = vmul.f32 %v12034_v57, %v4548_v7  ;;  %v4561_v53 = vmul.f32 %v12034_v57, %v4549_v42  ;;  %v12110_v42 = vld [vmem:[%s13205_s0 + $0xc] sm:$0x3] }
0x1f66   :  { %v4562_v11 = vmul.f32 %v12034_v57, %v4550_v5  ;;  %v4563_v63 = vmul.f32 %v12034_v57, %v4551_v24  ;;  %v5091_v29 = vsel %vm86_vm4, %v5090_v37, %v5089_v9  ;;  %v5092_v8 = vrot.slane %v12065_v31, 5  ;;  %v12084_v9 = vld [vmem:[%s13205_s0 + $0xa] sm:$0x3] }
0x1f67   :  { %v4564_v58 = vmul.f32 %v12034_v57, %v4552_v45  ;;  %v12070_v48 = vadd.f32 %v12037_v51, %v4558_v61  ;;  %v12073_v22 = vadd.f32 %v12037_v51, %v4559_v19  ;;  %v12076_v18 = vadd.f32 %v12037_v51, %v4560_v20 }
0x1f68   :  { %v12079_v24 = vadd.f32 %v12037_v51, %v4561_v53  ;;  %v5094_v37 = vrot.slane %v12084_v9, 4  ;;  %v12088_v45 = vadd.f32 %v12037_v51, %v4557_v55  ;;  %v12091_v61 = vadd.f32 %v12037_v51, %v4562_v11 }
0x1f69   :  { %v4599_v17 = vrot.slane %v12070_v48, 7  ;;  %v4601_v16 = vrot.slane %v12073_v22, 6  ;;  %v12096_v35 = vadd.f32 %v12037_v51, %v4563_v63  ;;  %v5093_v30 = vsel %vm89_vm5, %v5092_v8, %v5091_v29 }
0x1f6a   :  { %v12100_v6 = vadd.f32 %v12037_v51, %v4564_v58  ;;  %v4603_v55 = vrot.slane %v12076_v18, 5  ;;  %v4605_v7 = vrot.slane %v12079_v24, 4  ;;  %v5096_v5 = vrot.slane %v12110_v42, 3  ;;  %v12123_v58 = vld [vmem:[%s13205_s0 + $0xe] sm:$0x3] }
0x1f6b   :  { %v4600_v28 = vsel %vm80_vm2, %v4599_v17, %v12088_v45  ;;  %v4607_v20 = vrot.slane %v12091_v61, 3  ;;  %v5095_v53 = vsel %vm92_vm6, %v5094_v37, %v5093_v30  ;;  %v4609_v63 = vrot.slane %v12096_v35, 2 }
0x1f6c   :  { %v4602_v14 = vsel %vm83_vm3, %v4601_v16, %v4600_v28  ;;  %v4611_v8 = vrot.slane %v12100_v6, 1  ;;  %v5098_v17 = vrot.slane %v12123_v58, 2  ;;  %v5082_v28 = vld [vmem:[#allocation2] sm:$0xff]  ;;  %v5097_v37 = vsel %vm95_vm7, %v5096_v5, %v5095_v53 }
0x1f6d   :  { %v4604_v19 = vsel %vm86_vm4, %v4603_v55, %v4602_v14  ;;  %v5083_v14 = vld [vmem:[#allocation2 + $0x20] sm:$0xff] }
0x1f6e   :  { %v4606_v11 = vsel %vm89_vm5, %v4605_v7, %v4604_v19  ;;  %v12134_v55 = vsel %vm98_vm8, %v5098_v17, %v5097_v37  ;;  %v4583_v7 = vld [vmem:[#allocation5 + $0x60] sm:$0xff]  ;;  %v13234_v19 = vsub.s32 6, %v11324_v27 }
0x1f6f   :  { %v4608_v29 = vsel %vm92_vm6, %v4607_v20, %v4606_v11  ;;  %10695 = vmatpush3.xpose.msk.msra.mxu1 %vm2254_vm10, %v4583_v7  ;;  %v5084_v5 = vld [vmem:[#allocation2 + $0x40] sm:$0xff] }
0x1f70   :  { %v4610_v16 = vsel %vm95_vm7, %v4609_v63, %v4608_v29  ;;  %10714 = vmatprep.subr.mxu1 %v13233_v1  ;;  %v12158_v20 = vrot.slane %v11679_v2, %v13234_v19 }
0x1f71   :  { %v4612_v30 = vsel %vm98_vm8, %v4611_v8, %v4610_v16 }
0x1f72   :  { %10686 = vmatmul.mubr.msk.f32.vlgmr.msra.gmra.mxu0 %vm100_vm1, %v4612_v30  ;;  %v5481_v30 = vld [vmem:[#allocation2 + $0x8] sm:$0xff] }
0x1f73   :  { %10700 = vmatpush3.xpose.msk.msra.mxu0 %vm100_vm1, %v5082_v28  ;;  %10701 = vmatprep.mubr.msk.f32.mxu0 %vm11193_vm0, %v13233_v1 }
0x1f74   :  { %10704 = vmatprep.subr.mxu0 %v13233_v1 }
0x1f76   :  { %10702 = vmatmul.mubr.msk.f32.vlgmr.msra.gmra.mxu0 %vm100_vm1, %v12134_v55 }
0x1f77   :  { %10705 = vmatpush3.xpose.msk.msra.mxu0 %vm100_vm1, %v5083_v14  ;;  %10706 = vmatprep.mubr.msk.f32.mxu0 %vm11193_vm0, %v13233_v1  ;;  %v5483_v14 = vld [vmem:[#allocation2 + $0x48] sm:$0xff] }
0x1f78   :  { %10709 = vmatprep.subr.mxu0 %v13233_v1 }
0x1f7a   :  { %10707 = vmatmul.mubr.msk.f32.vlgmr.msra.gmra.mxu0 %vm100_vm1, %v12134_v55 }
0x1f7b   :  { %10711 = vmatprep.mubr.msk.f32.mxu0 %vm11193_vm0, %v13233_v1  ;;  %10710 = vmatpush3.xpose.msk.msra.mxu0 %vm100_vm1, %v5084_v5 }
0x1f7c   :  { %10719 = vmatprep.subr.mxu0 %v13233_v1 }
0x1f7e   :  { %10712 = vmatmul.mubr.msk.f32.vlgmr.msra.gmra.mxu0 %vm100_vm1, %v12134_v55 }
0x1f7f   :  { %10721 = vmatprep.mubr.msk.f32.mxu0 %vm11193_vm0, %v13233_v1 }
0x2032   :  { %v4681_v53 = vpop.f32.mrf.mxu0 }
0x2033   :  { %v4682_v11 = vadd.f32 %v4681_v53, %v12158_v20 }
0x2034   :  { %v10687_v63 = vpop.f32.mrf.mxu0 }
0x2035   :  { %v4685_v29 = vmax.f32 %v4682_v11, 0.0 }
0x2036   :  { %v5171_v8 = vpop.f32.mrf.mxu0 }
0x2037   :  { %10697 = vmatmul.mubr.msk.f32.vlgmr.msra.gmra.mxu1 %vm2254_vm10, %v4685_v29  ;;  %v5172_v2 = vadd.f32 %v5171_v8, %v11343_v34 }
0x2038   :  { %v10703_v17 = vpop.f32.mrf.mxu0  ;;  %10716 = vmatprep.mubr.msk.f32.mxu1 %vm11193_vm0, %v13233_v1 }
0x203a   :  { %v5244_v16 = vpop.f32.mrf.mxu0 }
0x203b   :  { %v5245_v28 = vadd.f32 %v5244_v16, %v11339_v32 }
0x203c   :  { %v10708_v37 = vpop.f32.mrf.mxu0 }
0x203d   :  { %10715 = vmatpush3.xpose.msk.msra.mxu1 %vm330_vm9, %v5245_v28 }
0x203e   :  { %10724 = vmatprep.subr.mxu1 %v13233_v1  ;;  %v5317_v17 = vpop.f32.mrf.mxu0 }
0x203f   :  { %v5318_v16 = vadd.f32 %v5317_v17, %v11360_v43 }
0x2040   :  { %10717 = vmatmul.mubr.msk.f32.vlgmr.msra.gmra.mxu1 %vm330_vm9, %v5172_v2  ;;  %v10713_v28 = vpop.f32.mrf.mxu0 }
0x2041   :  { %10725 = vmatpush3.xpose.msk.msra.mxu1 %vm100_vm1, %v5481_v30  ;;  %10726 = vmatprep.mubr.msk.f32.mxu1 %vm11193_vm0, %v13233_v1 }
0x2042   :  { %10734 = vmatprep.subr.mxu1 %v13233_v1  ;;  %10720 = vmatpush3.msra.mxu0 %v5318_v16 }
0x2043   :  { %10729 = vmatprep.subr.mxu0 %v13233_v1 }
0x2044   :  { %10727 = vmatmul.mubr.msk.f32.vlgmr.msra.gmra.mxu1 %vm100_vm1, %v12134_v55 }
0x2045   :  { %10735 = vmatpush3.xpose.msk.msra.mxu1 %vm100_vm1, %v5483_v14  ;;  %10736 = vmatprep.mubr.msk.f32.mxu1 %vm11193_vm0, %v13233_v1  ;;  %v5482_v14 = vld [vmem:[#allocation2 + $0x28] sm:$0xff] }
0x2046   :  { %10744 = vmatprep.subr.mxu1 %v13233_v1 }
0x2048   :  { %10737 = vmatmul.mubr.msk.f32.vlgmr.msra.gmra.mxu1 %vm100_vm1, %v12134_v55 }
0x2049   :  { %10746 = vmatprep.mubr.msk.f32.mxu1 %vm11193_vm0, %v13233_v1 }
0x20f7   :  { %v12183_v32 = vpop.f32.mrf.mxu1 }
0x20f9   :  { %v10698_v34 = vpop.f32.mrf.mxu1 }
0x2100   :  { %v5393_v7 = vpop.f32.mrf.mxu1 }
0x2101   :  { %v5397_v5 = vsel %vm330_vm9, %v5393_v7, -inf }
0x2102   :  { %5398 = vmax.xlane.f32.xlu1 %v5397_v5  ;;  %v10718_v19 = vpop.f32.mrf.mxu1 }
0x2104   :  { %v5554_v53 = vpop.f32.mrf.mxu1 }
0x2106   :  { %v10728_v11 = vpop.f32.mrf.mxu1 }
0x2107   :  { %v5555_v11 = vadd.f32 %v5554_v53, %v11390_v59  ;;  %v5085_v59 = vld [vmem:[#allocation2 + $0x60] sm:$0xff] }
0x2108   :  { %v5700_v63 = vpop.f32.mrf.mxu1 }
0x2109   :  { %v5701_v29 = vadd.f32 %v5700_v63, %v11402_v13 }
0x210a   :  { %v10738_v8 = vpop.f32.mrf.mxu1 }
0x210b   :  { %10745 = vmatpush3.msra.mxu1 %v5701_v29 }
0x210c   :  { %10754 = vmatprep.subr.mxu1 %v13233_v1 }
0x218b   :  { %v5399_v37 = vpop.xlane.xlu1 %5398 }
0x218c   :  { %v5400_v2 = vsub.f32 %v5393_v7, %v5399_v37 }
0x218e   :  { %v5401_v30 = vmul.f32 1.442695, %v5400_v2 }
0x2190   :  { %11034 = vpow2.f32 %v5401_v30 }
0x219d   :  { %v11035_v34 = vpop.eup %11034 }
0x219e   :  { %10722 = vmatmul.mubr.msk.f32.vlgmr.msra.gmra.mxu0 %vm330_vm9, %v11035_v34  ;;  %v5403_v17 = vsel %vm330_vm9, %v11035_v34, 0.0  ;;  %v6011_v34 = vld [vmem:[#allocation2 + $0x30] sm:$0xff] }
0x219f   :  { %10730 = vmatpush3.xpose.msk.msra.mxu0 %vm100_vm1, %v5482_v14  ;;  %10731 = vmatprep.mubr.msk.f32.mxu0 %vm11193_vm0, %v13233_v1 }
0x21a0   :  { %10739 = vmatprep.subr.mxu0 %v13233_v1 }
0x21a2   :  { %10732 = vmatmul.mubr.msk.f32.vlgmr.msra.gmra.mxu0 %vm100_vm1, %v12134_v55 }
0x21a3   :  { %10741 = vmatprep.mubr.msk.f32.mxu0 %vm11193_vm0, %v13233_v1 }
0x225e   :  { %v5475_v43 = vpop.f32.mrf.mxu0 }
0x2260   :  { %v10723_v13 = vpop.f32.mrf.mxu0 }
0x2261   :  { %v5484_v13 = vld [vmem:[#allocation2 + $0x68] sm:$0xff] }
0x2262   :  { %v5627_v7 = vpop.f32.mrf.mxu0 }
0x2263   :  { %v5628_v5 = vadd.f32 %v5627_v7, %v11392_v60 }
0x2264   :  { %v10733_v19 = vpop.f32.mrf.mxu0 }
0x2265   :  { %10740 = vmatpush3.xpose.msk.msra.mxu0 %vm330_vm9, %v5628_v5 }
0x2266   :  { %10749 = vmatprep.subr.mxu0 %v13233_v1 }
0x2268   :  { %10742 = vmatmul.mubr.msk.f32.vlgmr.msra.gmra.mxu0 %vm330_vm9, %v5555_v11  ;;  %v6010_v11 = vld [vmem:[#allocation2 + $0x10] sm:$0xff] }
0x2269   :  { %10751 = vmatprep.mubr.msk.f32.mxu0 %vm11193_vm0, %v13233_v1  ;;  %10750 = vmatpush3.msra.mxu0 %v5484_v13 }
0x226a   :  { %10759 = vmatprep.subr.mxu0 %v13233_v1 }
0x2328   :  { %v5776_v63 = vpop.f32.mrf.mxu0 }
0x2329   :  { %v5780_v29 = vsel %vm330_vm9, %v5776_v63, -inf }
0x232a   :  { %5781 = vmax.xlane.f32.xlu1 %v5780_v29  ;;  %v10743_v8 = vpop.f32.mrf.mxu0 }
0x232b   :  { %v6012_v8 = vld [vmem:[#allocation2 + $0x50] sm:$0xff] }
0x232e   :  { %5404 = vadd.xlane.f32.xlu1 %v5403_v17 }
0x23b3   :  { %v5782_v60 = vpop.xlane.xlu1 %5781 }
0x23b4   :  { %v5783_v16 = vsub.f32 %v5776_v63, %v5782_v60 }
0x23b6   :  { %v5784_v28 = vmul.f32 1.442695, %v5783_v16 }
0x23b7   :  { %v5405_v37 = vpop.xlane.xlu1 %5404 }
0x23b8   :  { %11036 = vpow2.f32 %v5784_v28 }
0x23b9   :  { %11038 = vrcp.f32 %v5405_v37 }
0x23c5   :  { %v11037_v53 = vpop.eup %11036 }
0x23c6   :  { %v11039_v2 = vpop.eup %11038  ;;  %10747 = vmatmul.mubr.msk.f32.vlgmr.msra.gmra.mxu1 %vm330_vm9, %v11037_v53  ;;  %v5786_v30 = vsel %vm330_vm9, %v11037_v53, 0.0 }
0x23c7   :  { %5787 = vadd.xlane.f32.xlu0 %v5786_v30  ;;  %10755 = vmatpush3.msra.mxu1 %v5085_v59  ;;  %v5480_v14 = vmul.f32 %v11039_v2, %v5475_v43 }
0x23c8   :  { %10756 = vmatprep.mubr.msk.f32.mxu1 %vm11193_vm0, %v13233_v1  ;;  %10764 = vmatprep.subr.mxu1 %v13233_v1 }
0x23ca   :  { %10757 = vmatmul.mubr.msk.f32.vlgmr.msra.gmra.mxu1 %vm330_vm9, %v5480_v14 }
0x23cb   :  { %10765 = vmatpush3.xpose.msk.msra.mxu1 %vm100_vm1, %v6011_v34  ;;  %10766 = vmatprep.mubr.msk.f32.mxu1 %vm11193_vm0, %v13233_v1 }
0x23cc   :  { %10774 = vmatprep.subr.mxu1 %v13233_v1 }
0x23ce   :  { %10767 = vmatmul.mubr.msk.f32.vlgmr.msra.gmra.mxu1 %vm100_vm1, %v12134_v55 }
0x23cf   :  { %10776 = vmatprep.mubr.msk.f32.mxu1 %vm11193_vm0, %v13233_v1 }
0x2450   :  { %v5788_v43 = vpop.xlane.xlu0 %5787 }
0x2451   :  { %11040 = vrcp.f32 %v5788_v43 }
0x245e   :  { %v11041_v7 = vpop.eup %11040 }
0x2486   :  { %v5858_v5 = vpop.f32.mrf.mxu1 }
0x2487   :  { %v5863_v19 = vmul.f32 %v11041_v7, %v5858_v5 }
0x2488   :  { %v10748_v63 = vpop.f32.mrf.mxu1 }
0x2489   :  { %10752 = vmatmul.mubr.msk.f32.vlgmr.msra.gmra.mxu0 %vm330_vm9, %v5863_v19 }
0x248a   :  { %v12224_v29 = vpop.f32.mrf.mxu1  ;;  %10760 = vmatpush3.xpose.msk.msra.mxu0 %vm100_vm1, %v6010_v11  ;;  %10761 = vmatprep.mubr.msk.f32.mxu0 %vm11193_vm0, %v13233_v1  ;;  %v6467_v11 = vld [vmem:[#allocation2 + $0x18] sm:$0xff] }
0x248b   :  { %10769 = vmatprep.subr.mxu0 %v13233_v1 }
0x248c   :  { %v10758_v17 = vpop.f32.mrf.mxu1 }
0x248d   :  { %10762 = vmatmul.mubr.msk.f32.vlgmr.msra.gmra.mxu0 %vm100_vm1, %v12134_v55  ;;  %v6013_v17 = vld [vmem:[#allocation2 + $0x70] sm:$0xff] }
0x248e   :  { %v6156_v60 = vpop.f32.mrf.mxu1  ;;  %10770 = vmatpush3.xpose.msk.msra.mxu0 %vm100_vm1, %v6012_v8  ;;  %10771 = vmatprep.mubr.msk.f32.mxu0 %vm11193_vm0, %v13233_v1 }
0x248f   :  { %v6157_v16 = vadd.f32 %v6156_v60, %v11438_v47  ;;  %10779 = vmatprep.subr.mxu0 %v13233_v1 }
0x2490   :  { %v10768_v28 = vpop.f32.mrf.mxu1 }
0x2491   :  { %10772 = vmatmul.mubr.msk.f32.vlgmr.msra.gmra.mxu0 %vm100_vm1, %v12134_v55  ;;  %10775 = vmatpush3.xpose.msk.msra.mxu1 %vm330_vm9, %v6157_v16 }
0x2492   :  { %10781 = vmatprep.mubr.msk.f32.mxu0 %vm11193_vm0, %v13233_v1  ;;  %10784 = vmatprep.subr.mxu1 %v13233_v1 }
0x2549   :  { %v5933_v37 = vpop.f32.mrf.mxu0 }
0x254b   :  { %v10753_v59 = vpop.f32.mrf.mxu0 }
0x254d   :  { %v6083_v53 = vpop.f32.mrf.mxu0 }
0x254e   :  { %v6084_v2 = vadd.f32 %v6083_v53, %v11449_v52  ;;  %v6468_v53 = vld [vmem:[#allocation2 + $0x38] sm:$0xff] }
0x254f   :  { %v10763_v30 = vpop.f32.mrf.mxu0 }
0x2550   :  { %10777 = vmatmul.mubr.msk.f32.vlgmr.msra.gmra.mxu1 %vm330_vm9, %v6084_v2 }
0x2551   :  { %v6229_v47 = vpop.f32.mrf.mxu0  ;;  %10786 = vmatprep.mubr.msk.f32.mxu1 %vm11193_vm0, %v13233_v1  ;;  %10785 = vmatpush3.msra.mxu1 %v6013_v17 }
0x2552   :  { %v6230_v14 = vadd.f32 %v6229_v47, %v11456_v62  ;;  %v6469_v62 = vld [vmem:[#allocation2 + $0x58] sm:$0xff]  ;;  %10794 = vmatprep.subr.mxu1 %v13233_v1 }
0x2553   :  { %v10773_v34 = vpop.f32.mrf.mxu0 }
0x2554   :  { %10780 = vmatpush3.msra.mxu0 %v6230_v14 }
0x2555   :  { %10789 = vmatprep.subr.mxu0 %v13233_v1 }
0x2610   :  { %v6305_v13 = vpop.f32.mrf.mxu1 }
0x2611   :  { %v6309_v43 = vsel %vm330_vm9, %v6305_v13, -inf }
0x2612   :  { %6310 = vmax.xlane.f32.xlu1 %v6309_v43  ;;  %v10778_v7 = vpop.f32.mrf.mxu1  ;;  %v6007_v43 = vadd.f32 %v12224_v29, %v5933_v37 }
0x269b   :  { %v6311_v5 = vpop.xlane.xlu1 %6310 }
0x269c   :  { %v6312_v52 = vsub.f32 %v6305_v13, %v6311_v5 }
0x269e   :  { %v6313_v19 = vmul.f32 1.442695, %v6312_v52 }
0x26a0   :  { %11042 = vpow2.f32 %v6313_v19 }
0x26ad   :  { %v11043_v63 = vpop.eup %11042 }
0x26ae   :  { %10782 = vmatmul.mubr.msk.f32.vlgmr.msra.gmra.mxu0 %vm330_vm9, %v11043_v63  ;;  %v6315_v8 = vsel %vm330_vm9, %v11043_v63, 0.0 }
0x26af   :  { %10790 = vmatpush3.xpose.msk.msra.mxu0 %vm100_vm1, %v6467_v11  ;;  %6316 = vadd.xlane.f32.xlu1 %v6315_v8 }
0x26b0   :  { %10791 = vmatprep.mubr.msk.f32.mxu0 %vm11193_vm0, %v13233_v1  ;;  %10799 = vmatprep.subr.mxu0 %v13233_v1 }
0x26b2   :  { %10792 = vmatmul.mubr.msk.f32.vlgmr.msra.gmra.mxu0 %vm100_vm1, %v12134_v55 }
0x26b3   :  { %10800 = vmatpush3.xpose.msk.msra.mxu0 %vm100_vm1, %v6469_v62  ;;  %10801 = vmatprep.mubr.msk.f32.mxu0 %vm11193_vm0, %v13233_v1 }
0x26b4   :  { %10809 = vmatprep.subr.mxu0 %v13233_v1 }
0x26b6   :  { %10802 = vmatmul.mubr.msk.f32.vlgmr.msra.gmra.mxu0 %vm100_vm1, %v12134_v55 }
0x26b7   :  { %10811 = vmatprep.mubr.msk.f32.mxu0 %vm11193_vm0, %v13233_v1 }
0x2738   :  { %v6317_v60 = vpop.xlane.xlu1 %6316 }
0x2739   :  { %11044 = vrcp.f32 %v6317_v60  ;;  %v6470_v60 = vld [vmem:[#allocation2 + $0x78] sm:$0xff] }
0x2746   :  { %v11045_v16 = vpop.eup %11044 }
0x276e   :  { %v6387_v28 = vpop.f32.mrf.mxu0 }
0x276f   :  { %v6392_v59 = vmul.f32 %v11045_v16, %v6387_v28 }
0x2770   :  { %v10783_v2 = vpop.f32.mrf.mxu0 }
0x2771   :  { %10787 = vmatmul.mubr.msk.f32.vlgmr.msra.gmra.mxu1 %vm330_vm9, %v6392_v59 }
0x2772   :  { %v6540_v30 = vpop.f32.mrf.mxu0  ;;  %10795 = vmatpush3.xpose.msk.msra.mxu1 %vm100_vm1, %v6468_v53  ;;  %10796 = vmatprep.mubr.msk.f32.mxu1 %vm11193_vm0, %v13233_v1 }
0x2773   :  { %10804 = vmatprep.subr.mxu1 %v13233_v1 }
0x2774   :  { %v10793_v47 = vpop.f32.mrf.mxu0 }
0x2775   :  { %10797 = vmatmul.mubr.msk.f32.vlgmr.msra.gmra.mxu1 %vm100_vm1, %v12134_v55  ;;  %v6541_v55 = vadd.f32 %v6540_v30, %v11495_v39 }
0x2776   :  { %v6686_v14 = vpop.f32.mrf.mxu0  ;;  %10806 = vmatprep.mubr.msk.f32.mxu1 %vm11193_vm0, %v13233_v1 }
0x2777   :  { %v6687_v34 = vadd.f32 %v6686_v14, %v11505_v50 }
0x2778   :  { %v10803_v13 = vpop.f32.mrf.mxu0 }
0x2779   :  { %10810 = vmatpush3.msra.mxu0 %v6687_v34 }
0x277a   :  { %10819 = vmatprep.subr.mxu0 %v13233_v1 }
0x2831   :  { %v6462_v7 = vpop.f32.mrf.mxu1 }
0x2832   :  { %v6466_v5 = vadd.f32 %v6462_v7, %v6007_v43 }
0x2833   :  { %v10788_v52 = vpop.f32.mrf.mxu1 }
0x2835   :  { %v6613_v19 = vpop.f32.mrf.mxu1 }
0x2836   :  { %v6614_v11 = vadd.f32 %v6613_v19, %v11492_v33 }
0x2837   :  { %v10798_v63 = vpop.f32.mrf.mxu1 }
0x2838   :  { %10805 = vmatpush3.xpose.msk.msra.mxu1 %vm330_vm9, %v6614_v11 }
0x2839   :  { %10814 = vmatprep.subr.mxu1 %v13233_v1 }
0x283b   :  { %10807 = vmatmul.mubr.msk.f32.vlgmr.msra.gmra.mxu1 %vm330_vm9, %v6541_v55 }
0x283c   :  { %10816 = vmatprep.mubr.msk.f32.mxu1 %vm11193_vm0, %v13233_v1  ;;  %10815 = vmatpush3.msra.mxu1 %v6470_v60 }
0x283d   :  { %10830 = vmatprep.subr.mxu1 %v13233_v1 }
0x28fb   :  { %v6762_v50 = vpop.f32.mrf.mxu1 }
0x28fc   :  { %v6766_v29 = vsel %vm330_vm9, %v6762_v50, -inf }
0x28fd   :  { %6767 = vmax.xlane.f32.xlu1 %v6766_v29  ;;  %v10808_v37 = vpop.f32.mrf.mxu1 }
0x2986   :  { %v6768_v8 = vpop.xlane.xlu1 %6767 }
0x2987   :  { %v6769_v62 = vsub.f32 %v6762_v50, %v6768_v8 }
0x2989   :  { %v6770_v33 = vmul.f32 1.442695, %v6769_v62 }
0x298b   :  { %11046 = vpow2.f32 %v6770_v33 }
0x2998   :  { %v11047_v17 = vpop.eup %11046 }
0x2999   :  { %10812 = vmatmul.mubr.msk.f32.vlgmr.msra.gmra.mxu0 %vm330_vm9, %v11047_v17  ;;  %v6772_v39 = vsel %vm330_vm9, %v11047_v17, 0.0 }
0x299a   :  { %6773 = vadd.xlane.f32.xlu1 %v6772_v39  ;;  %10827 = vmatprep.mubr.msk.f32.mxu0 %vm11193_vm0, %v13233_v1 }
0x2a23   :  { %v6774_v16 = vpop.xlane.xlu1 %6773 }
0x2a24   :  { %11048 = vrcp.f32 %v6774_v16 }
0x2a31   :  { %v11049_v28 = vpop.eup %11048 }
0x2a59   :  { %v6844_v59 = vpop.f32.mrf.mxu0 }
0x2a5a   :  { %v6849_v53 = vmul.f32 %v11049_v28, %v6844_v59 }
0x2a5b   :  { %v10813_v2 = vpop.f32.mrf.mxu0 }
0x2a5c   :  { %10817 = vmatmul.mubr.msk.f32.vlgmr.msra.gmra.mxu1 %vm330_vm9, %v6849_v53 }
0x2a5d   :  { %10838 = vmatprep.mubr.msk.f32.mxu1 %vm11193_vm0, %v13233_v1 }
0x2b1c   :  { %v6919_v30 = vpop.f32.mrf.mxu1 }
0x2b1d   :  { %v6923_v47 = vadd.f32 %v6919_v30, %v6466_v5 }
0x2b1e   :  { %v10818_v14 = vpop.f32.mrf.mxu1 }
0x2b1f   :  { %v6924_v34 = vadd.f32 %v6923_v47, %v11522_v15 }
0x2b21   :  { %v6926_v13 = vrot.slane %v6924_v34, 7  ;;  %v6927_v43 = vrot.slane %v6924_v34, 1  ;;  %v6928_v7 = vrot.slane %v6924_v34, 2  ;;  %v6929_v52 = vrot.slane %v6924_v34, 3 }
0x2b22   :  { %v6930_v19 = vrot.slane %v6924_v34, 4  ;;  %v6931_v11 = vrot.slane %v6924_v34, 5  ;;  %v6942_v63 = vadd.f32 %v12029_v21, %v6924_v34  ;;  %v6932_v15 = vrot.slane %v6924_v34, 6 }
0x2b23   :  { %v6941_v55 = vadd.f32 %v12014_v10, %v6926_v13  ;;  %v6943_v50 = vadd.f32 %v12020_v41, %v6927_v43  ;;  %v6944_v29 = vadd.f32 %v12043_v0, %v6928_v7  ;;  %v6945_v37 = vadd.f32 %v12065_v31, %v6929_v52 }
0x2b24   :  { %v6946_v5 = vadd.f32 %v12084_v9, %v6930_v19  ;;  %v6957_v8 = vrot.slane %v6942_v63, 7  ;;  %v6947_v62 = vadd.f32 %v12110_v42, %v6931_v11  ;;  %v6948_v0 = vadd.f32 %v12123_v58, %v6932_v15 }
0x2b25   :  { %v6959_v33 = vrot.slane %v6943_v50, 6  ;;  %v6961_v17 = vrot.slane %v6944_v29, 5  ;;  %v6963_v60 = vrot.slane %v6945_v37, 4 }
0x2b26   :  { %v6958_v39 = vsel %vm83_vm3, %v6957_v8, %v6941_v55  ;;  %v6965_v41 = vrot.slane %v6946_v5, 3  ;;  %v6967_v16 = vrot.slane %v6947_v62, 2  ;;  %v6969_v59 = vrot.slane %v6948_v0, 1 }
0x2b27   :  { %v6960_v21 = vsel %vm86_vm4, %v6959_v33, %v6958_v39 }
0x2b28   :  { %v6962_v10 = vsel %vm89_vm5, %v6961_v17, %v6960_v21  ;;  %v6976_v53 = vsel %vm5072_vm12, %v6969_v59, 0.0 }
0x2b29   :  { %v6964_v31 = vsel %vm92_vm6, %v6963_v60, %v6962_v10 }
0x2b2a   :  { %v6966_v9 = vsel %vm95_vm7, %v6965_v41, %v6964_v31 }
0x2b2b   :  { %v6968_v42 = vsel %vm98_vm8, %v6967_v16, %v6966_v9 }
0x2b2c   :  { %v6973_v28 = vsel %vm6972_vm11, %v6968_v42, 0.0 }
0x2b2d   :  { %6974 = vadd.xlane.f32.xlu1 %v6973_v28 }
0x2b31   :  { %6977 = vadd.xlane.f32.xlu1 %v6976_v53 }
0x2bb6   :  { %v6975_v2 = vpop.xlane.xlu1 %6974 }
0x2bb7   :  { %v6979_v30 = vmul.f32 0.03125, %v6975_v2 }
0x2bb9   :  { %v6983_v47 = vrot.slane %v6979_v30, 1  ;;  %v6984_v58 = vrot.slane %v6979_v30, 2  ;;  %v6985_v14 = vrot.slane %v6979_v30, 3  ;;  %v6986_v34 = vrot.slane %v6979_v30, 4 }
0x2bba   :  { %v6978_v13 = vpop.xlane.xlu1 %6977  ;;  %v6987_v43 = vrot.slane %v6979_v30, 5  ;;  %v6988_v7 = vrot.slane %v6979_v30, 6  ;;  %v12312_v52 = vsub.f32 %v6941_v55, %v6979_v30 }
0x2bbb   :  { %v6980_v19 = vmul.f32 0.03125, %v6978_v13  ;;  %v12314_v11 = vsub.f32 %v6942_v63, %v6983_v47  ;;  %v12316_v8 = vsub.f32 %v6943_v50, %v6984_v58  ;;  %v12318_v15 = vsub.f32 %v6944_v29, %v6985_v14  ;;  %v7093_v13 = vld [vmem:[#allocation5 + $0x18] sm:$0xff] }
0x2bbc   :  { %v12320_v33 = vsub.f32 %v6945_v37, %v6986_v34  ;;  %v12322_v17 = vsub.f32 %v6946_v5, %v6987_v43  ;;  %v12324_v39 = vsub.f32 %v6947_v62, %v6988_v7  ;;  %v7006_v50 = vmul.f32 %v12312_v52, %v12312_v52  ;;  %10820 = vmatpush3.msra.mxu0 %v7093_v13  ;;  %v7092_v43 = vld [vmem:[#allocation5 + $0x10] sm:$0xff]  ;;  %v7091_v7 = vld [vmem:[#allocation5 + $0x8] sm:$0xff] }
0x2bbd   :  { %v6989_v21 = vrot.slane %v6980_v19, 7  ;;  %v7007_v60 = vmul.f32 %v12314_v11, %v12314_v11  ;;  %v7008_v55 = vmul.f32 %v12316_v8, %v12316_v8  ;;  %v7009_v63 = vmul.f32 %v12318_v15, %v12318_v15  ;;  %10821 = vmatprep.subr.mxu0 %v13233_v1  ;;  %v7090_v19 = vld [vmem:[#allocation5] sm:$0xff] }
0x2bbe   :  { %v7010_v29 = vmul.f32 %v12320_v33, %v12320_v33  ;;  %v7011_v5 = vmul.f32 %v12322_v17, %v12322_v17  ;;  %v7012_v41 = vmul.f32 %v12324_v39, %v12324_v39  ;;  %10822 = vmatpush3.msra.mxu0 %v7092_v43 }
0x2bbf   :  { %v12336_v37 = vsub.f32 %v6948_v0, %v6989_v21  ;;  %v7022_v62 = vrot.slane %v7007_v60, 7  ;;  %v7024_v10 = vrot.slane %v7008_v55, 6  ;;  %v7026_v16 = vrot.slane %v7009_v63, 5  ;;  %10823 = vmatprep.subr.mxu0 %v13233_v1  ;;  %v7097_v21 = vld [vmem:[#allocation5 + $0x38] sm:$0xff]  ;;  %v7096_v60 = vld [vmem:[#allocation5 + $0x30] sm:$0xff]  ;;  %v7095_v55 = vld [vmem:[#allocation5 + $0x28] sm:$0xff] }
0x2bc0   :  { %v7028_v42 = vrot.slane %v7010_v29, 4  ;;  %v7030_v59 = vrot.slane %v7011_v5, 3  ;;  %v7032_v2 = vrot.slane %v7012_v41, 2  ;;  %10824 = vmatpush3.msra.mxu0 %v7091_v7  ;;  %10831 = vmatpush3.xpose.msk.msra.mxu1 %vm2254_vm10, %v7097_v21 }
0x2bc1   :  { %v7023_v31 = vsel %vm83_vm3, %v7022_v62, %v7006_v50  ;;  %v7013_v0 = vmul.f32 %v12336_v37, %v12336_v37  ;;  %10825 = vmatprep.subr.mxu0 %v13233_v1  ;;  %10832 = vmatprep.subr.mxu1 %v13233_v1 }
0x2bc2   :  { %v7025_v9 = vsel %vm86_vm4, %v7024_v10, %v7023_v31  ;;  %10826 = vmatpush3.msra.mxu0 %v7090_v19 }
0x2bc3   :  { %v7027_v28 = vsel %vm89_vm5, %v7026_v16, %v7025_v9  ;;  %v7034_v14 = vrot.slane %v7013_v0, 1  ;;  %10841 = vmatprep.subr.mxu0 %v13233_v1 }
0x2bc4   :  { %v7029_v53 = vsel %vm92_vm6, %v7028_v42, %v7027_v28  ;;  %10833 = vmatpush3.xpose.msk.msra.mxu1 %vm2254_vm10, %v7096_v60 }
0x2bc5   :  { %v7031_v30 = vsel %vm95_vm7, %v7030_v59, %v7029_v53  ;;  %v7040_v34 = vsel %vm5072_vm12, %v7034_v14, 0.0  ;;  %10834 = vmatprep.subr.mxu1 %v13233_v1 }
0x2bc6   :  { %v7033_v47 = vsel %vm98_vm8, %v7032_v2, %v7031_v30 }
0x2bc7   :  { %v7037_v58 = vsel %vm6972_vm11, %v7033_v47, 0.0 }
0x2bc8   :  { %7038 = vadd.xlane.f32.xlu1 %v7037_v58  ;;  %10835 = vmatpush3.xpose.msk.msra.mxu1 %vm2254_vm10, %v7095_v55 }
0x2bc9   :  { %10836 = vmatprep.subr.mxu1 %v13233_v1 }
0x2bcc   :  { %7041 = vadd.xlane.f32.xlu1 %v7040_v34 }
0x2c51   :  { %v7039_v63 = vpop.xlane.xlu1 %7038 }
0x2c52   :  { %v7043_v50 = vmul.f32 0.03125, %v7039_v63 }
0x2c54   :  { %v7045_v29 = vadd.f32 1e-05, %v7043_v50 }
0x2c55   :  { %v7042_v5 = vpop.xlane.xlu1 %7041 }
0x2c56   :  { %11050 = vrsqrt.f32 %v7045_v29  ;;  %v7044_v62 = vmul.f32 0.03125, %v7042_v5 }
0x2c58   :  { %v7046_v10 = vadd.f32 1e-05, %v7044_v62 }
0x2c5a   :  { %11052 = vrsqrt.f32 %v7046_v10 }
0x2c63   :  { %v11051_v41 = vpop.eup %11050 }
0x2c64   :  { %v7051_v31 = vrot.slane %v11051_v41, 1  ;;  %v7052_v16 = vrot.slane %v11051_v41, 2  ;;  %v7053_v9 = vrot.slane %v11051_v41, 3  ;;  %v7054_v42 = vrot.slane %v11051_v41, 4 }
0x2c65   :  { %v7055_v28 = vrot.slane %v11051_v41, 5  ;;  %v7056_v59 = vrot.slane %v11051_v41, 6  ;;  %v7066_v0 = vmul.f32 %v11051_v41, %v12312_v52 }
0x2c66   :  { %v7067_v53 = vmul.f32 %v7051_v31, %v12314_v11  ;;  %v7068_v2 = vmul.f32 %v7052_v16, %v12316_v8  ;;  %v7069_v30 = vmul.f32 %v7053_v9, %v12318_v15  ;;  %v7070_v47 = vmul.f32 %v7054_v42, %v12320_v33 }
0x2c67   :  { %v11053_v58 = vpop.eup %11052  ;;  %v7071_v14 = vmul.f32 %v7055_v28, %v12322_v17  ;;  %v7072_v34 = vmul.f32 %v7056_v59, %v12324_v39  ;;  %v7074_v13 = vmul.f32 %v7066_v0, %v11596_v23 }
0x2c68   :  { %v7057_v43 = vrot.slane %v11053_v58, 7  ;;  %v7075_v7 = vmul.f32 %v7067_v53, %v11596_v23  ;;  %v7076_v52 = vmul.f32 %v7068_v2, %v11596_v23  ;;  %v7077_v11 = vmul.f32 %v7069_v30, %v11596_v23 }
0x2c69   :  { %v7078_v8 = vmul.f32 %v7070_v47, %v11596_v23  ;;  %v7079_v15 = vmul.f32 %v7071_v14, %v11596_v23  ;;  %v7080_v33 = vmul.f32 %v7072_v34, %v11596_v23  ;;  %v7082_v19 = vadd.f32 %v7074_v13, %v11601_v25 }
0x2c6a   :  { %v7073_v17 = vmul.f32 %v7057_v43, %v12336_v37  ;;  %v7083_v39 = vadd.f32 %v7075_v7, %v11601_v25  ;;  %v7084_v21 = vadd.f32 %v7076_v52, %v11601_v25  ;;  %v7085_v60 = vadd.f32 %v7077_v11, %v11601_v25 }
0x2c6b   :  { %v7086_v55 = vadd.f32 %v7078_v8, %v11601_v25  ;;  %v7087_v63 = vadd.f32 %v7079_v15, %v11601_v25  ;;  %v7106_v50 = vrot.slane %v7082_v19, 1  ;;  %v7088_v5 = vadd.f32 %v7080_v33, %v11601_v25 }
0x2c6c   :  { %v7081_v29 = vmul.f32 %v7073_v17, %v11596_v23  ;;  %v7108_v62 = vrot.slane %v7084_v21, 7  ;;  %v7110_v10 = vrot.slane %v7085_v60, 6 }
0x2c6d   :  { %v7107_v41 = vsel %vm80_vm2, %v7083_v39, %v7106_v50  ;;  %v7112_v16 = vrot.slane %v7086_v55, 5  ;;  %v7114_v42 = vrot.slane %v7087_v63, 4  ;;  %v7116_v59 = vrot.slane %v7088_v5, 3 }
0x2c6e   :  { %v7089_v37 = vadd.f32 %v7081_v29, %v11601_v25  ;;  %v7109_v31 = vsel %vm83_vm3, %v7108_v62, %v7107_v41  ;;  %v7094_v25 = vld [vmem:[#allocation5 + $0x20] sm:$0xff] }
0x2c6f   :  { %v7111_v9 = vsel %vm86_vm4, %v7110_v10, %v7109_v31  ;;  %10837 = vmatpush3.xpose.msk.msra.mxu1 %vm2254_vm10, %v7094_v25 }
0x2c70   :  { %v7113_v28 = vsel %vm89_vm5, %v7112_v16, %v7111_v9  ;;  %v7118_v0 = vrot.slane %v7089_v37, 2  ;;  %10856 = vmatprep.subr.mxu1 %v13233_v1 }
0x2c71   :  { %v7115_v23 = vsel %vm92_vm6, %v7114_v42, %v7113_v28 }
0x2c72   :  { %v7117_v53 = vsel %vm95_vm7, %v7116_v59, %v7115_v23 }
0x2c73   :  { %v7119_v2 = vsel %vm98_vm8, %v7118_v0, %v7117_v53 }
0x2c74   :  { %10828 = vmatmul.mubr.msk.f32.vlgmr.msra.gmra.mxu0 %vm100_vm1, %v7119_v2 }
0x2c75   :  { %10843 = vmatprep.mubr.msk.f32.mxu0 %vm11193_vm0, %v13233_v1 }
0x2d34   :  { %v7188_v30 = vpop.f32.mrf.mxu0 }
0x2d35   :  { %v7189_v47 = vadd.f32 %v7188_v30, %v11644_v44 }
0x2d36   :  { %v10829_v58 = vpop.f32.mrf.mxu0 }
0x2d37   :  { %v7192_v14 = vmax.f32 %v7189_v47, 0.0 }
0x2d39   :  { %10839 = vmatmul.mubr.msk.f32.vlgmr.msra.gmra.mxu1 %vm2254_vm10, %v7192_v14 }
0x2d3a   :  { %10858 = vmatprep.mubr.msk.f32.mxu1 %vm11193_vm0, %v13233_v1 }
0x2df9   :  { %v7274_v34 = vpop.f32.mrf.mxu1 }
0x2dfa   :  { %v7275_v13 = vadd.f32 %v7274_v34, %v11655_v49 }
0x2dfb   :  { %v10840_v43 = vpop.f32.mrf.mxu1 }
0x2dfc   :  { %v7285_v7 = vrot.slane %v7275_v13, 6  ;;  %v7279_v52 = vrot.slane %v7275_v13, 7  ;;  %v7280_v11 = vrot.slane %v7275_v13, 1  ;;  %v7281_v8 = vrot.slane %v7275_v13, 2 }
0x2dfd   :  { %v7282_v15 = vrot.slane %v7275_v13, 3  ;;  %v7283_v33 = vrot.slane %v7275_v13, 4  ;;  %v7284_v17 = vrot.slane %v7275_v13, 5  ;;  %v7295_v50 = vadd.f32 %v7275_v13, %v7083_v39 }
0x2dfe   :  { %v7301_v44 = vadd.f32 %v7285_v7, %v7089_v37  ;;  %v7294_v29 = vadd.f32 %v7279_v52, %v7082_v19  ;;  %v7296_v62 = vadd.f32 %v7280_v11, %v7084_v21  ;;  %v7297_v10 = vadd.f32 %v7281_v8, %v7085_v60 }
0x2dff   :  { %v7298_v41 = vadd.f32 %v7282_v15, %v7086_v55  ;;  %v7299_v31 = vadd.f32 %v7283_v33, %v7087_v63  ;;  %v7310_v16 = vrot.slane %v7295_v50, 7  ;;  %v7300_v42 = vadd.f32 %v7284_v17, %v7088_v5 }
0x2e00   :  { %v7322_v9 = vrot.slane %v7301_v44, 1  ;;  %v7312_v28 = vrot.slane %v7296_v62, 6  ;;  %v7314_v49 = vrot.slane %v7297_v10, 5 }
0x2e01   :  { %v7311_v59 = vsel %vm83_vm3, %v7310_v16, %v7294_v29  ;;  %v7316_v53 = vrot.slane %v7298_v41, 4  ;;  %v7318_v19 = vrot.slane %v7299_v31, 3  ;;  %v7320_v60 = vrot.slane %v7300_v42, 2 }
0x2e02   :  { %v7328_v0 = vsel %vm5072_vm12, %v7322_v9, 0.0  ;;  %v7313_v23 = vsel %vm86_vm4, %v7312_v28, %v7311_v59 }
0x2e03   :  { %7329 = vadd.xlane.f32.xlu1 %v7328_v0  ;;  %v7315_v39 = vsel %vm89_vm5, %v7314_v49, %v7313_v23 }
0x2e04   :  { %v7317_v21 = vsel %vm92_vm6, %v7316_v53, %v7315_v39 }
0x2e05   :  { %v7319_v55 = vsel %vm95_vm7, %v7318_v19, %v7317_v21 }
0x2e06   :  { %v7321_v63 = vsel %vm98_vm8, %v7320_v60, %v7319_v55 }
0x2e07   :  { %v7325_v5 = vsel %vm6972_vm11, %v7321_v63, 0.0 }
0x2e08   :  { %7326 = vadd.xlane.f32.xlu0 %v7325_v5 }
0x2e8c   :  { %v7330_v37 = vpop.xlane.xlu1 %7329 }
0x2e8d   :  { %v7332_v2 = vmul.f32 0.03125, %v7330_v37 }
0x2e8f   :  { %v7341_v25 = vrot.slane %v7332_v2, 7 }
0x2e91   :  { %v7357_v30 = vsub.f32 %v7301_v44, %v7341_v25  ;;  %v7327_v47 = vpop.xlane.xlu0 %7326  ;;  %v7442_v25 = vld [vmem:[#allocation2 + $0x80] sm:$0xff] }
0x2e92   :  { %v7331_v58 = vmul.f32 0.03125, %v7327_v47  ;;  %10842 = vmatpush3.xpose.msk.msra.mxu0 %vm100_vm1, %v7442_v25 }
0x2e93   :  { %v7365_v14 = vmul.f32 %v7357_v30, %v7357_v30  ;;  %10846 = vmatprep.subr.mxu0 %v13233_v1 }
0x2e94   :  { %v7335_v34 = vrot.slane %v7331_v58, 1  ;;  %v7336_v13 = vrot.slane %v7331_v58, 2  ;;  %v7337_v43 = vrot.slane %v7331_v58, 3  ;;  %v7338_v7 = vrot.slane %v7331_v58, 4 }
0x2e95   :  { %v7386_v52 = vrot.slane %v7365_v14, 1  ;;  %v7339_v11 = vrot.slane %v7331_v58, 5  ;;  %v7340_v8 = vrot.slane %v7331_v58, 6  ;;  %v7350_v15 = vsub.f32 %v7294_v29, %v7331_v58 }
0x2e96   :  { %v7351_v33 = vsub.f32 %v7295_v50, %v7335_v34  ;;  %v7352_v17 = vsub.f32 %v7296_v62, %v7336_v13  ;;  %v7353_v16 = vsub.f32 %v7297_v10, %v7337_v43  ;;  %v7354_v9 = vsub.f32 %v7298_v41, %v7338_v7 }
0x2e97   :  { %v7392_v28 = vsel %vm5072_vm12, %v7386_v52, 0.0  ;;  %v7355_v49 = vsub.f32 %v7299_v31, %v7339_v11  ;;  %v7356_v59 = vsub.f32 %v7300_v42, %v7340_v8  ;;  %v7358_v39 = vmul.f32 %v7350_v15, %v7350_v15 }
0x2e98   :  { %7393 = vadd.xlane.f32.xlu1 %v7392_v28  ;;  %v7359_v44 = vmul.f32 %v7351_v33, %v7351_v33  ;;  %v7360_v0 = vmul.f32 %v7352_v17, %v7352_v17  ;;  %v7361_v23 = vmul.f32 %v7353_v16, %v7353_v16  ;;  %v7362_v53 = vmul.f32 %v7354_v9, %v7354_v9 }
0x2e99   :  { %v7363_v19 = vmul.f32 %v7355_v49, %v7355_v49  ;;  %v7364_v55 = vmul.f32 %v7356_v59, %v7356_v59 }
0x2e9a   :  { %v7374_v21 = vrot.slane %v7359_v44, 7  ;;  %v7376_v60 = vrot.slane %v7360_v0, 6  ;;  %v7378_v50 = vrot.slane %v7361_v23, 5  ;;  %v7380_v10 = vrot.slane %v7362_v53, 4 }
0x2e9b   :  { %v7382_v31 = vrot.slane %v7363_v19, 3  ;;  %v7384_v63 = vrot.slane %v7364_v55, 2 }
0x2e9c   :  { %v7375_v29 = vsel %vm83_vm3, %v7374_v21, %v7358_v39 }
0x2e9d   :  { %v7377_v62 = vsel %vm86_vm4, %v7376_v60, %v7375_v29 }
0x2e9e   :  { %v7379_v41 = vsel %vm89_vm5, %v7378_v50, %v7377_v62 }
0x2e9f   :  { %v7381_v42 = vsel %vm92_vm6, %v7380_v10, %v7379_v41 }
0x2ea0   :  { %v7383_v5 = vsel %vm95_vm7, %v7382_v31, %v7381_v42 }
0x2ea1   :  { %v7385_v37 = vsel %vm98_vm8, %v7384_v63, %v7383_v5 }
0x2ea2   :  { %v7389_v2 = vsel %vm6972_vm11, %v7385_v37, 0.0 }
0x2ea3   :  { %7390 = vadd.xlane.f32.xlu0 %v7389_v2 }
0x2f21   :  { %v7394_v47 = vpop.xlane.xlu1 %7393 }
0x2f22   :  { %v7396_v58 = vmul.f32 0.03125, %v7394_v47 }
0x2f24   :  { %v7398_v14 = vadd.f32 1e-05, %v7396_v58 }
0x2f26   :  { %11054 = vrsqrt.f32 %v7398_v14 }
0x2f2c   :  { %v7391_v34 = vpop.xlane.xlu0 %7390 }
0x2f2d   :  { %v7395_v13 = vmul.f32 0.03125, %v7391_v34 }
0x2f2f   :  { %v7397_v43 = vadd.f32 1e-05, %v7395_v13 }
0x2f31   :  { %11056 = vrsqrt.f32 %v7397_v43 }
0x2f33   :  { %v11055_v7 = vpop.eup %11054 }
0x2f34   :  { %v7409_v52 = vrot.slane %v11055_v7, 7 }
0x2f36   :  { %v7425_v23 = vmul.f32 %v7409_v52, %v7357_v30 }
0x2f38   :  { %v7433_v30 = vmul.f32 %v7425_v23, %v11689_v36 }
0x2f3a   :  { %v12454_v47 = vadd.f32 %v7433_v30, %v11693_v38 }
0x2f3e   :  { %v11057_v11 = vpop.eup %11056 }
0x2f3f   :  { %v7403_v8 = vrot.slane %v11057_v11, 1  ;;  %v7404_v28 = vrot.slane %v11057_v11, 2  ;;  %v7405_v44 = vrot.slane %v11057_v11, 3  ;;  %v7406_v0 = vrot.slane %v11057_v11, 4 }
0x2f40   :  { %v7407_v53 = vrot.slane %v11057_v11, 5  ;;  %v7408_v39 = vrot.slane %v11057_v11, 6  ;;  %v7418_v19 = vmul.f32 %v11057_v11, %v7350_v15  ;;  %v7466_v11 = vrot.slane %v12454_v47, 2 }
0x2f41   :  { %v7419_v21 = vmul.f32 %v7403_v8, %v7351_v33  ;;  %v7420_v60 = vmul.f32 %v7404_v28, %v7352_v17  ;;  %v7421_v55 = vmul.f32 %v7405_v44, %v7353_v16  ;;  %v7422_v29 = vmul.f32 %v7406_v0, %v7354_v9  ;;  %v7443_v28 = vld [vmem:[#allocation2 + $0xa0] sm:$0xff] }
0x2f42   :  { %v7423_v50 = vmul.f32 %v7407_v53, %v7355_v49  ;;  %v7424_v62 = vmul.f32 %v7408_v39, %v7356_v59  ;;  %v7426_v10 = vmul.f32 %v7418_v19, %v11689_v36  ;;  %v7444_v0 = vld [vmem:[#allocation2 + $0xc0] sm:$0xff] }
0x2f43   :  { %v7427_v41 = vmul.f32 %v7419_v21, %v11689_v36  ;;  %v7428_v31 = vmul.f32 %v7420_v60, %v11689_v36  ;;  %v7429_v42 = vmul.f32 %v7421_v55, %v11689_v36  ;;  %v7430_v63 = vmul.f32 %v7422_v29, %v11689_v36  ;;  %v7850_v29 = vld [vmem:[#allocation2 + $0x88] sm:$0xff] }
0x2f44   :  { %v7431_v15 = vmul.f32 %v7423_v50, %v11689_v36  ;;  %v7432_v33 = vmul.f32 %v7424_v62, %v11689_v36  ;;  %v12430_v17 = vadd.f32 %v7426_v10, %v11693_v38 }
0x2f45   :  { %v12433_v16 = vadd.f32 %v7427_v41, %v11693_v38  ;;  %v12436_v9 = vadd.f32 %v7428_v31, %v11693_v38  ;;  %v12439_v49 = vadd.f32 %v7429_v42, %v11693_v38  ;;  %v12442_v59 = vadd.f32 %v7430_v63, %v11693_v38 }
0x2f46   :  { %v12445_v5 = vadd.f32 %v7431_v15, %v11693_v38  ;;  %v7454_v36 = vrot.slane %v12430_v17, 1  ;;  %v12449_v37 = vadd.f32 %v7432_v33, %v11693_v38 }
0x2f47   :  { %v7456_v2 = vrot.slane %v12436_v9, 7  ;;  %v7458_v25 = vrot.slane %v12439_v49, 6  ;;  %v7460_v34 = vrot.slane %v12442_v59, 5 }
0x2f48   :  { %v7455_v58 = vsel %vm80_vm2, %v12433_v16, %v7454_v36  ;;  %v7462_v43 = vrot.slane %v12445_v5, 4  ;;  %v7464_v52 = vrot.slane %v12449_v37, 3 }
0x2f49   :  { %v7457_v14 = vsel %vm83_vm3, %v7456_v2, %v7455_v58 }
0x2f4a   :  { %v7459_v13 = vsel %vm86_vm4, %v7458_v25, %v7457_v14 }
0x2f4b   :  { %v7461_v7 = vsel %vm89_vm5, %v7460_v34, %v7459_v13  ;;  %v7851_v13 = vld [vmem:[#allocation2 + $0xa8] sm:$0xff] }
0x2f4c   :  { %v7463_v38 = vsel %vm92_vm6, %v7462_v43, %v7461_v7 }
0x2f4d   :  { %v7465_v8 = vsel %vm95_vm7, %v7464_v52, %v7463_v38 }
0x2f4e   :  { %v12468_v44 = vsel %vm98_vm8, %v7466_v11, %v7465_v8 }
0x2f4f   :  { %10844 = vmatmul.mubr.msk.f32.vlgmr.msra.gmra.mxu0 %vm100_vm1, %v12468_v44 }
0x2f50   :  { %10847 = vmatpush3.xpose.msk.msra.mxu0 %vm100_vm1, %v7443_v28  ;;  %10848 = vmatprep.mubr.msk.f32.mxu0 %vm11193_vm0, %v13233_v1 }
0x2f51   :  { %10851 = vmatprep.subr.mxu0 %v13233_v1 }
0x2f53   :  { %10849 = vmatmul.mubr.msk.f32.vlgmr.msra.gmra.mxu0 %vm100_vm1, %v12468_v44 }
0x2f54   :  { %10852 = vmatpush3.xpose.msk.msra.mxu0 %vm100_vm1, %v7444_v0  ;;  %10853 = vmatprep.mubr.msk.f32.mxu0 %vm11193_vm0, %v13233_v1 }
0x2f55   :  { %10861 = vmatprep.subr.mxu0 %v13233_v1 }
0x2f57   :  { %10854 = vmatmul.mubr.msk.f32.vlgmr.msra.gmra.mxu0 %vm100_vm1, %v12468_v44 }
0x2f58   :  { %10863 = vmatprep.mubr.msk.f32.mxu0 %vm11193_vm0, %v13233_v1 }
0x300f   :  { %v7539_v23 = vpop.f32.mrf.mxu0 }
0x3010   :  { %v7540_v60 = vadd.f32 %v7539_v23, %v11683_v3 }
0x3011   :  { %v10845_v53 = vpop.f32.mrf.mxu0 }
0x3013   :  { %v7612_v39 = vpop.f32.mrf.mxu0 }
0x3014   :  { %v7613_v19 = vadd.f32 %v7612_v39, %v11762_v26  ;;  %v7852_v26 = vld [vmem:[#allocation2 + $0xc8] sm:$0xff] }
0x3015   :  { %v10850_v21 = vpop.f32.mrf.mxu0 }
0x3016   :  { %10857 = vmatpush3.xpose.msk.msra.mxu1 %vm330_vm9, %v7613_v19 }
0x3017   :  { %v7685_v55 = vpop.f32.mrf.mxu0  ;;  %10866 = vmatprep.subr.mxu1 %v13233_v1 }
0x3018   :  { %v7686_v50 = vadd.f32 %v7685_v55, %v11766_v46 }
0x3019   :  { %v10855_v62 = vpop.f32.mrf.mxu0  ;;  %10859 = vmatmul.mubr.msk.f32.vlgmr.msra.gmra.mxu1 %vm330_vm9, %v7540_v60 }
0x301a   :  { %10862 = vmatpush3.msra.mxu0 %v7686_v50  ;;  %10867 = vmatpush3.xpose.msk.msra.mxu1 %vm100_vm1, %v7850_v29  ;;  %v7445_v29 = vld [vmem:[#allocation2 + $0xe0] sm:$0xff]  ;;  %v8381_v50 = vld [vmem:[#allocation2 + $0xb0] sm:$0xff] }
0x301b   :  { %10868 = vmatprep.mubr.msk.f32.mxu1 %vm11193_vm0, %v13233_v1  ;;  %10876 = vmatprep.subr.mxu1 %v13233_v1  ;;  %v8380_v62 = vld [vmem:[#allocation2 + $0x90] sm:$0xff] }
0x301c   :  { %10871 = vmatprep.subr.mxu0 %v13233_v1 }
0x301d   :  { %10869 = vmatmul.mubr.msk.f32.vlgmr.msra.gmra.mxu1 %vm100_vm1, %v12468_v44 }
0x301e   :  { %10877 = vmatpush3.xpose.msk.msra.mxu1 %vm100_vm1, %v7852_v26  ;;  %10878 = vmatprep.mubr.msk.f32.mxu1 %vm11193_vm0, %v13233_v1 }
0x301f   :  { %10886 = vmatprep.subr.mxu1 %v13233_v1 }
0x3021   :  { %10879 = vmatmul.mubr.msk.f32.vlgmr.msra.gmra.mxu1 %vm100_vm1, %v12468_v44 }
0x3022   :  { %10888 = vmatprep.mubr.msk.f32.mxu1 %vm11193_vm0, %v13233_v1 }
0x30d9   :  { %v7761_v3 = vpop.f32.mrf.mxu1 }
0x30da   :  { %v7765_v46 = vsel %vm330_vm9, %v7761_v3, -inf }
0x30db   :  { %7766 = vmax.xlane.f32.xlu0 %v7765_v46  ;;  %v10860_v10 = vpop.f32.mrf.mxu1  ;;  %v8382_v46 = vld [vmem:[#allocation2 + $0xd0] sm:$0xff] }
0x30dd   :  { %v7923_v41 = vpop.f32.mrf.mxu1 }
0x30de   :  { %v7924_v38 = vadd.f32 %v7923_v41, %v11807_v40  ;;  %v7853_v40 = vld [vmem:[#allocation2 + $0xe8] sm:$0xff] }
0x30df   :  { %v10870_v31 = vpop.f32.mrf.mxu1 }
0x30e1   :  { %v8069_v42 = vpop.f32.mrf.mxu1 }
0x30e2   :  { %v8070_v63 = vadd.f32 %v8069_v42, %v11821_v56 }
0x30e3   :  { %v10880_v30 = vpop.f32.mrf.mxu1 }
0x30e4   :  { %10887 = vmatpush3.msra.mxu1 %v8070_v63 }
0x30e5   :  { %10896 = vmatprep.subr.mxu1 %v13233_v1 }
0x3164   :  { %v7767_v15 = vpop.xlane.xlu0 %7766 }
0x3165   :  { %v7768_v33 = vsub.f32 %v7761_v3, %v7767_v15 }
0x3167   :  { %v7769_v36 = vmul.f32 1.442695, %v7768_v33 }
0x3169   :  { %11058 = vpow2.f32 %v7769_v36 }
0x3176   :  { %v11059_v2 = vpop.eup %11058 }
0x3177   :  { %v7771_v25 = vsel %vm330_vm9, %v11059_v2, 0.0 }
0x3178   :  { %7772 = vadd.xlane.f32.xlu1 %v7771_v25  ;;  %v13235_v25 = vld [vmem:[#allocation18_spill] sm:$0xff] }
0x3201   :  { %v7773_v58 = vpop.xlane.xlu1 %7772 }
0x3202   :  { %11060 = vrcp.f32 %v7773_v58 }
0x320f   :  { %v11061_v14 = vpop.eup %11060 }
0x3210   :  { %v12511_v34 = vmul.f32 %v11061_v14, %v11059_v2 }
0x3212   :  { %10864 = vmatmul.mubr.msk.f32.vlgmr.msra.gmra.mxu0 %vm330_vm9, %v12511_v34 }
0x3213   :  { %10872 = vmatpush3.xpose.msk.msra.mxu0 %vm100_vm1, %v7851_v13  ;;  %10873 = vmatprep.mubr.msk.f32.mxu0 %vm11193_vm0, %v13233_v1 }
0x3214   :  { %10881 = vmatprep.subr.mxu0 %v13233_v1 }
0x3216   :  { %10874 = vmatmul.mubr.msk.f32.vlgmr.msra.gmra.mxu0 %vm100_vm1, %v12468_v44 }
0x3217   :  { %10883 = vmatprep.mubr.msk.f32.mxu0 %vm11193_vm0, %v13233_v1 }
0x32d2   :  { %v7846_v56 = vpop.f32.mrf.mxu0 }
0x32d4   :  { %v10865_v43 = vpop.f32.mrf.mxu0 }
0x32d6   :  { %v7996_v7 = vpop.f32.mrf.mxu0 }
0x32d7   :  { %v7997_v52 = vadd.f32 %v7996_v7, %v11805_v4 }
0x32d8   :  { %v10875_v11 = vpop.f32.mrf.mxu0 }
0x32d9   :  { %10882 = vmatpush3.xpose.msk.msra.mxu0 %vm330_vm9, %v7997_v52 }
0x32da   :  { %10891 = vmatprep.subr.mxu0 %v13233_v1 }
0x32dc   :  { %10884 = vmatmul.mubr.msk.f32.vlgmr.msra.gmra.mxu0 %vm330_vm9, %v7924_v38 }
0x32dd   :  { %10893 = vmatprep.mubr.msk.f32.mxu0 %vm11193_vm0, %v13233_v1  ;;  %10892 = vmatpush3.msra.mxu0 %v7853_v40 }
0x32de   :  { %10901 = vmatprep.subr.mxu0 %v13233_v1 }
0x339c   :  { %v8145_v8 = vpop.f32.mrf.mxu0 }
0x339d   :  { %v8149_v28 = vsel %vm330_vm9, %v8145_v8, -inf }
0x339e   :  { %8150 = vmax.xlane.f32.xlu0 %v8149_v28  ;;  %v10885_v0 = vpop.f32.mrf.mxu0 }
0x3427   :  { %v8151_v23 = vpop.xlane.xlu0 %8150 }
0x3428   :  { %v8152_v53 = vsub.f32 %v8145_v8, %v8151_v23  ;;  %v8383_v8 = vld [vmem:[#allocation2 + $0xf0] sm:$0xff] }
0x342a   :  { %v8153_v4 = vmul.f32 1.442695, %v8152_v53  ;;  %v8838_v53 = vld [vmem:[#allocation2 + $0x98] sm:$0xff] }
0x342c   :  { %11062 = vpow2.f32 %v8153_v4 }
0x3439   :  { %v11063_v39 = vpop.eup %11062 }
0x343a   :  { %v8155_v19 = vsel %vm330_vm9, %v11063_v39, 0.0 }
0x343b   :  { %8156 = vadd.xlane.f32.xlu1 %v8155_v19  ;;  %v8840_v19 = vld [vmem:[#allocation2 + $0xd8] sm:$0xff] }
0x34c4   :  { %v8157_v21 = vpop.xlane.xlu1 %8156 }
0x34c5   :  { %11064 = vrcp.f32 %v8157_v21 }
0x34d2   :  { %v11065_v60 = vpop.eup %11064 }
0x34d3   :  { %v12533_v55 = vmul.f32 %v11065_v60, %v11063_v39 }
0x34d5   :  { %10889 = vmatmul.mubr.msk.f32.vlgmr.msra.gmra.mxu1 %vm330_vm9, %v12533_v55  ;;  %v8160_v4 = vadd.f32 %v12533_v55, %v12511_v34  ;;  %v8839_v34 = vld [vmem:[#allocation2 + $0xb8] sm:$0xff] }
0x34d6   :  { %10897 = vmatpush3.msra.mxu1 %v7445_v29  ;;  %10898 = vmatprep.mubr.msk.f32.mxu1 %vm11193_vm0, %v13233_v1 }
0x34d7   :  { %10906 = vmatprep.subr.mxu1 %v13233_v1 }
0x34d9   :  { %10899 = vmatmul.mubr.msk.f32.vlgmr.msra.gmra.mxu1 %vm330_vm9, %v7846_v56 }
0x34da   :  { %10907 = vmatpush3.xpose.msk.msra.mxu1 %vm100_vm1, %v8381_v50  ;;  %10908 = vmatprep.mubr.msk.f32.mxu1 %vm11193_vm0, %v13233_v1  ;;  %v13236_v50 = vld [vmem:[#allocation21_spill] sm:$0xff] }
0x34db   :  { %10916 = vmatprep.subr.mxu1 %v13233_v1 }
0x34dd   :  { %10909 = vmatmul.mubr.msk.f32.vlgmr.msra.gmra.mxu1 %vm100_vm1, %v12468_v44 }
0x34de   :  { %10918 = vmatprep.mubr.msk.f32.mxu1 %vm11193_vm0, %v13233_v1 }
0x3595   :  { %v8230_v26 = vpop.f32.mrf.mxu1 }
0x3596   :  { %10894 = vmatmul.mubr.msk.f32.vlgmr.msra.gmra.mxu0 %vm330_vm9, %v8230_v26 }
0x3597   :  { %v10890_v3 = vpop.f32.mrf.mxu1  ;;  %10902 = vmatpush3.xpose.msk.msra.mxu0 %vm100_vm1, %v8380_v62  ;;  %10903 = vmatprep.mubr.msk.f32.mxu0 %vm11193_vm0, %v13233_v1 }
0x3598   :  { %10911 = vmatprep.subr.mxu0 %v13233_v1 }
0x3599   :  { %v12554_v10 = vpop.f32.mrf.mxu1 }
0x359a   :  { %10904 = vmatmul.mubr.msk.f32.vlgmr.msra.gmra.mxu0 %vm100_vm1, %v12468_v44 }
0x359b   :  { %v10900_v41 = vpop.f32.mrf.mxu1  ;;  %10912 = vmatpush3.xpose.msk.msra.mxu0 %vm100_vm1, %v8382_v46  ;;  %10913 = vmatprep.mubr.msk.f32.mxu0 %vm11193_vm0, %v13233_v1 }
0x359c   :  { %10921 = vmatprep.subr.mxu0 %v13233_v1 }
0x359d   :  { %v8526_v31 = vpop.f32.mrf.mxu1 }
0x359e   :  { %v8527_v42 = vadd.f32 %v8526_v31, %v11855_v54  ;;  %10914 = vmatmul.mubr.msk.f32.vlgmr.msra.gmra.mxu0 %vm100_vm1, %v12468_v44 }
0x359f   :  { %v10910_v63 = vpop.f32.mrf.mxu1  ;;  %10923 = vmatprep.mubr.msk.f32.mxu0 %vm11193_vm0, %v13233_v1 }
0x35a0   :  { %10917 = vmatpush3.xpose.msk.msra.mxu1 %vm330_vm9, %v8527_v42  ;;  %v13237_v63 = vld [vmem:[#allocation19_spill] sm:$0xff] }
0x35a1   :  { %10926 = vmatprep.subr.mxu1 %v13233_v1 }
0x3656   :  { %v8303_v30 = vpop.f32.mrf.mxu0 }
0x3657   :  { %v8377_v3 = vadd.f32 %v12554_v10, %v8303_v30 }
0x3658   :  { %v10895_v15 = vpop.f32.mrf.mxu0 }
0x365a   :  { %v8453_v33 = vpop.f32.mrf.mxu0 }
0x365b   :  { %v8454_v36 = vadd.f32 %v8453_v33, %v11867_v12  ;;  %v13238_v33 = vld [vmem:[#allocation20_spill] sm:$0xff] }
0x365c   :  { %v10905_v2 = vpop.f32.mrf.mxu0 }
0x365d   :  { %10919 = vmatmul.mubr.msk.f32.vlgmr.msra.gmra.mxu1 %vm330_vm9, %v8454_v36 }
0x365e   :  { %v8599_v54 = vpop.f32.mrf.mxu0  ;;  %10928 = vmatprep.mubr.msk.f32.mxu1 %vm11193_vm0, %v13233_v1  ;;  %10927 = vmatpush3.msra.mxu1 %v8383_v8 }
0x365f   :  { %v8600_v58 = vadd.f32 %v8599_v54, %v13235_v25  ;;  %10936 = vmatprep.subr.mxu1 %v13233_v1 }
0x3660   :  { %v10915_v14 = vpop.f32.mrf.mxu0 }
0x3661   :  { %10922 = vmatpush3.msra.mxu0 %v8600_v58 }
0x3662   :  { %10931 = vmatprep.subr.mxu0 %v13233_v1 }
0x371d   :  { %v8675_v13 = vpop.f32.mrf.mxu1 }
0x371e   :  { %v8679_v56 = vsel %vm330_vm9, %v8675_v13, -inf }
0x371f   :  { %8680 = vmax.xlane.f32.xlu0 %v8679_v56  ;;  %v10920_v43 = vpop.f32.mrf.mxu1  ;;  %v8841_v56 = vld [vmem:[#allocation2 + $0xf8] sm:$0xff] }
0x37a8   :  { %v8681_v7 = vpop.xlane.xlu0 %8680 }
0x37a9   :  { %v8682_v12 = vsub.f32 %v8675_v13, %v8681_v7 }
0x37ab   :  { %v8683_v52 = vmul.f32 1.442695, %v8682_v12 }
0x37ad   :  { %11066 = vpow2.f32 %v8683_v52 }
0x37ba   :  { %v11067_v11 = vpop.eup %11066 }
0x37bb   :  { %v8685_v38 = vsel %vm330_vm9, %v11067_v11, 0.0 }
0x37bc   :  { %8686 = vadd.xlane.f32.xlu1 %v8685_v38 }
0x3845   :  { %v8687_v28 = vpop.xlane.xlu1 %8686 }
0x3846   :  { %11068 = vrcp.f32 %v8687_v28 }
0x3853   :  { %v11069_v0 = vpop.eup %11068 }
0x3854   :  { %v8689_v23 = vmul.f32 %v11069_v0, %v11067_v11 }
0x3856   :  { %10924 = vmatmul.mubr.msk.f32.vlgmr.msra.gmra.mxu0 %vm330_vm9, %v8689_v23  ;;  %v8690_v39 = vadd.f32 %v8689_v23, %v8160_v4 }
0x3857   :  { %10932 = vmatpush3.xpose.msk.msra.mxu0 %vm100_vm1, %v8838_v53  ;;  %10933 = vmatprep.mubr.msk.f32.mxu0 %vm11193_vm0, %v13233_v1  ;;  %v13239_v53 = vld [vmem:[#allocation22_spill] sm:$0xff] }
0x3858   :  { %10941 = vmatprep.subr.mxu0 %v13233_v1 }
0x385a   :  { %10934 = vmatmul.mubr.msk.f32.vlgmr.msra.gmra.mxu0 %vm100_vm1, %v12468_v44 }
0x385b   :  { %10942 = vmatpush3.xpose.msk.msra.mxu0 %vm100_vm1, %v8840_v19  ;;  %10943 = vmatprep.mubr.msk.f32.mxu0 %vm11193_vm0, %v13233_v1 }
0x385c   :  { %10951 = vmatprep.subr.mxu0 %v13233_v1 }
0x385e   :  { %10944 = vmatmul.mubr.msk.f32.vlgmr.msra.gmra.mxu0 %vm100_vm1, %v12468_v44 }
0x385f   :  { %10953 = vmatprep.mubr.msk.f32.mxu0 %vm11193_vm0, %v13233_v1 }
0x3916   :  { %v8760_v40 = vpop.f32.mrf.mxu0 }
0x3917   :  { %10929 = vmatmul.mubr.msk.f32.vlgmr.msra.gmra.mxu1 %vm330_vm9, %v8760_v40 }
0x3918   :  { %v10925_v21 = vpop.f32.mrf.mxu0  ;;  %10937 = vmatpush3.xpose.msk.msra.mxu1 %vm100_vm1, %v8839_v34  ;;  %10938 = vmatprep.mubr.msk.f32.mxu1 %vm11193_vm0, %v13233_v1 }
0x3919   :  { %10946 = vmatprep.subr.mxu1 %v13233_v1 }
0x391a   :  { %v8911_v60 = vpop.f32.mrf.mxu0 }
0x391b   :  { %10939 = vmatmul.mubr.msk.f32.vlgmr.msra.gmra.mxu1 %vm100_vm1, %v12468_v44  ;;  %v8912_v36 = vadd.f32 %v8911_v60, %v13238_v33 }
0x391c   :  { %v10935_v55 = vpop.f32.mrf.mxu0  ;;  %10948 = vmatprep.mubr.msk.f32.mxu1 %vm11193_vm0, %v13233_v1 }
0x391e   :  { %v9057_v29 = vpop.f32.mrf.mxu0 }
0x391f   :  { %v9058_v62 = vadd.f32 %v9057_v29, %v13236_v50 }
0x3920   :  { %v10945_v26 = vpop.f32.mrf.mxu0 }
0x3921   :  { %10952 = vmatpush3.msra.mxu0 %v9058_v62 }
0x3922   :  { %10961 = vmatprep.subr.mxu0 %v13233_v1 }
0x39d7   :  { %v8833_v46 = vpop.f32.mrf.mxu1 }
0x39d8   :  { %v8837_v41 = vadd.f32 %v8833_v46, %v8377_v3 }
0x39d9   :  { %v10930_v31 = vpop.f32.mrf.mxu1 }
0x39db   :  { %v8984_v42 = vpop.f32.mrf.mxu1 }
0x39dc   :  { %v8985_v15 = vadd.f32 %v8984_v42, %v13237_v63 }
0x39dd   :  { %v10940_v44 = vpop.f32.mrf.mxu1 }
0x39de   :  { %10947 = vmatpush3.xpose.msk.msra.mxu1 %vm330_vm9, %v8985_v15 }
0x39df   :  { %10956 = vmatprep.subr.mxu1 %v13233_v1 }
0x39e1   :  { %10949 = vmatmul.mubr.msk.f32.vlgmr.msra.gmra.mxu1 %vm330_vm9, %v8912_v36 }
0x39e2   :  { %10958 = vmatprep.mubr.msk.f32.mxu1 %vm11193_vm0, %v13233_v1  ;;  %10957 = vmatpush3.msra.mxu1 %v8841_v56 }
0x39e3   :  { %10972 = vmatprep.subr.mxu1 %v13233_v1 }
0x3aa1   :  { %v9133_v2 = vpop.f32.mrf.mxu1 }
0x3aa2   :  { %v9137_v10 = vsel %vm330_vm9, %v9133_v2, -inf }
0x3aa3   :  { %9138 = vmax.xlane.f32.xlu0 %v9137_v10  ;;  %v10950_v30 = vpop.f32.mrf.mxu1  ;;  %v11098_v10 = vld [vmem:[%s13208_s3 + $0x8] sm:$0xff] }
0x3aa4   :  { %v13240_v30 = vsub.s32 7, %v11324_v27 }
0x3b2c   :  { %v9139_v54 = vpop.xlane.xlu0 %9138 }
0x3b2d   :  { %v9140_v25 = vsub.f32 %v9133_v2, %v9139_v54  ;;  %v12646_v54 = vrot.slane %v11098_v10, %v13240_v30 }
0x3b2f   :  { %v9141_v58 = vmul.f32 1.442695, %v9140_v25  ;;  %v4772_v25 = vadd.f32 %v12183_v32, %v12646_v54 }
0x3b31   :  { %11070 = vpow2.f32 %v9141_v58  ;;  %v4776_v58 = vrot.slane %v4772_v25, 1 }
0x3b3e   :  { %v11071_v14 = vpop.eup %11070 }
0x3b3f   :  { %v9143_v13 = vsel %vm330_vm9, %v11071_v14, 0.0 }
0x3b40   :  { %9144 = vadd.xlane.f32.xlu1 %v9143_v13  ;;  %v12651_v13 = vadd.f32 %v4776_v58, %v12070_v48 }
0x3bc9   :  { %v9145_v43 = vpop.xlane.xlu1 %9144 }
0x3bca   :  { %11072 = vrcp.f32 %v9145_v43  ;;  %v4778_v43 = vrot.slane %v4772_v25, 3 }
0x3bcc   :  { %v12662_v32 = vadd.f32 %v4778_v43, %v12076_v18 }
0x3bd7   :  { %v11073_v7 = vpop.eup %11072 }
0x3bd8   :  { %v9147_v12 = vmul.f32 %v11073_v7, %v11071_v14  ;;  %v4777_v14 = vrot.slane %v4772_v25, 2  ;;  %v4807_v7 = vrot.slane %v12651_v13, 7 }
0x3bda   :  { %10954 = vmatmul.mubr.msk.f32.vlgmr.msra.gmra.mxu0 %vm330_vm9, %v9147_v12  ;;  %v9148_v52 = vadd.f32 %v9147_v12, %v8690_v39  ;;  %v12654_v56 = vadd.f32 %v4777_v14, %v12073_v22  ;;  %v12658_v12 = vadd.f32 %v4772_v25, %v12088_v45  ;;  %v4780_v22 = vrot.slane %v4772_v25, 5 }
0x3bdb   :  { %10969 = vmatprep.mubr.msk.f32.mxu0 %vm11193_vm0, %v13233_v1  ;;  %v4811_v45 = vrot.slane %v12662_v32, 5 }
0x3bdc   :  { %v9813_v11 = vmul.f32 0.25, %v9148_v52  ;;  %v4809_v52 = vrot.slane %v12654_v56, 6  ;;  %v4808_v48 = vsel %vm80_vm2, %v4807_v7, %v12658_v12 }
0x3bde   :  { %9964 = vst.msk [vmem:[#allocation8 + $0x8] sm:$0xff] %vm330_vm9, %v9813_v11 }
0x3c9a   :  { %v9218_v38 = vpop.f32.mrf.mxu0 }
0x3c9b   :  { %10959 = vmatmul.mubr.msk.f32.vlgmr.msra.gmra.mxu1 %vm330_vm9, %v9218_v38 }
0x3c9c   :  { %v10955_v8 = vpop.f32.mrf.mxu0  ;;  %10980 = vmatprep.mubr.msk.f32.mxu1 %vm11193_vm0, %v13233_v1 }
0x3c9d   :  { %v4779_v8 = vrot.slane %v4772_v25, 4 }
0x3c9f   :  { %v12673_v18 = vadd.f32 %v4779_v8, %v12079_v24 }
0x3d5b   :  { %v9291_v28 = vpop.f32.mrf.mxu1 }
0x3d5c   :  { %v9295_v0 = vadd.f32 %v9291_v28, %v8837_v41  ;;  %v4810_v28 = vsel %vm83_vm3, %v4809_v52, %v4808_v48 }
0x3d5d   :  { %v10960_v23 = vpop.f32.mrf.mxu1 }
0x3d5e   :  { %v9296_v4 = vadd.f32 %v9295_v0, %v13239_v53 }
0x3d60   :  { %v9304_v19 = vrot.slane %v9296_v4, 6  ;;  %v9298_v39 = vrot.slane %v9296_v4, 7  ;;  %v9299_v34 = vrot.slane %v9296_v4, 1  ;;  %v9300_v40 = vrot.slane %v9296_v4, 2 }
0x3d61   :  { %v9301_v21 = vrot.slane %v9296_v4, 3  ;;  %v9302_v60 = vrot.slane %v9296_v4, 4  ;;  %v9303_v55 = vrot.slane %v9296_v4, 5  ;;  %v9314_v29 = vadd.f32 %v9296_v4, %v12433_v16 }
0x3d62   :  { %v9320_v50 = vadd.f32 %v9304_v19, %v12454_v47  ;;  %v9313_v62 = vadd.f32 %v9298_v39, %v12430_v17  ;;  %v9315_v26 = vadd.f32 %v9299_v34, %v12436_v9  ;;  %v9316_v3 = vadd.f32 %v9300_v40, %v12439_v49 }
0x3d63   :  { %v9317_v46 = vadd.f32 %v9301_v21, %v12442_v59  ;;  %v9318_v41 = vadd.f32 %v9302_v60, %v12445_v5  ;;  %v9329_v31 = vrot.slane %v9314_v29, 7  ;;  %v9319_v63 = vadd.f32 %v9303_v55, %v12449_v37 }
0x3d64   :  { %v9341_v42 = vrot.slane %v9320_v50, 1  ;;  %v9331_v15 = vrot.slane %v9315_v26, 6  ;;  %v9333_v44 = vrot.slane %v9316_v3, 5  ;;  %v4781_v4 = vrot.slane %v4772_v25, 6 }
0x3d65   :  { %v9330_v16 = vsel %vm83_vm3, %v9329_v31, %v9313_v62  ;;  %v9335_v33 = vrot.slane %v9317_v46, 4  ;;  %v9337_v49 = vrot.slane %v9318_v41, 3  ;;  %v9339_v5 = vrot.slane %v9319_v63, 2 }
0x3d66   :  { %v9347_v47 = vsel %vm5072_vm12, %v9341_v42, 0.0  ;;  %v9332_v17 = vsel %vm86_vm4, %v9331_v15, %v9330_v16  ;;  %v12676_v39 = vadd.f32 %v4780_v22, %v12091_v61  ;;  %v4812_v34 = vsel %vm86_vm4, %v4811_v45, %v4810_v28  ;;  %v9464_v45 = vld [vmem:[#allocation5 + $0x58] sm:$0xff] }
0x3d67   :  { %9348 = vadd.xlane.f32.xlu1 %v9347_v47  ;;  %v9334_v9 = vsel %vm89_vm5, %v9333_v44, %v9332_v17  ;;  %10962 = vmatpush3.msra.mxu0 %v9464_v45 }
0x3d68   :  { %v9336_v59 = vsel %vm92_vm6, %v9335_v33, %v9334_v9  ;;  %v4813_v9 = vrot.slane %v12673_v18, 4  ;;  %10963 = vmatprep.subr.mxu0 %v13233_v1 }
0x3d69   :  { %v9338_v36 = vsel %vm95_vm7, %v9337_v49, %v9336_v59 }
0x3d6a   :  { %v9340_v37 = vsel %vm98_vm8, %v9339_v5, %v9338_v36 }
0x3d6b   :  { %v9344_v2 = vsel %vm6972_vm11, %v9340_v37, 0.0 }
0x3d6c   :  { %9345 = vadd.xlane.f32.xlu0 %v9344_v2  ;;  %v4815_v2 = vrot.slane %v12676_v39, 3 }
0x3df0   :  { %v9349_v27 = vpop.xlane.xlu1 %9348 }
0x3df1   :  { %v9351_v11 = vmul.f32 0.03125, %v9349_v27 }
0x3df3   :  { %v9360_v38 = vrot.slane %v9351_v11, 7 }
0x3df5   :  { %v12667_v0 = vsub.f32 %v9320_v50, %v9360_v38  ;;  %v9346_v23 = vpop.xlane.xlu0 %9345 }
0x3df6   :  { %v9350_v53 = vmul.f32 0.03125, %v9346_v23 }
0x3df7   :  { %v9384_v19 = vmul.f32 %v12667_v0, %v12667_v0 }
0x3df8   :  { %v9354_v40 = vrot.slane %v9350_v53, 1  ;;  %v9355_v21 = vrot.slane %v9350_v53, 2  ;;  %v9356_v60 = vrot.slane %v9350_v53, 3  ;;  %v9357_v55 = vrot.slane %v9350_v53, 4 }
0x3df9   :  { %v9405_v50 = vrot.slane %v9384_v19, 1  ;;  %v9358_v31 = vrot.slane %v9350_v53, 5  ;;  %v9359_v42 = vrot.slane %v9350_v53, 6  ;;  %v12679_v15 = vsub.f32 %v9313_v62, %v9350_v53  ;;  %v9463_v53 = vld [vmem:[#allocation5 + $0x50] sm:$0xff]  ;;  %v9461_v19 = vld [vmem:[#allocation5 + $0x40] sm:$0xff] }
0x3dfa   :  { %v12681_v44 = vsub.f32 %v9314_v29, %v9354_v40  ;;  %v12683_v16 = vsub.f32 %v9315_v26, %v9355_v21  ;;  %v12685_v24 = vsub.f32 %v9316_v3, %v9356_v60  ;;  %v12687_v47 = vsub.f32 %v9317_v46, %v9357_v55  ;;  %10964 = vmatpush3.msra.mxu0 %v9463_v53  ;;  %v9467_v40 = vld [vmem:[#allocation5 + $0x70] sm:$0xff]  ;;  %v9466_v21 = vld [vmem:[#allocation5 + $0x68] sm:$0xff] }
0x3dfb   :  { %v9411_v61 = vsel %vm5072_vm12, %v9405_v50, 0.0  ;;  %v12690_v17 = vsub.f32 %v9318_v41, %v9358_v31  ;;  %v12692_v33 = vsub.f32 %v9319_v63, %v9359_v42  ;;  %v4782_v46 = vrot.slane %v4772_v25, 7  ;;  %10965 = vmatprep.subr.mxu0 %v13233_v1 }
0x3dfc   :  { %9412 = vadd.xlane.f32.xlu1 %v9411_v61  ;;  %v9378_v62 = vmul.f32 %v12681_v44, %v12681_v44  ;;  %v9379_v29 = vmul.f32 %v12683_v16, %v12683_v16  ;;  %v9380_v26 = vmul.f32 %v12685_v24, %v12685_v24  ;;  %v9381_v3 = vmul.f32 %v12687_v47, %v12687_v47 }
0x3dfd   :  { %v12704_v41 = vadd.f32 %v4781_v4, %v12096_v35  ;;  %v4814_v63 = vsel %vm89_vm5, %v4813_v9, %v4812_v34  ;;  %v9377_v49 = vmul.f32 %v12679_v15, %v12679_v15  ;;  %v9382_v59 = vmul.f32 %v12690_v17, %v12690_v17  ;;  %v9462_v4 = vld [vmem:[#allocation5 + $0x48] sm:$0xff]  ;;  %v9468_v34 = vld [vmem:[#allocation5 + $0x78] sm:$0xff] }
0x3dfe   :  { %v9393_v5 = vrot.slane %v9378_v62, 7  ;;  %v9395_v36 = vrot.slane %v9379_v29, 6  ;;  %v9383_v37 = vmul.f32 %v12692_v33, %v12692_v33  ;;  %v9397_v30 = vrot.slane %v9380_v26, 5  ;;  %10966 = vmatpush3.msra.mxu0 %v9462_v4  ;;  %10973 = vmatpush3.xpose.msk.msra.mxu1 %vm2254_vm10, %v9468_v34 }
0x3dff   :  { %v9399_v25 = vrot.slane %v9381_v3, 4  ;;  %v12717_v58 = vadd.f32 %v4782_v46, %v12100_v6  ;;  %v4816_v14 = vsel %vm92_vm6, %v4815_v2, %v4814_v63  ;;  %v9401_v7 = vrot.slane %v9382_v59, 3  ;;  %10967 = vmatprep.subr.mxu0 %v13233_v1  ;;  %10974 = vmatprep.subr.mxu1 %v13233_v1 }
0x3e00   :  { %v9394_v10 = vsel %vm83_vm3, %v9393_v5, %v9377_v49  ;;  %v4817_v27 = vrot.slane %v12704_v41, 2  ;;  %v9403_v11 = vrot.slane %v9383_v37, 2  ;;  %10968 = vmatpush3.msra.mxu0 %v9461_v19 }
0x3e01   :  { %v9396_v35 = vsel %vm86_vm4, %v9395_v36, %v9394_v10  ;;  %v4819_v22 = vrot.slane %v12717_v58, 1 }
0x3e02   :  { %v9398_v43 = vsel %vm89_vm5, %v9397_v30, %v9396_v35  ;;  %v4818_v38 = vsel %vm95_vm7, %v4817_v27, %v4816_v14  ;;  %10975 = vmatpush3.xpose.msk.msra.mxu1 %vm2254_vm10, %v9467_v40 }
0x3e03   :  { %v9400_v52 = vsel %vm92_vm6, %v9399_v25, %v9398_v43  ;;  %v4820_v28 = vsel %vm98_vm8, %v4819_v22, %v4818_v38  ;;  %10976 = vmatprep.subr.mxu1 %v13233_v1 }
0x3e04   :  { %v9402_v48 = vsel %vm95_vm7, %v9401_v7, %v9400_v52  ;;  %v4822_v23 = vsel %vm100_vm1, %v4820_v28, 0.0 }
0x3e05   :  { %v9404_v8 = vsel %vm98_vm8, %v9403_v11, %v9402_v48 }
0x3e06   :  { %v9408_v6 = vsel %vm6972_vm11, %v9404_v8, 0.0  ;;  %10977 = vmatpush3.xpose.msk.msra.mxu1 %vm2254_vm10, %v9466_v21  ;;  %v9465_v21 = vld [vmem:[#allocation5 + $0x60] sm:$0xff] }
0x3e07   :  { %9409 = vadd.xlane.f32.xlu0 %v9408_v6  ;;  %10978 = vmatprep.subr.mxu1 %v13233_v1 }
0x3e0a   :  { %10979 = vmatpush3.xpose.msk.msra.mxu1 %vm2254_vm10, %v9465_v21 }
0x3e0b   :  { %4823 = vadd.xlane.f32.xlu0 %v4822_v23 }
0x3e85   :  { %v9413_v60 = vpop.xlane.xlu1 %9412 }
0x3e86   :  { %v9415_v55 = vmul.f32 0.03125, %v9413_v60 }
0x3e88   :  { %v9417_v50 = vadd.f32 1e-05, %v9415_v55 }
0x3e8a   :  { %11074 = vrsqrt.f32 %v9417_v50 }
0x3e90   :  { %v9410_v31 = vpop.xlane.xlu0 %9409 }
0x3e91   :  { %v9414_v42 = vmul.f32 0.03125, %v9410_v31 }
0x3e93   :  { %v9416_v61 = vadd.f32 1e-05, %v9414_v42 }
0x3e94   :  { %v4824_v42 = vpop.xlane.xlu0 %4823 }
0x3e95   :  { %11076 = vrsqrt.f32 %v9416_v61  ;;  %v4825_v61 = vmul.f32 0.03125, %v4824_v42 }
0x3e97   :  { %v11075_v9 = vpop.eup %11074 }
0x3e98   :  { %v9428_v62 = vrot.slane %v11075_v9, 7  ;;  %v4827_v9 = vrot.slane %v4825_v61, 1 }
0x3e9a   :  { %v9444_v49 = vmul.f32 %v9428_v62, %v12667_v0  ;;  %v4828_v62 = vrot.slane %v4825_v61, 2 }
0x3ea2   :  { %v11077_v29 = vpop.eup %11076 }
0x3ea3   :  { %v9422_v26 = vrot.slane %v11077_v29, 1  ;;  %v9423_v3 = vrot.slane %v11077_v29, 2  ;;  %v9424_v46 = vrot.slane %v11077_v29, 3  ;;  %v9425_v63 = vrot.slane %v11077_v29, 4 }
0x3ea4   :  { %v9426_v59 = vrot.slane %v11077_v29, 5  ;;  %v9427_v5 = vrot.slane %v11077_v29, 6  ;;  %v9437_v1 = vmul.f32 %v11077_v29, %v12679_v15  ;;  %v12799_v29 = vsub.f32 %v12651_v13, %v4827_v9 }
0x3ea5   :  { %v9438_v36 = vmul.f32 %v9422_v26, %v12681_v44  ;;  %v9439_v37 = vmul.f32 %v9423_v3, %v12683_v16  ;;  %v9440_v2 = vmul.f32 %v9424_v46, %v12685_v24  ;;  %v9441_v10 = vmul.f32 %v9425_v63, %v12687_v47 }
0x3ea6   :  { %v9442_v30 = vmul.f32 %v9426_v59, %v12690_v17  ;;  %v9443_v35 = vmul.f32 %v9427_v5, %v12692_v33  ;;  %v9445_v25 = vmul.f32 %v9437_v1, %v12034_v57  ;;  %v9452_v16 = vmul.f32 %v9444_v49, %v12034_v57 }
0x3ea7   :  { %v9446_v0 = vmul.f32 %v9438_v36, %v12034_v57  ;;  %v9447_v14 = vmul.f32 %v9439_v37, %v12034_v57  ;;  %v9448_v15 = vmul.f32 %v9440_v2, %v12034_v57  ;;  %v9449_v44 = vmul.f32 %v9441_v10, %v12034_v57 }
0x3ea8   :  { %v9450_v24 = vmul.f32 %v9442_v30, %v12034_v57  ;;  %v9451_v47 = vmul.f32 %v9443_v35, %v12034_v57  ;;  %v12756_v17 = vadd.f32 %v9445_v25, %v12037_v51  ;;  %v12780_v8 = vadd.f32 %v9452_v16, %v12037_v51 }
0x3ea9   :  { %v12759_v33 = vadd.f32 %v9446_v0, %v12037_v51  ;;  %v12762_v43 = vadd.f32 %v9447_v14, %v12037_v51  ;;  %v12765_v7 = vadd.f32 %v9448_v15, %v12037_v51  ;;  %v12768_v27 = vadd.f32 %v9449_v44, %v12037_v51 }
0x3eaa   :  { %v12771_v52 = vadd.f32 %v9450_v24, %v12037_v51  ;;  %v9477_v57 = vrot.slane %v12756_v17, 1  ;;  %v12775_v11 = vadd.f32 %v9451_v47, %v12037_v51  ;;  %v9489_v51 = vrot.slane %v12780_v8, 2 }
0x3eab   :  { %v9479_v48 = vrot.slane %v12762_v43, 7  ;;  %v9481_v38 = vrot.slane %v12765_v7, 6  ;;  %v9483_v28 = vrot.slane %v12768_v27, 5  ;;  %v12802_v26 = vsub.f32 %v12654_v56, %v4828_v62 }
0x3eac   :  { %v9478_v22 = vsel %vm80_vm2, %v12759_v33, %v9477_v57  ;;  %v9485_v45 = vrot.slane %v12771_v52, 4  ;;  %v9487_v4 = vrot.slane %v12775_v11, 3  ;;  %v4829_v3 = vrot.slane %v4825_v61, 3 }
0x3ead   :  { %v9480_v6 = vsel %vm83_vm3, %v9479_v48, %v9478_v22  ;;  %v4851_v46 = vmul.f32 %v12799_v29, %v12799_v29  ;;  %v4830_v63 = vrot.slane %v4825_v61, 4  ;;  %v12807_v49 = vsub.f32 %v12658_v12, %v4825_v61 }
0x3eae   :  { %v9482_v23 = vsel %vm86_vm4, %v9481_v38, %v9480_v6  ;;  %v4852_v59 = vmul.f32 %v12802_v26, %v12802_v26  ;;  %v12812_v5 = vsub.f32 %v12662_v32, %v4829_v3  ;;  %v4832_v1 = vrot.slane %v4825_v61, 6 }
0x3eaf   :  { %v9484_v53 = vsel %vm89_vm5, %v9483_v28, %v9482_v23  ;;  %v4866_v13 = vrot.slane %v4851_v46, 7  ;;  %v12815_v56 = vsub.f32 %v12673_v18, %v4830_v63  ;;  %v4850_v37 = vmul.f32 %v12807_v49, %v12807_v49 }
0x3eb0   :  { %v9486_v19 = vsel %vm92_vm6, %v9485_v45, %v9484_v53  ;;  %v4868_v2 = vrot.slane %v4852_v59, 6  ;;  %v4853_v12 = vmul.f32 %v12812_v5, %v12812_v5  ;;  %v4833_v30 = vrot.slane %v4825_v61, 7 }
0x3eb1   :  { %v9488_v34 = vsel %vm95_vm7, %v9487_v4, %v9486_v19  ;;  %v4867_v10 = vsel %vm80_vm2, %v4866_v13, %v4850_v37  ;;  %v12826_v32 = vsub.f32 %v12704_v41, %v4832_v1  ;;  %v4854_v18 = vmul.f32 %v12815_v56, %v12815_v56 }
0x3eb2   :  { %v9490_v40 = vsel %vm98_vm8, %v9489_v51, %v9488_v34  ;;  %v4869_v35 = vsel %vm83_vm3, %v4868_v2, %v4867_v10  ;;  %v4870_v0 = vrot.slane %v4853_v12, 5  ;;  %v12835_v15 = vsub.f32 %v12717_v58, %v4833_v30 }
0x3eb3   :  { %10970 = vmatmul.mubr.msk.f32.vlgmr.msra.gmra.mxu0 %vm100_vm1, %v9490_v40  ;;  %v4856_v41 = vmul.f32 %v12826_v32, %v12826_v32  ;;  %v4872_v24 = vrot.slane %v4854_v18, 4 }
0x3eb4   :  { %v4871_v16 = vsel %vm86_vm4, %v4870_v0, %v4869_v35 }
0x3eb5   :  { %v4873_v40 = vsel %vm89_vm5, %v4872_v24, %v4871_v16  ;;  %v4876_v42 = vrot.slane %v4856_v41, 2 }
0x3f73   :  { %v9559_v60 = vpop.f32.mrf.mxu0 }
0x3f74   :  { %v9560_v55 = vadd.f32 %v9559_v60, %v12158_v20  ;;  %v4831_v20 = vrot.slane %v4825_v61, 5 }
0x3f75   :  { %v10971_v50 = vpop.f32.mrf.mxu0 }
0x3f76   :  { %v9563_v31 = vmax.f32 %v9560_v55, 0.0  ;;  %v12818_v36 = vsub.f32 %v12676_v39, %v4831_v20 }
0x3f78   :  { %10981 = vmatmul.mubr.msk.f32.vlgmr.msra.gmra.mxu1 %vm2254_vm10, %v9563_v31  ;;  %v4855_v39 = vmul.f32 %v12818_v36, %v12818_v36 }
0x3f7a   :  { %v4874_v47 = vrot.slane %v4855_v39, 3 }
0x4038   :  { %v9645_v25 = vpop.f32.mrf.mxu1 }
0x4039   :  { %v9646_v14 = vadd.f32 %v9645_v25, %v12646_v54 }
0x403a   :  { %v10982_v44 = vpop.f32.mrf.mxu1 }
0x403b   :  { %v9656_v57 = vrot.slane %v9646_v14, 6  ;;  %v9650_v48 = vrot.slane %v9646_v14, 7  ;;  %v9651_v38 = vrot.slane %v9646_v14, 1  ;;  %v9652_v22 = vrot.slane %v9646_v14, 2 }
0x403c   :  { %v9653_v6 = vrot.slane %v9646_v14, 3  ;;  %v9654_v28 = vrot.slane %v9646_v14, 4  ;;  %v9655_v23 = vrot.slane %v9646_v14, 5  ;;  %v9666_v54 = vadd.f32 %v9646_v14, %v12759_v33 }
0x403d   :  { %v9672_v58 = vadd.f32 %v9656_v57, %v12780_v8  ;;  %v9665_v45 = vadd.f32 %v9650_v48, %v12756_v17  ;;  %v9667_v53 = vadd.f32 %v9651_v38, %v12762_v43  ;;  %v9668_v4 = vadd.f32 %v9652_v22, %v12765_v7 }
0x403e   :  { %v9669_v19 = vadd.f32 %v9653_v6, %v12768_v27  ;;  %v9670_v51 = vadd.f32 %v9654_v28, %v12771_v52  ;;  %v9681_v34 = vrot.slane %v9666_v54, 7  ;;  %v9671_v60 = vadd.f32 %v9655_v23, %v12775_v11 }
0x403f   :  { %v9693_v21 = vrot.slane %v9672_v58, 1  ;;  %v9683_v55 = vrot.slane %v9667_v53, 6  ;;  %v9685_v33 = vrot.slane %v9668_v4, 5  ;;  %v4857_v17 = vmul.f32 %v12835_v15, %v12835_v15 }
0x4040   :  { %v9682_v8 = vsel %vm83_vm3, %v9681_v34, %v9665_v45  ;;  %v9687_v27 = vrot.slane %v9669_v19, 4  ;;  %v4875_v52 = vsel %vm92_vm6, %v4874_v47, %v4873_v40  ;;  %v9689_v31 = vrot.slane %v9670_v51, 3 }
0x4041   :  { %v9699_v43 = vsel %vm5072_vm12, %v9693_v21, 0.0  ;;  %v9684_v7 = vsel %vm86_vm4, %v9683_v55, %v9682_v8  ;;  %v9691_v61 = vrot.slane %v9671_v60, 2  ;;  %v4877_v62 = vsel %vm95_vm7, %v4876_v42, %v4875_v52  ;;  %v12906_v42 = vld [vmem:[%s13208_s3 + $0x10] sm:$0x3f]  ;;  %s11197_s3 = smov [#allocation8]  }
0x4042   :  { %9700 = vadd.xlane.f32.xlu0 %v9699_v43  ;;  %v9686_v50 = vsel %vm89_vm5, %v9685_v33, %v9684_v7  ;;  %v4878_v46 = vrot.slane %v4857_v17, 1  ;;  %s9982_s24 = sshll.u32 %s11197_s3, 4  ;;  %s9983_s24 = int_to_ptr.vmem [resolvable:$true] %s9982_s24 }
0x4043   :  { %v9688_v11 = vsel %vm92_vm6, %v9687_v27, %v9686_v50  ;;  %s11140_s25 = scalar_lea.vmem %s9983_s24, 256  ;;  %p11145_p11 = scmp.lt.s32.totalorder %s9983_s24, %s9983_s24 }
0x4044   :  { %v9690_v9 = vsel %vm95_vm7, %v9689_v31, %v9688_v11  ;;  %v4879_v20 = vsel %vm98_vm8, %v4878_v46, %v4877_v62  ;;  %v13241_v11 = vld [vmem:[#allocation14_spill] sm:$0xff]  ;;  %p11141_p10 = scmp.ne.s32.totalorder %s9983_s24, %s11140_s25  ;;  %p11146_p12 = scmp.lt.s32.totalorder %s11140_s25, %s11140_s25 }
0x4045   :  { %v9692_v3 = vsel %vm98_vm8, %v9691_v61, %v9690_v9  ;;  %v4881_v59 = vsel %vm100_vm1, %v4879_v20, 0.0  ;;  %v12910_v61 = vrot.slane %v12906_v42, %v13241_v11  ;;  %v13242_v9 = vld [vmem:[#allocation15_spill] sm:$0xff] }
0x4046   :  { %v9696_v63 = vsel %vm6972_vm11, %v9692_v3, 0.0  ;;  %v12914_v62 = vrot.slane %v12906_v42, %v13242_v9  ;;  %p11147_p13 = por %p11146_p12, %p11145_p11 }
0x4047   :  { %9697 = vadd.xlane.f32.xlu1 %v9696_v63 }
0x4048   :  { %p11148_p0 = pnand %p11147_p13, %p11141_p10 }
0x404b   :  { %4882 = vadd.xlane.f32.xlu1 %v4881_v59 }
0x40cb   :  { %v9701_v13 = vpop.xlane.xlu0 %9700 }
0x40cc   :  { %v9703_v1 = vmul.f32 0.03125, %v9701_v13 }
0x40ce   :  { %v9712_v37 = vrot.slane %v9703_v1, 7 }
0x40d0   :  { %v12863_v2 = vsub.f32 %v9672_v58, %v9712_v37  ;;  %v9698_v12 = vpop.xlane.xlu1 %9697 }
0x40d1   :  { %v9702_v10 = vmul.f32 0.03125, %v9698_v12 }
0x40d2   :  { %v9736_v30 = vmul.f32 %v12863_v2, %v12863_v2 }
0x40d3   :  { %v9706_v18 = vrot.slane %v9702_v10, 1  ;;  %v9707_v39 = vrot.slane %v9702_v10, 2  ;;  %v9708_v35 = vrot.slane %v9702_v10, 3  ;;  %v9709_v25 = vrot.slane %v9702_v10, 4 }
0x40d4   :  { %v4883_v0 = vpop.xlane.xlu1 %4882  ;;  %v9757_v14 = vrot.slane %v9736_v30, 1  ;;  %v9710_v44 = vrot.slane %v9702_v10, 5  ;;  %v9711_v41 = vrot.slane %v9702_v10, 6  ;;  %v12867_v16 = vsub.f32 %v9665_v45, %v9702_v10 }
0x40d5   :  { %v4884_v24 = vmul.f32 0.03125, %v4883_v0  ;;  %v12869_v47 = vsub.f32 %v9666_v54, %v9706_v18  ;;  %v12871_v57 = vsub.f32 %v9667_v53, %v9707_v39  ;;  %v12873_v48 = vsub.f32 %v9668_v4, %v9708_v35 }
0x40d6   :  { %v9763_v38 = vsel %vm5072_vm12, %v9757_v14, 0.0  ;;  %v12876_v22 = vsub.f32 %v9669_v19, %v9709_v25  ;;  %v12878_v6 = vsub.f32 %v9670_v51, %v9710_v44  ;;  %v12880_v28 = vsub.f32 %v9671_v60, %v9711_v41 }
0x40d7   :  { %v4885_v23 = vadd.f32 1e-05, %v4884_v24  ;;  %9764 = vadd.xlane.f32.xlu1 %v9763_v38  ;;  %v9730_v58 = vmul.f32 %v12869_v47, %v12869_v47  ;;  %v9731_v54 = vmul.f32 %v12871_v57, %v12871_v57  ;;  %v9729_v45 = vmul.f32 %v12867_v16, %v12867_v16 }
0x40d8   :  { %v9732_v53 = vmul.f32 %v12873_v48, %v12873_v48  ;;  %v9733_v4 = vmul.f32 %v12876_v22, %v12876_v22  ;;  %v9734_v19 = vmul.f32 %v12878_v6, %v12878_v6  ;;  %v9735_v40 = vmul.f32 %v12880_v28, %v12880_v28 }
0x40d9   :  { %11078 = vrsqrt.f32 %v4885_v23  ;;  %v9745_v51 = vrot.slane %v9730_v58, 7  ;;  %v9747_v34 = vrot.slane %v9731_v54, 6 }
0x40da   :  { %v9749_v60 = vrot.slane %v9732_v53, 5  ;;  %v9751_v33 = vrot.slane %v9733_v4, 4  ;;  %v9753_v17 = vrot.slane %v9734_v19, 3  ;;  %v9755_v7 = vrot.slane %v9735_v40, 2 }
0x40db   :  { %v9746_v21 = vsel %vm83_vm3, %v9745_v51, %v9729_v45 }
0x40dc   :  { %v9748_v55 = vsel %vm86_vm4, %v9747_v34, %v9746_v21 }
0x40dd   :  { %v9750_v8 = vsel %vm89_vm5, %v9749_v60, %v9748_v55 }
0x40de   :  { %v9752_v43 = vsel %vm92_vm6, %v9751_v33, %v9750_v8 }
0x40df   :  { %v9754_v27 = vsel %vm95_vm7, %v9753_v17, %v9752_v43 }
0x40e0   :  { %v9756_v52 = vsel %vm98_vm8, %v9755_v7, %v9754_v27 }
0x40e1   :  { %v9760_v50 = vsel %vm6972_vm11, %v9756_v52, 0.0 }
0x40e2   :  { %9761 = vadd.xlane.f32.xlu0 %v9760_v50 }
0x40e6   :  { %v11079_v31 = vpop.eup %11078 }
0x40e7   :  { %v4888_v3 = vrot.slane %v11079_v31, 1  ;;  %v4889_v46 = vrot.slane %v11079_v31, 2  ;;  %v4890_v63 = vrot.slane %v11079_v31, 3  ;;  %v4891_v20 = vrot.slane %v11079_v31, 4 }
0x40e8   :  { %v4892_v59 = vrot.slane %v11079_v31, 5  ;;  %v4893_v13 = vrot.slane %v11079_v31, 6  ;;  %v4894_v1 = vrot.slane %v11079_v31, 7  ;;  %v4903_v37 = vmul.f32 %v11079_v31, %v12807_v49 }
0x40e9   :  { %v4904_v12 = vmul.f32 %v4888_v3, %v12799_v29  ;;  %v4905_v10 = vmul.f32 %v4889_v46, %v12802_v26  ;;  %v4906_v30 = vmul.f32 %v4890_v63, %v12812_v5  ;;  %v4907_v18 = vmul.f32 %v4891_v20, %v12815_v56 }
0x40ea   :  { %v4908_v39 = vmul.f32 %v4892_v59, %v12818_v36  ;;  %v4909_v35 = vmul.f32 %v4893_v13, %v12826_v32  ;;  %v4910_v25 = vmul.f32 %v4894_v1, %v12835_v15  ;;  %v4915_v0 = vmul.f32 %v12910_v61, %v4903_v37 }
0x40eb   :  { %v4916_v14 = vmul.f32 %v12910_v61, %v4904_v12  ;;  %v4917_v49 = vmul.f32 %v12910_v61, %v4905_v10  ;;  %v4918_v29 = vmul.f32 %v12910_v61, %v4906_v30  ;;  %v4919_v26 = vmul.f32 %v12910_v61, %v4907_v18 }
0x40ec   :  { %v4920_v5 = vmul.f32 %v12910_v61, %v4908_v39  ;;  %v4921_v56 = vmul.f32 %v12910_v61, %v4909_v35  ;;  %v4922_v36 = vmul.f32 %v12910_v61, %v4910_v25  ;;  %v12945_v24 = vadd.f32 %v12914_v62, %v4915_v0 }
0x40ed   :  { %v12933_v32 = vadd.f32 %v12914_v62, %v4916_v14  ;;  %v12936_v15 = vadd.f32 %v12914_v62, %v4917_v49  ;;  %v12939_v44 = vadd.f32 %v12914_v62, %v4918_v29  ;;  %v12942_v41 = vadd.f32 %v12914_v62, %v4919_v26 }
0x40ee   :  { %v12948_v38 = vadd.f32 %v12914_v62, %v4920_v5  ;;  %v12953_v54 = vadd.f32 %v12914_v62, %v4921_v56  ;;  %v12956_v45 = vadd.f32 %v12914_v62, %v4922_v36 }
0x40ef   :  { %v4944_v23 = vrot.slane %v12933_v32, 7  ;;  %v4946_v58 = vrot.slane %v12936_v15, 6  ;;  %v4948_v4 = vrot.slane %v12939_v44, 5  ;;  %v4950_v51 = vrot.slane %v12942_v41, 4 }
0x40f0   :  { %v4952_v40 = vrot.slane %v12948_v38, 3  ;;  %v4954_v60 = vrot.slane %v12953_v54, 2  ;;  %v4956_v33 = vrot.slane %v12956_v45, 1 }
0x40f1   :  { %v4945_v53 = vsel %vm80_vm2, %v4944_v23, %v12945_v24 }
0x40f2   :  { %v4947_v19 = vsel %vm83_vm3, %v4946_v58, %v4945_v53 }
0x40f3   :  { %v4949_v34 = vsel %vm86_vm4, %v4948_v4, %v4947_v19 }
0x40f4   :  { %v4951_v21 = vsel %vm89_vm5, %v4950_v51, %v4949_v34 }
0x40f5   :  { %v4953_v55 = vsel %vm92_vm6, %v4952_v40, %v4951_v21 }
0x40f6   :  { %v4955_v8 = vsel %vm95_vm7, %v4954_v60, %v4953_v55 }
0x40f7   :  { %v4957_v17 = vsel %vm98_vm8, %v4956_v33, %v4955_v8 }
0x40f8   :  { %v4959_v43 = vsel %vm100_vm1, %v4957_v17, 0.0 }
0x40f9   :  { %4960 = vadd.xlane.f32.xlu0 %v4959_v43 }
0x4160   :  { %v9765_v7 = vpop.xlane.xlu1 %9764 }
0x4161   :  { %v9767_v27 = vmul.f32 0.03125, %v9765_v7 }
0x4163   :  { %v9769_v52 = vadd.f32 1e-05, %v9767_v27 }
0x4165   :  { %11080 = vrsqrt.f32 %v9769_v52 }
0x416b   :  { %v9762_v50 = vpop.xlane.xlu0 %9761 }
0x416c   :  { %v9766_v31 = vmul.f32 0.03125, %v9762_v50 }
0x416e   :  { %v9768_v11 = vadd.f32 1e-05, %v9766_v31 }
0x4170   :  { %11082 = vrsqrt.f32 %v9768_v11 }
0x4172   :  { %v11081_v9 = vpop.eup %11080 }
0x4173   :  { %v9780_v3 = vrot.slane %v11081_v9, 7 }
0x4175   :  { %v9796_v46 = vmul.f32 %v9780_v3, %v12863_v2 }
0x4177   :  { %v9804_v63 = vmul.f32 %v9796_v46, %v12910_v61 }
0x4179   :  { %v12975_v20 = vadd.f32 %v9804_v63, %v12914_v62 }
0x417b   :  { %v9834_v59 = vrot.slane %v12975_v20, 1 }
0x417d   :  { %v11083_v13 = vpop.eup %11082  ;;  %v9840_v1 = vsel %vm5072_vm12, %v9834_v59, 0.0 }
0x417e   :  { %9841 = vadd.xlane.f32.xlu0 %v9840_v1  ;;  %v9774_v37 = vrot.slane %v11083_v13, 1  ;;  %v9775_v12 = vrot.slane %v11083_v13, 2  ;;  %v9776_v10 = vrot.slane %v11083_v13, 3  ;;  %v9777_v30 = vrot.slane %v11083_v13, 4 }
0x417f   :  { %v9778_v18 = vrot.slane %v11083_v13, 5  ;;  %v9779_v39 = vrot.slane %v11083_v13, 6  ;;  %v9789_v35 = vmul.f32 %v11083_v13, %v12867_v16 }
0x4180   :  { %v9790_v2 = vmul.f32 %v9774_v37, %v12869_v47  ;;  %v9791_v25 = vmul.f32 %v9775_v12, %v12871_v57  ;;  %v9792_v0 = vmul.f32 %v9776_v10, %v12873_v48  ;;  %v9793_v14 = vmul.f32 %v9777_v30, %v12876_v22 }
0x4181   :  { %v9794_v49 = vmul.f32 %v9778_v18, %v12878_v6  ;;  %v9795_v29 = vmul.f32 %v9779_v39, %v12880_v28  ;;  %v9797_v26 = vmul.f32 %v9789_v35, %v12910_v61 }
0x4182   :  { %v4961_v5 = vpop.xlane.xlu0 %4960  ;;  %v9798_v56 = vmul.f32 %v9790_v2, %v12910_v61  ;;  %v9799_v36 = vmul.f32 %v9791_v25, %v12910_v61  ;;  %v9800_v16 = vmul.f32 %v9792_v0, %v12910_v61  ;;  %v9801_v47 = vmul.f32 %v9793_v14, %v12910_v61 }
0x4183   :  { %v4962_v57 = vmul.f32 0.03125, %v4961_v5  ;;  %v9802_v48 = vmul.f32 %v9794_v49, %v12910_v61  ;;  %v9803_v22 = vmul.f32 %v9795_v29, %v12910_v61  ;;  %v13006_v53 = vadd.f32 %v9797_v26, %v12914_v62 }
0x4184   :  { %v12994_v6 = vadd.f32 %v9798_v56, %v12914_v62  ;;  %v12997_v28 = vadd.f32 %v9799_v36, %v12914_v62  ;;  %v13000_v23 = vadd.f32 %v9800_v16, %v12914_v62  ;;  %v13003_v58 = vadd.f32 %v9801_v47, %v12914_v62 }
0x4185   :  { %v13009_v4 = vadd.f32 %v9802_v48, %v12914_v62  ;;  %v4964_v19 = vrot.slane %v4962_v57, 1  ;;  %v4965_v61 = vrot.slane %v4962_v57, 2  ;;  %v13012_v51 = vadd.f32 %v9803_v22, %v12914_v62 }
0x4186   :  { %v9822_v34 = vrot.slane %v12994_v6, 7  ;;  %v9824_v40 = vrot.slane %v12997_v28, 6  ;;  %v9826_v21 = vrot.slane %v13000_v23, 5  ;;  %v9828_v60 = vrot.slane %v13003_v58, 4 }
0x4187   :  { %v9830_v55 = vrot.slane %v13009_v4, 3  ;;  %v4966_v33 = vrot.slane %v4962_v57, 3  ;;  %v4967_v8 = vrot.slane %v4962_v57, 4  ;;  %v4968_v43 = vrot.slane %v4962_v57, 5 }
0x4188   :  { %v9823_v17 = vsel %vm83_vm3, %v9822_v34, %v13006_v53  ;;  %v4969_v7 = vrot.slane %v4962_v57, 6  ;;  %v4970_v27 = vrot.slane %v4962_v57, 7  ;;  %v13023_v52 = vsub.f32 %v12945_v24, %v4962_v57 }
0x4189   :  { %v9825_v62 = vsel %vm86_vm4, %v9824_v40, %v9823_v17  ;;  %v13026_v50 = vsub.f32 %v12933_v32, %v4964_v19  ;;  %v13029_v31 = vsub.f32 %v12936_v15, %v4965_v61  ;;  %v13033_v9 = vsub.f32 %v12939_v44, %v4966_v33 }
0x418a   :  { %v9827_v11 = vsel %vm89_vm5, %v9826_v21, %v9825_v62  ;;  %v13036_v3 = vsub.f32 %v12942_v41, %v4967_v8  ;;  %v13039_v46 = vsub.f32 %v12948_v38, %v4968_v43  ;;  %v9832_v63 = vrot.slane %v13012_v51, 2 }
0x418b   :  { %v9829_v24 = vsel %vm92_vm6, %v9828_v60, %v9827_v11  ;;  %v13044_v32 = vsub.f32 %v12953_v54, %v4969_v7  ;;  %v13047_v15 = vsub.f32 %v12956_v45, %v4970_v27  ;;  %v4988_v44 = vmul.f32 %v13026_v50, %v13026_v50 }
0x418c   :  { %v9831_v59 = vsel %vm95_vm7, %v9830_v55, %v9829_v24  ;;  %v4989_v41 = vmul.f32 %v13029_v31, %v13029_v31  ;;  %v4990_v38 = vmul.f32 %v13033_v9, %v13033_v9  ;;  %v4987_v54 = vmul.f32 %v13023_v52, %v13023_v52 }
0x418d   :  { %v9833_v13 = vsel %vm98_vm8, %v9832_v63, %v9831_v59  ;;  %v4991_v45 = vmul.f32 %v13036_v3, %v13036_v3  ;;  %v4992_v37 = vmul.f32 %v13039_v46, %v13039_v46  ;;  %v5003_v12 = vrot.slane %v4988_v44, 7 }
0x418e   :  { %v9837_v1 = vsel %vm6972_vm11, %v9833_v13, 0.0  ;;  %v5005_v10 = vrot.slane %v4989_v41, 6  ;;  %v4993_v30 = vmul.f32 %v13044_v32, %v13044_v32  ;;  %v4994_v18 = vmul.f32 %v13047_v15, %v13047_v15 }
0x418f   :  { %9838 = vadd.xlane.f32.xlu1 %v9837_v1  ;;  %v5004_v39 = vsel %vm80_vm2, %v5003_v12, %v4987_v54  ;;  %v5007_v35 = vrot.slane %v4990_v38, 5  ;;  %v5009_v25 = vrot.slane %v4991_v45, 4  ;;  %v5011_v14 = vrot.slane %v4992_v37, 3 }
0x4190   :  { %v5006_v2 = vsel %vm83_vm3, %v5005_v10, %v5004_v39  ;;  %v5013_v29 = vrot.slane %v4993_v30, 2  ;;  %v5015_v5 = vrot.slane %v4994_v18, 1 }
0x4191   :  { %v5008_v0 = vsel %vm86_vm4, %v5007_v35, %v5006_v2 }
0x4192   :  { %v5010_v49 = vsel %vm89_vm5, %v5009_v25, %v5008_v0  ;;  %v13243_v0 = vld [vmem:[#allocation16_spill] sm:$0xff] }
0x4193   :  { %v5012_v26 = vsel %vm92_vm6, %v5011_v14, %v5010_v49  ;;  %v13126_v14 = vrot.slane %v12906_v42, %v13243_v0  ;;  %v13244_v49 = vld [vmem:[#allocation17_spill] sm:$0xff] }
0x4194   :  { %v5014_v56 = vsel %vm95_vm7, %v5013_v29, %v5012_v26  ;;  %v13130_v29 = vrot.slane %v12906_v42, %v13244_v49 }
0x4195   :  { %v5016_v36 = vsel %vm98_vm8, %v5015_v5, %v5014_v56 }
0x4196   :  { %v5018_v16 = vsel %vm100_vm1, %v5016_v36, 0.0 }
0x4197   :  { %5019 = vadd.xlane.f32.xlu1 %v5018_v16 }
0x4207   :  { %v9842_v47 = vpop.xlane.xlu0 %9841 }
0x4208   :  { %v9844_v57 = vmul.f32 0.03125, %v9842_v47 }
0x420a   :  { %v9853_v48 = vrot.slane %v9844_v57, 7 }
0x420c   :  { %v13077_v22 = vsub.f32 %v12975_v20, %v9853_v48 }
0x420e   :  { %v9877_v19 = vmul.f32 %v13077_v22, %v13077_v22 }
0x4210   :  { %v9898_v61 = vrot.slane %v9877_v19, 1 }
0x4212   :  { %v9904_v34 = vsel %vm5072_vm12, %v9898_v61, 0.0 }
0x4213   :  { %9905 = vadd.xlane.f32.xlu1 %v9904_v34 }
0x4218   :  { %v9839_v40 = vpop.xlane.xlu1 %9838 }
0x4219   :  { %v9843_v21 = vmul.f32 0.03125, %v9839_v40 }
0x421b   :  { %v9847_v60 = vrot.slane %v9843_v21, 1  ;;  %v9848_v55 = vrot.slane %v9843_v21, 2  ;;  %v9849_v33 = vrot.slane %v9843_v21, 3  ;;  %v9850_v8 = vrot.slane %v9843_v21, 4 }
0x421c   :  { %v9851_v17 = vrot.slane %v9843_v21, 5  ;;  %v9852_v43 = vrot.slane %v9843_v21, 6  ;;  %v13083_v7 = vsub.f32 %v13006_v53, %v9843_v21 }
0x421d   :  { %v13086_v20 = vsub.f32 %v12994_v6, %v9847_v60  ;;  %v13089_v27 = vsub.f32 %v12997_v28, %v9848_v55  ;;  %v13092_v62 = vsub.f32 %v13000_v23, %v9849_v33  ;;  %v13095_v11 = vsub.f32 %v13003_v58, %v9850_v8 }
0x421e   :  { %v13098_v24 = vsub.f32 %v13009_v4, %v9851_v17  ;;  %v13101_v63 = vsub.f32 %v13012_v51, %v9852_v43  ;;  %v9870_v4 = vmul.f32 %v13083_v7, %v13083_v7 }
0x421f   :  { %v9871_v53 = vmul.f32 %v13086_v20, %v13086_v20  ;;  %v9872_v6 = vmul.f32 %v13089_v27, %v13089_v27  ;;  %v9873_v28 = vmul.f32 %v13092_v62, %v13092_v62  ;;  %v9874_v23 = vmul.f32 %v13095_v11, %v13095_v11 }
0x4220   :  { %v5020_v58 = vpop.xlane.xlu1 %5019  ;;  %v9875_v51 = vmul.f32 %v13098_v24, %v13098_v24  ;;  %v9876_v38 = vmul.f32 %v13101_v63, %v13101_v63 }
0x4221   :  { %v9886_v59 = vrot.slane %v9871_v53, 7  ;;  %v9888_v44 = vrot.slane %v9872_v6, 6  ;;  %v5021_v41 = vmul.f32 0.03125, %v5020_v58  ;;  %v9890_v54 = vrot.slane %v9873_v28, 5 }
0x4222   :  { %v9892_v37 = vrot.slane %v9874_v23, 4  ;;  %v9894_v10 = vrot.slane %v9875_v51, 3  ;;  %v9896_v18 = vrot.slane %v9876_v38, 2 }
0x4223   :  { %v9887_v13 = vsel %vm83_vm3, %v9886_v59, %v9870_v4  ;;  %v5022_v45 = vadd.f32 1e-05, %v5021_v41 }
0x4224   :  { %v9889_v1 = vsel %vm86_vm4, %v9888_v44, %v9887_v13 }
0x4225   :  { %v9891_v12 = vsel %vm89_vm5, %v9890_v54, %v9889_v1  ;;  %11084 = vrsqrt.f32 %v5022_v45 }
0x4226   :  { %v9893_v30 = vsel %vm92_vm6, %v9892_v37, %v9891_v12 }
0x4227   :  { %v9895_v39 = vsel %vm95_vm7, %v9894_v10, %v9893_v30 }
0x4228   :  { %v9897_v35 = vsel %vm98_vm8, %v9896_v18, %v9895_v39 }
0x4229   :  { %v9901_v2 = vsel %vm6972_vm11, %v9897_v35, 0.0 }
0x422a   :  { %9902 = vadd.xlane.f32.xlu0 %v9901_v2 }
0x4232   :  { %v11085_v25 = vpop.eup %11084 }
0x4233   :  { %v5025_v26 = vrot.slane %v11085_v25, 1  ;;  %v5026_v5 = vrot.slane %v11085_v25, 2  ;;  %v5027_v56 = vrot.slane %v11085_v25, 3  ;;  %v5028_v36 = vrot.slane %v11085_v25, 4 }
0x4234   :  { %v5029_v16 = vrot.slane %v11085_v25, 5  ;;  %v5030_v47 = vrot.slane %v11085_v25, 6  ;;  %v5031_v57 = vrot.slane %v11085_v25, 7  ;;  %v5040_v48 = vmul.f32 %v11085_v25, %v13023_v52 }
0x4235   :  { %v5041_v19 = vmul.f32 %v5025_v26, %v13026_v50  ;;  %v5042_v61 = vmul.f32 %v5026_v5, %v13029_v31  ;;  %v5043_v34 = vmul.f32 %v5027_v56, %v13033_v9  ;;  %v5044_v40 = vmul.f32 %v5028_v36, %v13036_v3 }
0x4236   :  { %v5045_v42 = vmul.f32 %v5029_v16, %v13039_v46  ;;  %v5046_v21 = vmul.f32 %v5030_v47, %v13044_v32  ;;  %v5047_v60 = vmul.f32 %v5031_v57, %v13047_v15  ;;  %v5052_v55 = vmul.f32 %v13126_v14, %v5040_v48 }
0x4237   :  { %v5053_v33 = vmul.f32 %v13126_v14, %v5041_v19  ;;  %v5054_v52 = vmul.f32 %v13126_v14, %v5042_v61  ;;  %v5055_v50 = vmul.f32 %v13126_v14, %v5043_v34  ;;  %v5056_v31 = vmul.f32 %v13126_v14, %v5044_v40 }
0x4238   :  { %v5057_v9 = vmul.f32 %v13126_v14, %v5045_v42  ;;  %v5058_v3 = vmul.f32 %v13126_v14, %v5046_v21  ;;  %v5059_v46 = vmul.f32 %v13126_v14, %v5047_v60  ;;  %v5064_v32 = vadd.f32 %v13130_v29, %v5052_v55 }
0x4239   :  { %v5065_v15 = vadd.f32 %v13130_v29, %v5053_v33  ;;  %v5066_v8 = vadd.f32 %v13130_v29, %v5054_v52  ;;  %v5067_v17 = vadd.f32 %v13130_v29, %v5055_v50  ;;  %v5068_v43 = vadd.f32 %v13130_v29, %v5056_v31 }
0x423a   :  { %v5069_v53 = vadd.f32 %v13130_v29, %v5057_v9  ;;  %v5070_v6 = vadd.f32 %v13130_v29, %v5058_v3  ;;  %v5071_v28 = vadd.f32 %v13130_v29, %v5059_v46  ;;  %5073 = vst.msk [vmem:[#allocation7] sm:$0x1] %vm5072_vm12, %v5064_v32 }
0x423b   :  { %5074 = vst.msk [vmem:[#allocation7 + $0x2] sm:$0x1] %vm5072_vm12, %v5065_v15  ;;  %5075 = vst.msk [vmem:[#allocation7 + $0x4] sm:$0x1] %vm5072_vm12, %v5066_v8 }
0x423c   :  { %5076 = vst.msk [vmem:[#allocation7 + $0x6] sm:$0x1] %vm5072_vm12, %v5067_v17  ;;  %5077 = vst.msk [vmem:[#allocation7 + $0x8] sm:$0x1] %vm5072_vm12, %v5068_v43 }
0x423d   :  { %5078 = vst.msk [vmem:[#allocation7 + $0xa] sm:$0x1] %vm5072_vm12, %v5069_v53  ;;  %5079 = vst.msk [vmem:[#allocation7 + $0xc] sm:$0x1] %vm5072_vm12, %v5070_v6 }
0x423e   :  { %5080 = vst.msk [vmem:[#allocation7 + $0xe] sm:$0x1] %vm5072_vm12, %v5071_v28 }
0x423f   :  { %11151 = shalt.err (!%p11148_p0)
}
0x4240   :  { %9988 = dma.vmem_to_hbm [thread:$0]  %s9983_s24, 256, %s13210_s5, [#allocation9], %s11189_s21, %s11189_s21, %s11190_s22   ;;  %vm9954_vm13 = vcmask 254977  }
0x4241   :  { %s11198_s5 = smov [#allocation7]  }
0x4242   :  { %s9970_s21 = sshll.u32 %s11198_s5, 4  ;;  %s9971_s21 = int_to_ptr.vmem [resolvable:$true] %s9970_s21 }
0x4243   :  { %s11160_s22 = scalar_lea.vmem %s9971_s21, 256  ;;  %p11165_p2 = scmp.lt.s32.totalorder %s9971_s21, %s9971_s21 }
0x4244   :  { %p11161_p1 = scmp.ne.s32.totalorder %s9971_s21, %s11160_s22  ;;  %p11166_p3 = scmp.lt.s32.totalorder %s11160_s22, %s11160_s22 }
0x4246   :  { %p11167_p4 = por %p11166_p3, %p11165_p2 }
0x4248   :  { %p11168_p5 = pnand %p11167_p4, %p11161_p1 }
0x429c   :  { %v9906_v23 = vpop.xlane.xlu1 %9905 }
0x429d   :  { %v9908_v58 = vmul.f32 0.03125, %v9906_v23 }
0x429f   :  { %v9910_v4 = vadd.f32 1e-05, %v9908_v58 }
0x42a1   :  { %11086 = vrsqrt.f32 %v9910_v4 }
0x42ae   :  { %v11087_v51 = vpop.eup %11086 }
0x42af   :  { %v9921_v59 = vrot.slane %v11087_v51, 7 }
0x42b1   :  { %v9937_v44 = vmul.f32 %v9921_v59, %v13077_v22 }
0x42b3   :  { %v9945_v41 = vmul.f32 %v9937_v44, %v13126_v14  ;;  %v9903_v38 = vpop.xlane.xlu0 %9902 }
0x42b4   :  { %v9907_v13 = vmul.f32 0.03125, %v9903_v38 }
0x42b5   :  { %v9953_v54 = vadd.f32 %v9945_v41, %v13130_v29 }
0x42b6   :  { %v9909_v45 = vadd.f32 1e-05, %v9907_v13 }
0x42b7   :  { %9962 = vst.msk [vmem:[#allocation7 + $0xe] sm:$0x2] %vm9954_vm13, %v9953_v54 }
0x42b8   :  { %11088 = vrsqrt.f32 %v9909_v45 }
0x42c5   :  { %v11089_v1 = vpop.eup %11088 }
0x42c6   :  { %v9915_v37 = vrot.slane %v11089_v1, 1  ;;  %v9916_v12 = vrot.slane %v11089_v1, 2  ;;  %v9917_v10 = vrot.slane %v11089_v1, 3  ;;  %v9918_v30 = vrot.slane %v11089_v1, 4 }
0x42c7   :  { %v9919_v18 = vrot.slane %v11089_v1, 5  ;;  %v9920_v39 = vrot.slane %v11089_v1, 6  ;;  %v9930_v22 = vmul.f32 %v11089_v1, %v13083_v7 }
0x42c8   :  { %v9931_v35 = vmul.f32 %v9915_v37, %v13086_v20  ;;  %v9932_v2 = vmul.f32 %v9916_v12, %v13089_v27  ;;  %v9933_v25 = vmul.f32 %v9917_v10, %v13092_v62  ;;  %v9934_v0 = vmul.f32 %v9918_v30, %v13095_v11 }
0x42c9   :  { %v9935_v49 = vmul.f32 %v9919_v18, %v13098_v24  ;;  %v9936_v26 = vmul.f32 %v9920_v39, %v13101_v63  ;;  %v9938_v5 = vmul.f32 %v9930_v22, %v13126_v14 }
0x42ca   :  { %v9939_v56 = vmul.f32 %v9931_v35, %v13126_v14  ;;  %v9940_v36 = vmul.f32 %v9932_v2, %v13126_v14  ;;  %v9941_v7 = vmul.f32 %v9933_v25, %v13126_v14  ;;  %v9942_v20 = vmul.f32 %v9934_v0, %v13126_v14 }
0x42cb   :  { %v9943_v27 = vmul.f32 %v9935_v49, %v13126_v14  ;;  %v9944_v62 = vmul.f32 %v9936_v26, %v13126_v14  ;;  %v9946_v11 = vadd.f32 %v9938_v5, %v13130_v29 }
0x42cc   :  { %v9947_v24 = vadd.f32 %v9939_v56, %v13130_v29  ;;  %v9948_v63 = vadd.f32 %v9940_v36, %v13130_v29  ;;  %v9949_v16 = vadd.f32 %v9941_v7, %v13130_v29  ;;  %v9950_v47 = vadd.f32 %v9942_v20, %v13130_v29 }
0x42cd   :  { %v9951_v57 = vadd.f32 %v9943_v27, %v13130_v29  ;;  %v9952_v48 = vadd.f32 %v9944_v62, %v13130_v29  ;;  %9955 = vst.msk [vmem:[#allocation7] sm:$0x2] %vm9954_vm13, %v9946_v11 }
0x42ce   :  { %9956 = vst.msk [vmem:[#allocation7 + $0x2] sm:$0x2] %vm9954_vm13, %v9947_v24  ;;  %9957 = vst.msk [vmem:[#allocation7 + $0x4] sm:$0x2] %vm9954_vm13, %v9948_v63 }
0x42cf   :  { %9958 = vst.msk [vmem:[#allocation7 + $0x6] sm:$0x2] %vm9954_vm13, %v9949_v16  ;;  %9959 = vst.msk [vmem:[#allocation7 + $0x8] sm:$0x2] %vm9954_vm13, %v9950_v47 }
0x42d0   :  { %9960 = vst.msk [vmem:[#allocation7 + $0xa] sm:$0x2] %vm9954_vm13, %v9951_v57  ;;  %9961 = vst.msk [vmem:[#allocation7 + $0xc] sm:$0x2] %vm9954_vm13, %v9952_v48 }
0x42d1   :  { %11171 = shalt.err (!%p11168_p5)
}
0x42d2   :  { %s11199_s28 = smov 32   ;;  %s11200_s29 = smov 2  }
0x42d3   :  { %9976 = dma.vmem_to_hbm [thread:$0]  %s9971_s21, 256, %s13209_s4, [#allocation4], %s11199_s28, %s11199_s28, %s11200_s29  }
0x42d4   :  { %11184 = dma.done.wait [#allocation4], 256  }
0x42d5   :  { %11185 = vsyncadd [#allocation4], 4294967040 }
0x42d6   :  { %11186 = dma.done.wait [#allocation9], 256  }
0x42d7   :  { %11187 = vsyncadd [#allocation9], 4294967040 }
0x42d8   :  { %9995 = vsyncpa [#allocation3], 1 }
0x42d9   :  { %9996 = vsyncpa [#allocation6], 1 }
0x42da   :  { %9997 = vsyncpa [#allocation4], 1 }
0x42db   :  { %9998 = vsyncpa [#allocation9], 1 }

</bundles_post_ra>
